<compile_context>
chip_gen: v7x
topology: tpu7x:2x2x1
jax: 0.10.0
libtpu: 0.0.40
codegen_flags: <defaults>
</compile_context>

<pallas_src>
import functools
import math

import jax
import jax.numpy as jnp
import numpy as np
from jax import lax
from jax.experimental import pallas as pl
from jax.experimental.pallas import tpu as pltpu


# -----------------------------------------------------------------------------
# In-kernel periodic shift:  out[..., x, ...] = in[..., (x + s) % d, ...]
# (== jnp.roll(in, -s, axis)).  pltpu.roll is the cheap XLU path for the minor
# (sublane / lane) axes; its shift convention is probed once on-device so a
# convention change can never silently flip the sign.  If the probe cannot run,
# we fall back to an explicit slice+concatenate (same semantics).
# -----------------------------------------------------------------------------
_ROLL_MODE = None  # "pltpu" (== jnp.roll convention), "pltpu_flip", or "jnp"


def _probe_roll_mode():
    global _ROLL_MODE
    if _ROLL_MODE is not None:
        return _ROLL_MODE

    x = np.arange(8 * 128, dtype=np.float32).reshape(8, 128)

    def _k(x_ref, o_ref):
        o_ref[...] = pltpu.roll(x_ref[...], 3, 1)

    try:
        y = pl.pallas_call(
            _k, out_shape=jax.ShapeDtypeStruct((8, 128), jnp.float32)
        )(jnp.asarray(x))
        y = np.asarray(jax.block_until_ready(y))
        if np.array_equal(y, np.roll(x, 3, axis=1)):
            _ROLL_MODE = "pltpu"
        elif np.array_equal(y, np.roll(x, -3, axis=1)):
            _ROLL_MODE = "pltpu_flip"
        else:
            _ROLL_MODE = "jnp"
    except Exception:  # pragma: no cover - pltpu.roll unavailable
        _ROLL_MODE = "jnp"
    return _ROLL_MODE


def _shift_tile(t, s, axis, *, mode):
    """Periodic shift by +s sites along `axis` of a lattice-shaped tile."""
    d = t.shape[axis]
    s = s % d
    if s == 0:
        return t
    if mode != "jnp" and axis >= t.ndim - 2:
        shift = (d - s) if mode == "pltpu" else s
        return pltpu.roll(t, shift, axis)
    # Leading axes / fallback: explicit slice + concat (== jnp.roll(t, -s, axis)).
    return jnp.concatenate(
        [lax.slice_in_dim(t, s, d, axis=axis),
         lax.slice_in_dim(t, 0, s, axis=axis)],
        axis=axis)


# -----------------------------------------------------------------------------
# Per-(mu, nu) plaquette kernel.
#   vm_ref, vn_ref : blocks (1, 1, 2, r, r, *dims)  -- channels mu / nu of V
#   w_ref          : block  (1, 2, r, r, *dims)
# Every complex entry is a dense `dims`-shaped tile; arithmetic is elementwise
# over the whole lattice (VPU), shifts go through the XLU.
# -----------------------------------------------------------------------------
def _make_plaq_kernel(mu, nu, size, r, dims, roll_mode):
    shift = functools.partial(_shift_tile, mode=roll_mode)

    def shift_entry(e, s, axis):
        return shift(e[0], s, axis), shift(e[1], s, axis)

    def cmul(a, b):                       # a * b
        ar, ai = a
        br, bi = b
        return ar * br - ai * bi, ar * bi + ai * br

    def cmul_conj(a, b):                  # a * conj(b)
        ar, ai = a
        br, bi = b
        return ar * br + ai * bi, ai * br - ar * bi

    def cacc(acc, t):
        return t if acc is None else (acc[0] + t[0], acc[1] + t[1])

    def matmul(get_x, get_y):             # r x r complex matrix product
        out = []
        for i in range(r):
            row = []
            for j in range(r):
                acc = None
                for k in range(r):
                    acc = cacc(acc, cmul(get_x(i, k), get_y(k, j)))
                row.append(acc)
            out.append(row)
        return out

    def kernel(vm_ref, vn_ref, w_ref):
        def u_m(i, k):                    # link entries, shape = dims
            return vm_ref[0, 0, 0, i, k], vm_ref[0, 0, 1, i, k]

        def u_n(i, k):
            return vn_ref[0, 0, 0, i, k], vn_ref[0, 0, 1, i, k]

        if size == 1:
            a_get, d_get = u_m, u_n
        else:
            # Fused long links: V_mu(x) = prod_{s<size} U_mu(x + s e_mu).
            vm = [[u_m(i, k) for k in range(r)] for i in range(r)]
            vn = [[u_n(i, k) for k in range(r)] for i in range(r)]
            for s in range(1, size):
                vm = matmul(lambda i, k: vm[i][k],
                            lambda k, j: shift_entry(u_m(k, j), s, mu))
                vn = matmul(lambda i, k: vn[i][k],
                            lambda k, j: shift_entry(u_n(k, j), s, nu))
            a_get = lambda i, k: vm[i][k]   # noqa: E731
            d_get = lambda i, k: vn[i][k]   # noqa: E731

        # Phase 1:  P = V_nu(x) . V_mu(x + size e_nu)   (later use P^dag).
        c_mat = [[shift_entry(a_get(i, k), size, nu) for k in range(r)]
                 for i in range(r)]
        p_mat = matmul(d_get, lambda k, j: c_mat[k][j])

        # Phase 2:  B = V_nu(x + size e_mu); stream rows of X = A . B and write
        #           W[i][j] = sum_k X[i][k] * conj(P[j][k])  (= X . P^dag).
        b_mat = [[shift_entry(d_get(i, k), size, mu) for k in range(r)]
                 for i in range(r)]
        for i in range(r):
            a_row = [a_get(i, m) for m in range(r)]
            x_row = []
            for k in range(r):
                acc = None
                for m in range(r):
                    acc = cacc(acc, cmul(a_row[m], b_mat[m][k]))
                x_row.append(acc)
            for j in range(r):
                acc = None
                for k in range(r):
                    acc = cacc(acc, cmul_conj(x_row[k], p_mat[j][k]))
                w_ref[0, 0, i, j] = acc[0]
                w_ref[0, 1, i, j] = acc[1]

    return kernel


# -----------------------------------------------------------------------------
# Wrapper (jitted): one repack pass in, per-pair pallas_calls, one repack out.
# -----------------------------------------------------------------------------
def _plaquette_impl(u, *, dims, size, roll_mode):
    dims = tuple(int(d) for d in dims)
    D = len(dims)
    B, N, Dc, r, r2, two = u.shape
    assert two == 2 and r == r2, "u must be [B, N, D, r, r, 2]"
    assert Dc == D and N == math.prod(dims), "dims inconsistent with u"

    npl = D * (D - 1) // 2
    if npl == 0:                       # D == 1: nothing to append
        return u

    # Single repack pass: [B, N, D, r, r, 2] -> V[B, D, 2, r, r, *dims]
    v = u.astype(jnp.float32).reshape((B,) + dims + (D, r, r, 2))
    v = jnp.transpose(
        v, (0, D + 1, D + 4, D + 2, D + 3) + tuple(range(1, D + 1)))

    in_block = (1, 1, 2, r, r) + dims
    out_block = (1, 2, r, r) + dims
    lat_bytes = 2 * r * r * N * 4

    def in_spec(chan):
        return pl.BlockSpec(
            in_block, lambda b: (b, chan, 0, 0, 0) + (0,) * D)

    out_spec = pl.BlockSpec(out_block, lambda b: (b, 0, 0, 0) + (0,) * D)

    cost = pl.CostEstimate(
        flops=B * N * 8 * (r ** 3) * (3 + 2 * (size - 1)),
        transcendentals=0,
        bytes_accessed=3 * B * lat_bytes)

    w_pairs = []
    for mu in range(D):
        for nu in range(mu + 1, D):
            w = pl.pallas_call(
                _make_plaq_kernel(mu, nu, size, r, dims, roll_mode),
                grid=(B,),
                in_specs=[in_spec(mu), in_spec(nu)],
                out_specs=out_spec,
                out_shape=jax.ShapeDtypeStruct((B, 2, r, r) + dims,
                                               jnp.float32),
                compiler_params=pltpu.CompilerParams(
                    dimension_semantics=("parallel",)),
                cost_estimate=cost,
            )(v, v)
            w_pairs.append(w)

    w = jnp.stack(w_pairs, axis=1)                   # [B, npl, 2, r, r, *dims]
    w = jnp.transpose(w, (0,) + tuple(range(5, 5 + D)) + (1, 3, 4, 2))
    w = w.reshape(B, N, npl, r, r, 2).astype(u.dtype)
    return jnp.concatenate([u, w], axis=2)           # [B, N, D+npl, r, r, 2]


class _GroupShim:
    """Minimal stand-in for the gauge group object (only rep_dim is needed)."""

    def __init__(self, rep_dim):
        self.rep_dim = rep_dim


class Plaquette:
    """JAX/Pallas port of the PyTorch `Plaquette` nn.Module (forward only)."""

    def __init__(self, dims, group=None, size=1, output_type='real'):
        if output_type != 'real':
            # TODO(synk): 'complex' output_type (complex-dtype repack) not implemented.
            raise NotImplementedError("only output_type='real' is supported")
        self.dims = tuple(int(d) for d in dims)
        self.group = group
        self.size = int(size)
        self.output_type = output_type
        self._fn = jax.jit(functools.partial(
            _plaquette_impl, dims=self.dims, size=self.size,
            roll_mode=_probe_roll_mode()))

    def __call__(self, u):
        return self._fn(u)


def plaquette(dims, u, group=None, size=1, output_type='real'):
    """Functional form mirroring the original `plaquette(...)` helper."""
    return Plaquette(dims, group=group, size=size, output_type=output_type)(u)


# --------------------------- pure-JAX reference --------------------------------
def plaquette_ref(dims, u, size=1):
    dims = tuple(int(d) for d in dims)
    B, N, D, r, _, _ = u.shape
    uc = u[..., 0] + 1j * u[..., 1]
    uc = uc.reshape((B,) + dims + (D, r, r))
    uc = jnp.moveaxis(uc, 1 + D, 1)              # [B, D, *dims, r, r]

    def roll(x, mu, s):
        return jnp.roll(x, -s, axis=1 + mu)

    links = [uc[:, mu] for mu in range(D)]
    V = []
    for mu in range(D):
        v = links[mu]
        for s in range(1, size):
            v = jnp.einsum('...ij,...jk->...ik', v, roll(links[mu], mu, s))
        V.append(v)

    ws = []
    for mu in range(D):
        for nu in range(mu + 1, D):
            p = jnp.einsum('...ij,...jk->...ik', V[mu], roll(V[nu], mu, size))
            p = jnp.einsum('...ij,...kj->...ik', p,
                           jnp.conj(roll(V[mu], nu, size)))
            p = jnp.einsum('...ij,...kj->...ik', p, jnp.conj(V[nu]))
            ws.append(p.reshape(B, N, r, r))
    w = jnp.stack(ws, axis=2)                    # [B, N, npl, r, r]
    w = jnp.stack([jnp.real(w), jnp.imag(w)], axis=-1).astype(u.dtype)
    return jnp.concatenate([u, w], axis=2)


# ----------------------------------- main ---------------------------------------
if __name__ == "__main__":
    key = jax.random.PRNGKey(0)
    dims = [8, 128]               # N = 1024 sites -> each matrix entry is a
    B, D, r = 2, len(dims), 3     # dense (8, 128) tile; rep_dim = 3
    N = math.prod(dims)
    npl = D * (D - 1) // 2

    u = jax.random.normal(key, (B, N, D, r, r, 2), dtype=jnp.float32)

    # size = 1 (elementary plaquette)
    layer = Plaquette(dims, group=_GroupShim(rep_dim=r), size=1,
                      output_type='real')
    out = jax.block_until_ready(layer(u))
    assert out.shape == (B, N, D + npl, r, r, 2), out.shape
    ref = jax.block_until_ready(plaquette_ref(dims, u, size=1))
    np.testing.assert_allclose(np.asarray(out), np.asarray(ref),
                               rtol=1e-4, atol=5e-3)

    # size = 2 exercises the fused long-link path
    layer2 = Plaquette(dims, group=_GroupShim(rep_dim=r), size=2,
                       output_type='real')
    out2 = jax.block_until_ready(layer2(u))
    ref2 = jax.block_until_ready(plaquette_ref(dims, u, size=2))
    np.testing.assert_allclose(np.asarray(out2), np.asarray(ref2),
                               rtol=1e-3, atol=5e-2)

    print("KERNEL_OK")
</pallas_src>

<mosaic_0001>
module attributes {stable_mosaic.version = 11 : i64} {
  func.func @_k(%arg0: memref<8x128xf32, #tpu.memory_space<vmem>>, %arg1: memref<8x128xf32, #tpu.memory_space<vmem>>) attributes {dimension_semantics = [], scalar_prefetch = 0 : i64, scratch_operands = 0 : i64, tpu.core_type = #tpu.core_type<tc>} {
    %c0 = arith.constant 0 : index
    %c0_0 = arith.constant 0 : index
    %0 = vector.load %arg0[%c0, %c0_0] : memref<8x128xf32, #tpu.memory_space<vmem>>, vector<8x128xf32>
    %c3_i32 = arith.constant 3 : i32
    %1 = tpu.dynamic_rotate %0 by %c3_i32 dim 1 : vector<8x128xf32>, i32 -> vector<8x128xf32>
    %c0_1 = arith.constant 0 : index
    %c0_2 = arith.constant 0 : index
    %2 = vector.load %arg1[%c0_1, %c0_2] : memref<8x128xf32, #tpu.memory_space<vmem>>, vector<8x128xf32>
    tpu.vector_store %arg1[%c0_1, %c0_2], %1 {strides = array<i32>} : memref<8x128xf32, #tpu.memory_space<vmem>>, vector<8x128xf32>,
    return
  }
}

module attributes {stable_mosaic.version = 11 : i64} {
  func.func @kernel(%arg0: i32, %arg1: memref<1x1x2x3x3x8x128xf32, #tpu.memory_space<vmem>>, %arg2: memref<1x1x2x3x3x8x128xf32, #tpu.memory_space<vmem>>, %arg3: memref<1x2x3x3x8x128xf32, #tpu.memory_space<vmem>>) attributes {dimension_semantics = [#tpu.dimension_semantics<parallel>], iteration_bounds = array<i64: 2>, scalar_prefetch = 0 : i64, scratch_operands = 0 : i64, tpu.core_type = #tpu.core_type<tc>, window_params = [{transform_indices = @transform_0, window_bounds = array<i64: 1, 1, 2, 3, 3, 8, 128>}, {transform_indices = @transform_1, window_bounds = array<i64: 1, 1, 2, 3, 3, 8, 128>}, {transform_indices = @transform_2, window_bounds = array<i64: 1, 2, 3, 3, 8, 128>}]} {
    %c0 = arith.constant 0 : index
    %c0_0 = arith.constant 0 : index
    %c0_1 = arith.constant 0 : index
    %c0_2 = arith.constant 0 : index
    %c0_3 = arith.constant 0 : index
    %c0_4 = arith.constant 0 : index
    %c0_5 = arith.constant 0 : index
    %0 = vector.load %arg1[%c0, %c0_0, %c0_1, %c0_2, %c0_3, %c0_4, %c0_5] : memref<1x1x2x3x3x8x128xf32, #tpu.memory_space<vmem>>, vector<1x1x1x1x1x8x128xf32>
    %1 = vector.shape_cast %0 : vector<1x1x1x1x1x8x128xf32> to vector<8x128xf32>
    %c0_6 = arith.constant 0 : index
    %c0_7 = arith.constant 0 : index
    %c1 = arith.constant 1 : index
    %c0_8 = arith.constant 0 : index
    %c0_9 = arith.constant 0 : index
    %c0_10 = arith.constant 0 : index
    %c0_11 = arith.constant 0 : index
    %2 = vector.load %arg1[%c0_6, %c0_7, %c1, %c0_8, %c0_9, %c0_10, %c0_11] : memref<1x1x2x3x3x8x128xf32, #tpu.memory_space<vmem>>, vector<1x1x1x1x1x8x128xf32>
    %3 = vector.shape_cast %2 : vector<1x1x1x1x1x8x128xf32> to vector<8x128xf32>
    %4 = vector.extract_strided_slice %1 {offsets = [0, 1], sizes = [8, 127], strides = [1, 1]} : vector<8x128xf32> to vector<8x127xf32>
    %5 = vector.extract_strided_slice %1 {offsets = [0, 0], sizes = [8, 1], strides = [1, 1]} : vector<8x128xf32> to vector<8x1xf32>
    %6 = tpu.concatenate %4, %5 in 1 : vector<8x127xf32>, vector<8x1xf32> -> vector<8x128xf32>
    %7 = vector.extract_strided_slice %3 {offsets = [0, 1], sizes = [8, 127], strides = [1, 1]} : vector<8x128xf32> to vector<8x127xf32>
    %8 = vector.extract_strided_slice %3 {offsets = [0, 0], sizes = [8, 1], strides = [1, 1]} : vector<8x128xf32> to vector<8x1xf32>
    %9 = tpu.concatenate %7, %8 in 1 : vector<8x127xf32>, vector<8x1xf32> -> vector<8x128xf32>
    %c0_12 = arith.constant 0 : index
    %c0_13 = arith.constant 0 : index
    %c0_14 = arith.constant 0 : index
    %c0_15 = arith.constant 0 : index
    %c1_16 = arith.constant 1 : index
    %c0_17 = arith.constant 0 : index
    %c0_18 = arith.constant 0 : index
    %10 = vector.load %arg1[%c0_12, %c0_13, %c0_14, %c0_15, %c1_16, %c0_17, %c0_18] : memref<1x1x2x3x3x8x128xf32, #tpu.memory_space<vmem>>, vector<1x1x1x1x1x8x128xf32>
    %11 = vector.shape_cast %10 : vector<1x1x1x1x1x8x128xf32> to vector<8x128xf32>
    %c0_19 = arith.constant 0 : index
    %c0_20 = arith.constant 0 : index
    %c1_21 = arith.constant 1 : index
    %c0_22 = arith.constant 0 : index
    %c1_23 = arith.constant 1 : index
    %c0_24 = arith.constant 0 : index
    %c0_25 = arith.constant 0 : index
    %12 = vector.load %arg1[%c0_19, %c0_20, %c1_21, %c0_22, %c1_23, %c0_24, %c0_25] : memref<1x1x2x3x3x8x128xf32, #tpu.memory_space<vmem>>, vector<1x1x1x1x1x8x128xf32>
    %13 = vector.shape_cast %12 : vector<1x1x1x1x1x8x128xf32> to vector<8x128xf32>
    %14 = vector.extract_strided_slice %11 {offsets = [0, 1], sizes = [8, 127], strides = [1, 1]} : vector<8x128xf32> to vector<8x127xf32>
    %15 = vector.extract_strided_slice %11 {offsets = [0, 0], sizes = [8, 1], strides = [1, 1]} : vector<8x128xf32> to vector<8x1xf32>
    %16 = tpu.concatenate %14, %15 in 1 : vector<8x127xf32>, vector<8x1xf32> -> vector<8x128xf32>
    %17 = vector.extract_strided_slice %13 {offsets = [0, 1], sizes = [8, 127], strides = [1, 1]} : vector<8x128xf32> to vector<8x127xf32>
    %18 = vector.extract_strided_slice %13 {offsets = [0, 0], sizes = [8, 1], strides = [1, 1]} : vector<8x128xf32> to vector<8x1xf32>
    %19 = tpu.concatenate %17, %18 in 1 : vector<8x127xf32>, vector<8x1xf32> -> vector<8x128xf32>
    %c0_26 = arith.constant 0 : index
    %c0_27 = arith.constant 0 : index
    %c0_28 = arith.constant 0 : index
    %c0_29 = arith.constant 0 : index
    %c2 = arith.constant 2 : index
    %c0_30 = arith.constant 0 : index
    %c0_31 = arith.constant 0 : index
    %20 = vector.load %arg1[%c0_26, %c0_27, %c0_28, %c0_29, %c2, %c0_30, %c0_31] : memref<1x1x2x3x3x8x128xf32, #tpu.memory_space<vmem>>, vector<1x1x1x1x1x8x128xf32>
    %21 = vector.shape_cast %20 : vector<1x1x1x1x1x8x128xf32> to vector<8x128xf32>
    %c0_32 = arith.constant 0 : index
    %c0_33 = arith.constant 0 : index
    %c1_34 = arith.constant 1 : index
    %c0_35 = arith.constant 0 : index
    %c2_36 = arith.constant 2 : index
    %c0_37 = arith.constant 0 : index
    %c0_38 = arith.constant 0 : index
    %22 = vector.load %arg1[%c0_32, %c0_33, %c1_34, %c0_35, %c2_36, %c0_37, %c0_38] : memref<1x1x2x3x3x8x128xf32, #tpu.memory_space<vmem>>, vector<1x1x1x1x1x8x128xf32>
    %23 = vector.shape_cast %22 : vector<1x1x1x1x1x8x128xf32> to vector<8x128xf32>
    %24 = vector.extract_strided_slice %21 {offsets = [0, 1], sizes = [8, 127], strides = [1, 1]} : vector<8x128xf32> to vector<8x127xf32>
    %25 = vector.extract_strided_slice %21 {offsets = [0, 0], sizes = [8, 1], strides = [1, 1]} : vector<8x128xf32> to vector<8x1xf32>
    %26 = tpu.concatenate %24, %25 in 1 : vector<8x127xf32>, vector<8x1xf32> -> vector<8x128xf32>
    %27 = vector.extract_strided_slice %23 {offsets = [0, 1], sizes = [8, 127], strides = [1, 1]} : vector<8x128xf32> to vector<8x127xf32>
    %28 = vector.extract_strided_slice %23 {offsets = [0, 0], sizes = [8, 1], strides = [1, 1]} : vector<8x128xf32> to vector<8x1xf32>
    %29 = tpu.concatenate %27, %28 in 1 : vector<8x127xf32>, vector<8x1xf32> -> vector<8x128xf32>
    %c0_39 = arith.constant 0 : index
    %c0_40 = arith.constant 0 : index
    %c0_41 = arith.constant 0 : index
    %c1_42 = arith.constant 1 : index
    %c0_43 = arith.constant 0 : index
    %c0_44 = arith.constant 0 : index
    %c0_45 = arith.constant 0 : index
    %30 = vector.load %arg1[%c0_39, %c0_40, %c0_41, %c1_42, %c0_43, %c0_44, %c0_45] : memref<1x1x2x3x3x8x128xf32, #tpu.memory_space<vmem>>, vector<1x1x1x1x1x8x128xf32>
    %31 = vector.shape_cast %30 : vector<1x1x1x1x1x8x128xf32> to vector<8x128xf32>
    %c0_46 = arith.constant 0 : index
    %c0_47 = arith.constant 0 : index
    %c1_48 = arith.constant 1 : index
    %c1_49 = arith.constant 1 : index
    %c0_50 = arith.constant 0 : index
    %c0_51 = arith.constant 0 : index
    %c0_52 = arith.constant 0 : index
    %32 = vector.load %arg1[%c0_46, %c0_47, %c1_48, %c1_49, %c0_50, %c0_51, %c0_52] : memref<1x1x2x3x3x8x128xf32, #tpu.memory_space<vmem>>, vector<1x1x1x1x1x8x128xf32>
    %33 = vector.shape_cast %32 : vector<1x1x1x1x1x8x128xf32> to vector<8x128xf32>
    %34 = vector.extract_strided_slice %31 {offsets = [0, 1], sizes = [8, 127], strides = [1, 1]} : vector<8x128xf32> to vector<8x127xf32>
    %35 = vector.extract_strided_slice %31 {offsets = [0, 0], sizes = [8, 1], strides = [1, 1]} : vector<8x128xf32> to vector<8x1xf32>
    %36 = tpu.concatenate %34, %35 in 1 : vector<8x127xf32>, vector<8x1xf32> -> vector<8x128xf32>
    %37 = vector.extract_strided_slice %33 {offsets = [0, 1], sizes = [8, 127], strides = [1, 1]} : vector<8x128xf32> to vector<8x127xf32>
    %38 = vector.extract_strided_slice %33 {offsets = [0, 0], sizes = [8, 1], strides = [1, 1]} : vector<8x128xf32> to vector<8x1xf32>
    %39 = tpu.concatenate %37, %38 in 1 : vector<8x127xf32>, vector<8x1xf32> -> vector<8x128xf32>
    %c0_53 = arith.constant 0 : index
    %c0_54 = arith.constant 0 : index
    %c0_55 = arith.constant 0 : index
    %c1_56 = arith.constant 1 : index
    %c1_57 = arith.constant 1 : index
    %c0_58 = arith.constant 0 : index
    %c0_59 = arith.constant 0 : index
    %40 = vector.load %arg1[%c0_53, %c0_54, %c0_55, %c1_56, %c1_57, %c0_58, %c0_59] : memref<1x1x2x3x3x8x128xf32, #tpu.memory_space<vmem>>, vector<1x1x1x1x1x8x128xf32>
    %41 = vector.shape_cast %40 : vector<1x1x1x1x1x8x128xf32> to vector<8x128xf32>
    %c0_60 = arith.constant 0 : index
    %c0_61 = arith.constant 0 : index
    %c1_62 = arith.constant 1 : index
    %c1_63 = arith.constant 1 : index
    %c1_64 = arith.constant 1 : index
    %c0_65 = arith.constant 0 : index
    %c0_66 = arith.constant 0 : index
    %42 = vector.load %arg1[%c0_60, %c0_61, %c1_62, %c1_63, %c1_64, %c0_65, %c0_66] : memref<1x1x2x3x3x8x128xf32, #tpu.memory_space<vmem>>, vector<1x1x1x1x1x8x128xf32>
    %43 = vector.shape_cast %42 : vector<1x1x1x1x1x8x128xf32> to vector<8x128xf32>
    %44 = vector.extract_strided_slice %41 {offsets = [0, 1], sizes = [8, 127], strides = [1, 1]} : vector<8x128xf32> to vector<8x127xf32>
    %45 = vector.extract_strided_slice %41 {offsets = [0, 0], sizes = [8, 1], strides = [1, 1]} : vector<8x128xf32> to vector<8x1xf32>
    %46 = tpu.concatenate %44, %45 in 1 : vector<8x127xf32>, vector<8x1xf32> -> vector<8x128xf32>
    %47 = vector.extract_strided_slice %43 {offsets = [0, 1], sizes = [8, 127], strides = [1, 1]} : vector<8x128xf32> to vector<8x127xf32>
    %48 = vector.extract_strided_slice %43 {offsets = [0, 0], sizes = [8, 1], strides = [1, 1]} : vector<8x128xf32> to vector<8x1xf32>
    %49 = tpu.concatenate %47, %48 in 1 : vector<8x127xf32>, vector<8x1xf32> -> vector<8x128xf32>
    %c0_67 = arith.constant 0 : index
    %c0_68 = arith.constant 0 : index
    %c0_69 = arith.constant 0 : index
    %c1_70 = arith.constant 1 : index
    %c2_71 = arith.constant 2 : index
    %c0_72 = arith.constant 0 : index
    %c0_73 = arith.constant 0 : index
    %50 = vector.load %arg1[%c0_67, %c0_68, %c0_69, %c1_70, %c2_71, %c0_72, %c0_73] : memref<1x1x2x3x3x8x128xf32, #tpu.memory_space<vmem>>, vector<1x1x1x1x1x8x128xf32>
    %51 = vector.shape_cast %50 : vector<1x1x1x1x1x8x128xf32> to vector<8x128xf32>
    %c0_74 = arith.constant 0 : index
    %c0_75 = arith.constant 0 : index
    %c1_76 = arith.constant 1 : index
    %c1_77 = arith.constant 1 : index
    %c2_78 = arith.constant 2 : index
    %c0_79 = arith.constant 0 : index
    %c0_80 = arith.constant 0 : index
    %52 = vector.load %arg1[%c0_74, %c0_75, %c1_76, %c1_77, %c2_78, %c0_79, %c0_80] : memref<1x1x2x3x3x8x128xf32, #tpu.memory_space<vmem>>, vector<1x1x1x1x1x8x128xf32>
    %53 = vector.shape_cast %52 : vector<1x1x1x1x1x8x128xf32> to vector<8x128xf32>
    %54 = vector.extract_strided_slice %51 {offsets = [0, 1], sizes = [8, 127], strides = [1, 1]} : vector<8x128xf32> to vector<8x127xf32>
    %55 = vector.extract_strided_slice %51 {offsets = [0, 0], sizes = [8, 1], strides = [1, 1]} : vector<8x128xf32> to vector<8x1xf32>
    %56 = tpu.concatenate %54, %55 in 1 : vector<8x127xf32>, vector<8x1xf32> -> vector<8x128xf32>
    %57 = vector.extract_strided_slice %53 {offsets = [0, 1], sizes = [8, 127], strides = [1, 1]} : vector<8x128xf32> to vector<8x127xf32>
    %58 = vector.extract_strided_slice %53 {offsets = [0, 0], sizes = [8, 1], strides = [1, 1]} : vector<8x128xf32> to vector<8x1xf32>
    %59 = tpu.concatenate %57, %58 in 1 : vector<8x127xf32>, vector<8x1xf32> -> vector<8x128xf32>
    %c0_81 = arith.constant 0 : index
    %c0_82 = arith.constant 0 : index
    %c0_83 = arith.constant 0 : index
    %c2_84 = arith.constant 2 : index
    %c0_85 = arith.constant 0 : index
    %c0_86 = arith.constant 0 : index
    %c0_87 = arith.constant 0 : index
    %60 = vector.load %arg1[%c0_81, %c0_82, %c0_83, %c2_84, %c0_85, %c0_86, %c0_87] : memref<1x1x2x3x3x8x128xf32, #tpu.memory_space<vmem>>, vector<1x1x1x1x1x8x128xf32>
    %61 = vector.shape_cast %60 : vector<1x1x1x1x1x8x128xf32> to vector<8x128xf32>
    %c0_88 = arith.constant 0 : index
    %c0_89 = arith.constant 0 : index
    %c1_90 = arith.constant 1 : index
    %c2_91 = arith.constant 2 : index
    %c0_92 = arith.constant 0 : index
    %c0_93 = arith.constant 0 : index
    %c0_94 = arith.constant 0 : index
    %62 = vector.load %arg1[%c0_88, %c0_89, %c1_90, %c2_91, %c0_92, %c0_93, %c0_94] : memref<1x1x2x3x3x8x128xf32, #tpu.memory_space<vmem>>, vector<1x1x1x1x1x8x128xf32>
    %63 = vector.shape_cast %62 : vector<1x1x1x1x1x8x128xf32> to vector<8x128xf32>
    %64 = vector.extract_strided_slice %61 {offsets = [0, 1], sizes = [8, 127], strides = [1, 1]} : vector<8x128xf32> to vector<8x127xf32>
    %65 = vector.extract_strided_slice %61 {offsets = [0, 0], sizes = [8, 1], strides = [1, 1]} : vector<8x128xf32> to vector<8x1xf32>
    %66 = tpu.concatenate %64, %65 in 1 : vector<8x127xf32>, vector<8x1xf32> -> vector<8x128xf32>
    %67 = vector.extract_strided_slice %63 {offsets = [0, 1], sizes = [8, 127], strides = [1, 1]} : vector<8x128xf32> to vector<8x127xf32>
    %68 = vector.extract_strided_slice %63 {offsets = [0, 0], sizes = [8, 1], strides = [1, 1]} : vector<8x128xf32> to vector<8x1xf32>
    %69 = tpu.concatenate %67, %68 in 1 : vector<8x127xf32>, vector<8x1xf32> -> vector<8x128xf32>
    %c0_95 = arith.constant 0 : index
    %c0_96 = arith.constant 0 : index
    %c0_97 = arith.constant 0 : index
    %c2_98 = arith.constant 2 : index
    %c1_99 = arith.constant 1 : index
    %c0_100 = arith.constant 0 : index
    %c0_101 = arith.constant 0 : index
    %70 = vector.load %arg1[%c0_95, %c0_96, %c0_97, %c2_98, %c1_99, %c0_100, %c0_101] : memref<1x1x2x3x3x8x128xf32, #tpu.memory_space<vmem>>, vector<1x1x1x1x1x8x128xf32>
    %71 = vector.shape_cast %70 : vector<1x1x1x1x1x8x128xf32> to vector<8x128xf32>
    %c0_102 = arith.constant 0 : index
    %c0_103 = arith.constant 0 : index
    %c1_104 = arith.constant 1 : index
    %c2_105 = arith.constant 2 : index
    %c1_106 = arith.constant 1 : index
    %c0_107 = arith.constant 0 : index
    %c0_108 = arith.constant 0 : index
    %72 = vector.load %arg1[%c0_102, %c0_103, %c1_104, %c2_105, %c1_106, %c0_107, %c0_108] : memref<1x1x2x3x3x8x128xf32, #tpu.memory_space<vmem>>, vector<1x1x1x1x1x8x128xf32>
    %73 = vector.shape_cast %72 : vector<1x1x1x1x1x8x128xf32> to vector<8x128xf32>
    %74 = vector.extract_strided_slice %71 {offsets = [0, 1], sizes = [8, 127], strides = [1, 1]} : vector<8x128xf32> to vector<8x127xf32>
    %75 = vector.extract_strided_slice %71 {offsets = [0, 0], sizes = [8, 1], strides = [1, 1]} : vector<8x128xf32> to vector<8x1xf32>
    %76 = tpu.concatenate %74, %75 in 1 : vector<8x127xf32>, vector<8x1xf32> -> vector<8x128xf32>
    %77 = vector.extract_strided_slice %73 {offsets = [0, 1], sizes = [8, 127], strides = [1, 1]} : vector<8x128xf32> to vector<8x127xf32>
    %78 = vector.extract_strided_slice %73 {offsets = [0, 0], sizes = [8, 1], strides = [1, 1]} : vector<8x128xf32> to vector<8x1xf32>
    %79 = tpu.concatenate %77, %78 in 1 : vector<8x127xf32>, vector<8x1xf32> -> vector<8x128xf32>
    %c0_109 = arith.constant 0 : index
    %c0_110 = arith.constant 0 : index
    %c0_111 = arith.constant 0 : index
    %c2_112 = arith.constant 2 : index
    %c2_113 = arith.constant 2 : index
    %c0_114 = arith.constant 0 : index
    %c0_115 = arith.constant 0 : index
    %80 = vector.load %arg1[%c0_109, %c0_110, %c0_111, %c2_112, %c2_113, %c0_114, %c0_115] : memref<1x1x2x3x3x8x128xf32, #tpu.memory_space<vmem>>, vector<1x1x1x1x1x8x128xf32>
    %81 = vector.shape_cast %80 : vector<1x1x1x1x1x8x128xf32> to vector<8x128xf32>
    %c0_116 = arith.constant 0 : index
    %c0_117 = arith.constant 0 : index
    %c1_118 = arith.constant 1 : index
    %c2_119 = arith.constant 2 : index
    %c2_120 = arith.constant 2 : index
    %c0_121 = arith.constant 0 : index
    %c0_122 = arith.constant 0 : index
    %82 = vector.load %arg1[%c0_116, %c0_117, %c1_118, %c2_119, %c2_120, %c0_121, %c0_122] : memref<1x1x2x3x3x8x128xf32, #tpu.memory_space<vmem>>, vector<1x1x1x1x1x8x128xf32>
    %83 = vector.shape_cast %82 : vector<1x1x1x1x1x8x128xf32> to vector<8x128xf32>
    %84 = vector.extract_strided_slice %81 {offsets = [0, 1], sizes = [8, 127], strides = [1, 1]} : vector<8x128xf32> to vector<8x127xf32>
    %85 = vector.extract_strided_slice %81 {offsets = [0, 0], sizes = [8, 1], strides = [1, 1]} : vector<8x128xf32> to vector<8x1xf32>
    %86 = tpu.concatenate %84, %85 in 1 : vector<8x127xf32>, vector<8x1xf32> -> vector<8x128xf32>
    %87 = vector.extract_strided_slice %83 {offsets = [0, 1], sizes = [8, 127], strides = [1, 1]} : vector<8x128xf32> to vector<8x127xf32>
    %88 = vector.extract_strided_slice %83 {offsets = [0, 0], sizes = [8, 1], strides = [1, 1]} : vector<8x128xf32> to vector<8x1xf32>
    %89 = tpu.concatenate %87, %88 in 1 : vector<8x127xf32>, vector<8x1xf32> -> vector<8x128xf32>
    %c0_123 = arith.constant 0 : index
    %c0_124 = arith.constant 0 : index
    %c0_125 = arith.constant 0 : index
    %c0_126 = arith.constant 0 : index
    %c0_127 = arith.constant 0 : index
    %c0_128 = arith.constant 0 : index
    %c0_129 = arith.constant 0 : index
    %90 = vector.load %arg2[%c0_123, %c0_124, %c0_125, %c0_126, %c0_127, %c0_128, %c0_129] : memref<1x1x2x3x3x8x128xf32, #tpu.memory_space<vmem>>, vector<1x1x1x1x1x8x128xf32>
    %91 = vector.shape_cast %90 : vector<1x1x1x1x1x8x128xf32> to vector<8x128xf32>
    %c0_130 = arith.constant 0 : index
    %c0_131 = arith.constant 0 : index
    %c1_132 = arith.constant 1 : index
    %c0_133 = arith.constant 0 : index
    %c0_134 = arith.constant 0 : index
    %c0_135 = arith.constant 0 : index
    %c0_136 = arith.constant 0 : index
    %92 = vector.load %arg2[%c0_130, %c0_131, %c1_132, %c0_133, %c0_134, %c0_135, %c0_136] : memref<1x1x2x3x3x8x128xf32, #tpu.memory_space<vmem>>, vector<1x1x1x1x1x8x128xf32>
    %93 = vector.shape_cast %92 : vector<1x1x1x1x1x8x128xf32> to vector<8x128xf32>
    %94 = arith.mulf %91, %6 : vector<8x128xf32>
    %95 = arith.mulf %93, %9 : vector<8x128xf32>
    %96 = arith.subf %94, %95 : vector<8x128xf32>
    %97 = arith.mulf %91, %9 : vector<8x128xf32>
    %98 = arith.mulf %93, %6 : vector<8x128xf32>
    %99 = arith.addf %97, %98 : vector<8x128xf32>
    %c0_137 = arith.constant 0 : index
    %c0_138 = arith.constant 0 : index
    %c0_139 = arith.constant 0 : index
    %c0_140 = arith.constant 0 : index
    %c1_141 = arith.constant 1 : index
    %c0_142 = arith.constant 0 : index
    %c0_143 = arith.constant 0 : index
    %100 = vector.load %arg2[%c0_137, %c0_138, %c0_139, %c0_140, %c1_141, %c0_142, %c0_143] : memref<1x1x2x3x3x8x128xf32, #tpu.memory_space<vmem>>, vector<1x1x1x1x1x8x128xf32>
    %101 = vector.shape_cast %100 : vector<1x1x1x1x1x8x128xf32> to vector<8x128xf32>
    %c0_144 = arith.constant 0 : index
    %c0_145 = arith.constant 0 : index
    %c1_146 = arith.constant 1 : index
    %c0_147 = arith.constant 0 : index
    %c1_148 = arith.constant 1 : index
    %c0_149 = arith.constant 0 : index
    %c0_150 = arith.constant 0 : index
    %102 = vector.load %arg2[%c0_144, %c0_145, %c1_146, %c0_147, %c1_148, %c0_149, %c0_150] : memref<1x1x2x3x3x8x128xf32, #tpu.memory_space<vmem>>, vector<1x1x1x1x1x8x128xf32>
    %103 = vector.shape_cast %102 : vector<1x1x1x1x1x8x128xf32> to vector<8x128xf32>
    %104 = arith.mulf %101, %36 : vector<8x128xf32>
    %105 = arith.mulf %103, %39 : vector<8x128xf32>
    %106 = arith.subf %104, %105 : vector<8x128xf32>
    %107 = arith.mulf %101, %39 : vector<8x128xf32>
    %108 = arith.mulf %103, %36 : vector<8x128xf32>
    %109 = arith.addf %107, %108 : vector<8x128xf32>
    %110 = arith.addf %96, %106 : vector<8x128xf32>
    %111 = arith.addf %99, %109 : vector<8x128xf32>
    %c0_151 = arith.constant 0 : index
    %c0_152 = arith.constant 0 : index
    %c0_153 = arith.constant 0 : index
    %c0_154 = arith.constant 0 : index
    %c2_155 = arith.constant 2 : index
    %c0_156 = arith.constant 0 : index
    %c0_157 = arith.constant 0 : index
    %112 = vector.load %arg2[%c0_151, %c0_152, %c0_153, %c0_154, %c2_155, %c0_156, %c0_157] : memref<1x1x2x3x3x8x128xf32, #tpu.memory_space<vmem>>, vector<1x1x1x1x1x8x128xf32>
    %113 = vector.shape_cast %112 : vector<1x1x1x1x1x8x128xf32> to vector<8x128xf32>
    %c0_158 = arith.constant 0 : index
    %c0_159 = arith.constant 0 : index
    %c1_160 = arith.constant 1 : index
    %c0_161 = arith.constant 0 : index
    %c2_162 = arith.constant 2 : index
    %c0_163 = arith.constant 0 : index
    %c0_164 = arith.constant 0 : index
    %114 = vector.load %arg2[%c0_158, %c0_159, %c1_160, %c0_161, %c2_162, %c0_163, %c0_164] : memref<1x1x2x3x3x8x128xf32, #tpu.memory_space<vmem>>, vector<1x1x1x1x1x8x128xf32>
    %115 = vector.shape_cast %114 : vector<1x1x1x1x1x8x128xf32> to vector<8x128xf32>
    %116 = arith.mulf %113, %66 : vector<8x128xf32>
    %117 = arith.mulf %115, %69 : vector<8x128xf32>
    %118 = arith.subf %116, %117 : vector<8x128xf32>
    %119 = arith.mulf %113, %69 : vector<8x128xf32>
    %120 = arith.mulf %115, %66 : vector<8x128xf32>
    %121 = arith.addf %119, %120 : vector<8x128xf32>
    %122 = arith.addf %110, %118 : vector<8x128xf32>
    %123 = arith.addf %111, %121 : vector<8x128xf32>
    %c0_165 = arith.constant 0 : index
    %c0_166 = arith.constant 0 : index
    %c0_167 = arith.constant 0 : index
    %c0_168 = arith.constant 0 : index
    %c0_169 = arith.constant 0 : index
    %c0_170 = arith.constant 0 : index
    %c0_171 = arith.constant 0 : index
    %124 = vector.load %arg2[%c0_165, %c0_166, %c0_167, %c0_168, %c0_169, %c0_170, %c0_171] : memref<1x1x2x3x3x8x128xf32, #tpu.memory_space<vmem>>, vector<1x1x1x1x1x8x128xf32>
    %125 = vector.shape_cast %124 : vector<1x1x1x1x1x8x128xf32> to vector<8x128xf32>
    %c0_172 = arith.constant 0 : index
    %c0_173 = arith.constant 0 : index
    %c1_174 = arith.constant 1 : index
    %c0_175 = arith.constant 0 : index
    %c0_176 = arith.constant 0 : index
    %c0_177 = arith.constant 0 : index
    %c0_178 = arith.constant 0 : index
    %126 = vector.load %arg2[%c0_172, %c0_173, %c1_174, %c0_175, %c0_176, %c0_177, %c0_178] : memref<1x1x2x3x3x8x128xf32, #tpu.memory_space<vmem>>, vector<1x1x1x1x1x8x128xf32>
    %127 = vector.shape_cast %126 : vector<1x1x1x1x1x8x128xf32> to vector<8x128xf32>
    %128 = arith.mulf %125, %16 : vector<8x128xf32>
    %129 = arith.mulf %127, %19 : vector<8x128xf32>
    %130 = arith.subf %128, %129 : vector<8x128xf32>
    %131 = arith.mulf %125, %19 : vector<8x128xf32>
    %132 = arith.mulf %127, %16 : vector<8x128xf32>
    %133 = arith.addf %131, %132 : vector<8x128xf32>
    %c0_179 = arith.constant 0 : index
    %c0_180 = arith.constant 0 : index
    %c0_181 = arith.constant 0 : index
    %c0_182 = arith.constant 0 : index
    %c1_183 = arith.constant 1 : index
    %c0_184 = arith.constant 0 : index
    %c0_185 = arith.constant 0 : index
    %134 = vector.load %arg2[%c0_179, %c0_180, %c0_181, %c0_182, %c1_183, %c0_184, %c0_185] : memref<1x1x2x3x3x8x128xf32, #tpu.memory_space<vmem>>, vector<1x1x1x1x1x8x128xf32>
    %135 = vector.shape_cast %134 : vector<1x1x1x1x1x8x128xf32> to vector<8x128xf32>
    %c0_186 = arith.constant 0 : index
    %c0_187 = arith.constant 0 : index
    %c1_188 = arith.constant 1 : index
    %c0_189 = arith.constant 0 : index
    %c1_190 = arith.constant 1 : index
    %c0_191 = arith.constant 0 : index
    %c0_192 = arith.constant 0 : index
    %136 = vector.load %arg2[%c0_186, %c0_187, %c1_188, %c0_189, %c1_190, %c0_191, %c0_192] : memref<1x1x2x3x3x8x128xf32, #tpu.memory_space<vmem>>, vector<1x1x1x1x1x8x128xf32>
    %137 = vector.shape_cast %136 : vector<1x1x1x1x1x8x128xf32> to vector<8x128xf32>
    %138 = arith.mulf %135, %46 : vector<8x128xf32>
    %139 = arith.mulf %137, %49 : vector<8x128xf32>
    %140 = arith.subf %138, %139 : vector<8x128xf32>
    %141 = arith.mulf %135, %49 : vector<8x128xf32>
    %142 = arith.mulf %137, %46 : vector<8x128xf32>
    %143 = arith.addf %141, %142 : vector<8x128xf32>
    %144 = arith.addf %130, %140 : vector<8x128xf32>
    %145 = arith.addf %133, %143 : vector<8x128xf32>
    %c0_193 = arith.constant 0 : index
    %c0_194 = arith.constant 0 : index
    %c0_195 = arith.constant 0 : index
    %c0_196 = arith.constant 0 : index
    %c2_197 = arith.constant 2 : index
    %c0_198 = arith.constant 0 : index
    %c0_199 = arith.constant 0 : index
    %146 = vector.load %arg2[%c0_193, %c0_194, %c0_195, %c0_196, %c2_197, %c0_198, %c0_199] : memref<1x1x2x3x3x8x128xf32, #tpu.memory_space<vmem>>, vector<1x1x1x1x1x8x128xf32>
    %147 = vector.shape_cast %146 : vector<1x1x1x1x1x8x128xf32> to vector<8x128xf32>
    %c0_200 = arith.constant 0 : index
    %c0_201 = arith.constant 0 : index
    %c1_202 = arith.constant 1 : index
    %c0_203 = arith.constant 0 : index
    %c2_204 = arith.constant 2 : index
    %c0_205 = arith.constant 0 : index
    %c0_206 = arith.constant 0 : index
    %148 = vector.load %arg2[%c0_200, %c0_201, %c1_202, %c0_203, %c2_204, %c0_205, %c0_206] : memref<1x1x2x3x3x8x128xf32, #tpu.memory_space<vmem>>, vector<1x1x1x1x1x8x128xf32>
    %149 = vector.shape_cast %148 : vector<1x1x1x1x1x8x128xf32> to vector<8x128xf32>
    %150 = arith.mulf %147, %76 : vector<8x128xf32>
    %151 = arith.mulf %149, %79 : vector<8x128xf32>
    %152 = arith.subf %150, %151 : vector<8x128xf32>
    %153 = arith.mulf %147, %79 : vector<8x128xf32>
    %154 = arith.mulf %149, %76 : vector<8x128xf32>
    %155 = arith.addf %153, %154 : vector<8x128xf32>
    %156 = arith.addf %144, %152 : vector<8x128xf32>
    %157 = arith.addf %145, %155 : vector<8x128xf32>
    %c0_207 = arith.constant 0 : index
    %c0_208 = arith.constant 0 : index
    %c0_209 = arith.constant 0 : index
    %c0_210 = arith.constant 0 : index
    %c0_211 = arith.constant 0 : index
    %c0_212 = arith.constant 0 : index
    %c0_213 = arith.constant 0 : index
    %158 = vector.load %arg2[%c0_207, %c0_208, %c0_209, %c0_210, %c0_211, %c0_212, %c0_213] : memref<1x1x2x3x3x8x128xf32, #tpu.memory_space<vmem>>, vector<1x1x1x1x1x8x128xf32>
    %159 = vector.shape_cast %158 : vector<1x1x1x1x1x8x128xf32> to vector<8x128xf32>
    %c0_214 = arith.constant 0 : index
    %c0_215 = arith.constant 0 : index
    %c1_216 = arith.constant 1 : index
    %c0_217 = arith.constant 0 : index
    %c0_218 = arith.constant 0 : index
    %c0_219 = arith.constant 0 : index
    %c0_220 = arith.constant 0 : index
    %160 = vector.load %arg2[%c0_214, %c0_215, %c1_216, %c0_217, %c0_218, %c0_219, %c0_220] : memref<1x1x2x3x3x8x128xf32, #tpu.memory_space<vmem>>, vector<1x1x1x1x1x8x128xf32>
    %161 = vector.shape_cast %160 : vector<1x1x1x1x1x8x128xf32> to vector<8x128xf32>
    %162 = arith.mulf %159, %26 : vector<8x128xf32>
    %163 = arith.mulf %161, %29 : vector<8x128xf32>
    %164 = arith.subf %162, %163 : vector<8x128xf32>
    %165 = arith.mulf %159, %29 : vector<8x128xf32>
    %166 = arith.mulf %161, %26 : vector<8x128xf32>
    %167 = arith.addf %165, %166 : vector<8x128xf32>
    %c0_221 = arith.constant 0 : index
    %c0_222 = arith.constant 0 : index
    %c0_223 = arith.constant 0 : index
    %c0_224 = arith.constant 0 : index
    %c1_225 = arith.constant 1 : index
    %c0_226 = arith.constant 0 : index
    %c0_227 = arith.constant 0 : index
    %168 = vector.load %arg2[%c0_221, %c0_222, %c0_223, %c0_224, %c1_225, %c0_226, %c0_227] : memref<1x1x2x3x3x8x128xf32, #tpu.memory_space<vmem>>, vector<1x1x1x1x1x8x128xf32>
    %169 = vector.shape_cast %168 : vector<1x1x1x1x1x8x128xf32> to vector<8x128xf32>
    %c0_228 = arith.constant 0 : index
    %c0_229 = arith.constant 0 : index
    %c1_230 = arith.constant 1 : index
    %c0_231 = arith.constant 0 : index
    %c1_232 = arith.constant 1 : index
    %c0_233 = arith.constant 0 : index
    %c0_234 = arith.constant 0 : index
    %170 = vector.load %arg2[%c0_228, %c0_229, %c1_230, %c0_231, %c1_232, %c0_233, %c0_234] : memref<1x1x2x3x3x8x128xf32, #tpu.memory_space<vmem>>, vector<1x1x1x1x1x8x128xf32>
    %171 = vector.shape_cast %170 : vector<1x1x1x1x1x8x128xf32> to vector<8x128xf32>
    %172 = arith.mulf %169, %56 : vector<8x128xf32>
    %173 = arith.mulf %171, %59 : vector<8x128xf32>
    %174 = arith.subf %172, %173 : vector<8x128xf32>
    %175 = arith.mulf %169, %59 : vector<8x128xf32>
    %176 = arith.mulf %171, %56 : vector<8x128xf32>
    %177 = arith.addf %175, %176 : vector<8x128xf32>
    %178 = arith.addf %164, %174 : vector<8x128xf32>
    %179 = arith.addf %167, %177 : vector<8x128xf32>
    %c0_235 = arith.constant 0 : index
    %c0_236 = arith.constant 0 : index
    %c0_237 = arith.constant 0 : index
    %c0_238 = arith.constant 0 : index
    %c2_239 = arith.constant 2 : index
    %c0_240 = arith.constant 0 : index
    %c0_241 = arith.constant 0 : index
    %180 = vector.load %arg2[%c0_235, %c0_236, %c0_237, %c0_238, %c2_239, %c0_240, %c0_241] : memref<1x1x2x3x3x8x128xf32, #tpu.memory_space<vmem>>, vector<1x1x1x1x1x8x128xf32>
    %181 = vector.shape_cast %180 : vector<1x1x1x1x1x8x128xf32> to vector<8x128xf32>
    %c0_242 = arith.constant 0 : index
    %c0_243 = arith.constant 0 : index
    %c1_244 = arith.constant 1 : index
    %c0_245 = arith.constant 0 : index
    %c2_246 = arith.constant 2 : index
    %c0_247 = arith.constant 0 : index
    %c0_248 = arith.constant 0 : index
    %182 = vector.load %arg2[%c0_242, %c0_243, %c1_244, %c0_245, %c2_246, %c0_247, %c0_248] : memref<1x1x2x3x3x8x128xf32, #tpu.memory_space<vmem>>, vector<1x1x1x1x1x8x128xf32>
    %183 = vector.shape_cast %182 : vector<1x1x1x1x1x8x128xf32> to vector<8x128xf32>
    %184 = arith.mulf %181, %86 : vector<8x128xf32>
    %185 = arith.mulf %183, %89 : vector<8x128xf32>
    %186 = arith.subf %184, %185 : vector<8x128xf32>
    %187 = arith.mulf %181, %89 : vector<8x128xf32>
    %188 = arith.mulf %183, %86 : vector<8x128xf32>
    %189 = arith.addf %187, %188 : vector<8x128xf32>
    %190 = arith.addf %178, %186 : vector<8x128xf32>
    %191 = arith.addf %179, %189 : vector<8x128xf32>
    %c0_249 = arith.constant 0 : index
    %c0_250 = arith.constant 0 : index
    %c0_251 = arith.constant 0 : index
    %c1_252 = arith.constant 1 : index
    %c0_253 = arith.constant 0 : index
    %c0_254 = arith.constant 0 : index
    %c0_255 = arith.constant 0 : index
    %192 = vector.load %arg2[%c0_249, %c0_250, %c0_251, %c1_252, %c0_253, %c0_254, %c0_255] : memref<1x1x2x3x3x8x128xf32, #tpu.memory_space<vmem>>, vector<1x1x1x1x1x8x128xf32>
    %193 = vector.shape_cast %192 : vector<1x1x1x1x1x8x128xf32> to vector<8x128xf32>
    %c0_256 = arith.constant 0 : index
    %c0_257 = arith.constant 0 : index
    %c1_258 = arith.constant 1 : index
    %c1_259 = arith.constant 1 : index
    %c0_260 = arith.constant 0 : index
    %c0_261 = arith.constant 0 : index
    %c0_262 = arith.constant 0 : index
    %194 = vector.load %arg2[%c0_256, %c0_257, %c1_258, %c1_259, %c0_260, %c0_261, %c0_262] : memref<1x1x2x3x3x8x128xf32, #tpu.memory_space<vmem>>, vector<1x1x1x1x1x8x128xf32>
    %195 = vector.shape_cast %194 : vector<1x1x1x1x1x8x128xf32> to vector<8x128xf32>
    %196 = arith.mulf %193, %6 : vector<8x128xf32>
    %197 = arith.mulf %195, %9 : vector<8x128xf32>
    %198 = arith.subf %196, %197 : vector<8x128xf32>
    %199 = arith.mulf %193, %9 : vector<8x128xf32>
    %200 = arith.mulf %195, %6 : vector<8x128xf32>
    %201 = arith.addf %199, %200 : vector<8x128xf32>
    %c0_263 = arith.constant 0 : index
    %c0_264 = arith.constant 0 : index
    %c0_265 = arith.constant 0 : index
    %c1_266 = arith.constant 1 : index
    %c1_267 = arith.constant 1 : index
    %c0_268 = arith.constant 0 : index
    %c0_269 = arith.constant 0 : index
    %202 = vector.load %arg2[%c0_263, %c0_264, %c0_265, %c1_266, %c1_267, %c0_268, %c0_269] : memref<1x1x2x3x3x8x128xf32, #tpu.memory_space<vmem>>, vector<1x1x1x1x1x8x128xf32>
    %203 = vector.shape_cast %202 : vector<1x1x1x1x1x8x128xf32> to vector<8x128xf32>
    %c0_270 = arith.constant 0 : index
    %c0_271 = arith.constant 0 : index
    %c1_272 = arith.constant 1 : index
    %c1_273 = arith.constant 1 : index
    %c1_274 = arith.constant 1 : index
    %c0_275 = arith.constant 0 : index
    %c0_276 = arith.constant 0 : index
    %204 = vector.load %arg2[%c0_270, %c0_271, %c1_272, %c1_273, %c1_274, %c0_275, %c0_276] : memref<1x1x2x3x3x8x128xf32, #tpu.memory_space<vmem>>, vector<1x1x1x1x1x8x128xf32>
    %205 = vector.shape_cast %204 : vector<1x1x1x1x1x8x128xf32> to vector<8x128xf32>
    %206 = arith.mulf %203, %36 : vector<8x128xf32>
    %207 = arith.mulf %205, %39 : vector<8x128xf32>
    %208 = arith.subf %206, %207 : vector<8x128xf32>
    %209 = arith.mulf %203, %39 : vector<8x128xf32>
    %210 = arith.mulf %205, %36 : vector<8x128xf32>
    %211 = arith.addf %209, %210 : vector<8x128xf32>
    %212 = arith.addf %198, %208 : vector<8x128xf32>
    %213 = arith.addf %201, %211 : vector<8x128xf32>
    %c0_277 = arith.constant 0 : index
    %c0_278 = arith.constant 0 : index
    %c0_279 = arith.constant 0 : index
    %c1_280 = arith.constant 1 : index
    %c2_281 = arith.constant 2 : index
    %c0_282 = arith.constant 0 : index
    %c0_283 = arith.constant 0 : index
    %214 = vector.load %arg2[%c0_277, %c0_278, %c0_279, %c1_280, %c2_281, %c0_282, %c0_283] : memref<1x1x2x3x3x8x128xf32, #tpu.memory_space<vmem>>, vector<1x1x1x1x1x8x128xf32>
    %215 = vector.shape_cast %214 : vector<1x1x1x1x1x8x128xf32> to vector<8x128xf32>
    %c0_284 = arith.constant 0 : index
    %c0_285 = arith.constant 0 : index
    %c1_286 = arith.constant 1 : index
    %c1_287 = arith.constant 1 : index
    %c2_288 = arith.constant 2 : index
    %c0_289 = arith.constant 0 : index
    %c0_290 = arith.constant 0 : index
    %216 = vector.load %arg2[%c0_284, %c0_285, %c1_286, %c1_287, %c2_288, %c0_289, %c0_290] : memref<1x1x2x3x3x8x128xf32, #tpu.memory_space<vmem>>, vector<1x1x1x1x1x8x128xf32>
    %217 = vector.shape_cast %216 : vector<1x1x1x1x1x8x128xf32> to vector<8x128xf32>
    %218 = arith.mulf %215, %66 : vector<8x128xf32>
    %219 = arith.mulf %217, %69 : vector<8x128xf32>
    %220 = arith.subf %218, %219 : vector<8x128xf32>
    %221 = arith.mulf %215, %69 : vector<8x128xf32>
    %222 = arith.mulf %217, %66 : vector<8x128xf32>
    %223 = arith.addf %221, %222 : vector<8x128xf32>
    %224 = arith.addf %212, %220 : vector<8x128xf32>
    %225 = arith.addf %213, %223 : vector<8x128xf32>
    %c0_291 = arith.constant 0 : index
    %c0_292 = arith.constant 0 : index
    %c0_293 = arith.constant 0 : index
    %c1_294 = arith.constant 1 : index
    %c0_295 = arith.constant 0 : index
    %c0_296 = arith.constant 0 : index
    %c0_297 = arith.constant 0 : index
    %226 = vector.load %arg2[%c0_291, %c0_292, %c0_293, %c1_294, %c0_295, %c0_296, %c0_297] : memref<1x1x2x3x3x8x128xf32, #tpu.memory_space<vmem>>, vector<1x1x1x1x1x8x128xf32>
    %227 = vector.shape_cast %226 : vector<1x1x1x1x1x8x128xf32> to vector<8x128xf32>
    %c0_298 = arith.constant 0 : index
    %c0_299 = arith.constant 0 : index
    %c1_300 = arith.constant 1 : index
    %c1_301 = arith.constant 1 : index
    %c0_302 = arith.constant 0 : index
    %c0_303 = arith.constant 0 : index
    %c0_304 = arith.constant 0 : index
    %228 = vector.load %arg2[%c0_298, %c0_299, %c1_300, %c1_301, %c0_302, %c0_303, %c0_304] : memref<1x1x2x3x3x8x128xf32, #tpu.memory_space<vmem>>, vector<1x1x1x1x1x8x128xf32>
    %229 = vector.shape_cast %228 : vector<1x1x1x1x1x8x128xf32> to vector<8x128xf32>
    %230 = arith.mulf %227, %16 : vector<8x128xf32>
    %231 = arith.mulf %229, %19 : vector<8x128xf32>
    %232 = arith.subf %230, %231 : vector<8x128xf32>
    %233 = arith.mulf %227, %19 : vector<8x128xf32>
    %234 = arith.mulf %229, %16 : vector<8x128xf32>
    %235 = arith.addf %233, %234 : vector<8x128xf32>
    %c0_305 = arith.constant 0 : index
    %c0_306 = arith.constant 0 : index
    %c0_307 = arith.constant 0 : index
    %c1_308 = arith.constant 1 : index
    %c1_309 = arith.constant 1 : index
    %c0_310 = arith.constant 0 : index
    %c0_311 = arith.constant 0 : index
    %236 = vector.load %arg2[%c0_305, %c0_306, %c0_307, %c1_308, %c1_309, %c0_310, %c0_311] : memref<1x1x2x3x3x8x128xf32, #tpu.memory_space<vmem>>, vector<1x1x1x1x1x8x128xf32>
    %237 = vector.shape_cast %236 : vector<1x1x1x1x1x8x128xf32> to vector<8x128xf32>
    %c0_312 = arith.constant 0 : index
    %c0_313 = arith.constant 0 : index
    %c1_314 = arith.constant 1 : index
    %c1_315 = arith.constant 1 : index
    %c1_316 = arith.constant 1 : index
    %c0_317 = arith.constant 0 : index
    %c0_318 = arith.constant 0 : index
    %238 = vector.load %arg2[%c0_312, %c0_313, %c1_314, %c1_315, %c1_316, %c0_317, %c0_318] : memref<1x1x2x3x3x8x128xf32, #tpu.memory_space<vmem>>, vector<1x1x1x1x1x8x128xf32>
    %239 = vector.shape_cast %238 : vector<1x1x1x1x1x8x128xf32> to vector<8x128xf32>
    %240 = arith.mulf %237, %46 : vector<8x128xf32>
    %241 = arith.mulf %239, %49 : vector<8x128xf32>
    %242 = arith.subf %240, %241 : vector<8x128xf32>
    %243 = arith.mulf %237, %49 : vector<8x128xf32>
    %244 = arith.mulf %239, %46 : vector<8x128xf32>
    %245 = arith.addf %243, %244 : vector<8x128xf32>
    %246 = arith.addf %232, %242 : vector<8x128xf32>
    %247 = arith.addf %235, %245 : vector<8x128xf32>
    %c0_319 = arith.constant 0 : index
    %c0_320 = arith.constant 0 : index
    %c0_321 = arith.constant 0 : index
    %c1_322 = arith.constant 1 : index
    %c2_323 = arith.constant 2 : index
    %c0_324 = arith.constant 0 : index
    %c0_325 = arith.constant 0 : index
    %248 = vector.load %arg2[%c0_319, %c0_320, %c0_321, %c1_322, %c2_323, %c0_324, %c0_325] : memref<1x1x2x3x3x8x128xf32, #tpu.memory_space<vmem>>, vector<1x1x1x1x1x8x128xf32>
    %249 = vector.shape_cast %248 : vector<1x1x1x1x1x8x128xf32> to vector<8x128xf32>
    %c0_326 = arith.constant 0 : index
    %c0_327 = arith.constant 0 : index
    %c1_328 = arith.constant 1 : index
    %c1_329 = arith.constant 1 : index
    %c2_330 = arith.constant 2 : index
    %c0_331 = arith.constant 0 : index
    %c0_332 = arith.constant 0 : index
    %250 = vector.load %arg2[%c0_326, %c0_327, %c1_328, %c1_329, %c2_330, %c0_331, %c0_332] : memref<1x1x2x3x3x8x128xf32, #tpu.memory_space<vmem>>, vector<1x1x1x1x1x8x128xf32>
    %251 = vector.shape_cast %250 : vector<1x1x1x1x1x8x128xf32> to vector<8x128xf32>
    %252 = arith.mulf %249, %76 : vector<8x128xf32>
    %253 = arith.mulf %251, %79 : vector<8x128xf32>
    %254 = arith.subf %252, %253 : vector<8x128xf32>
    %255 = arith.mulf %249, %79 : vector<8x128xf32>
    %256 = arith.mulf %251, %76 : vector<8x128xf32>
    %257 = arith.addf %255, %256 : vector<8x128xf32>
    %258 = arith.addf %246, %254 : vector<8x128xf32>
    %259 = arith.addf %247, %257 : vector<8x128xf32>
    %c0_333 = arith.constant 0 : index
    %c0_334 = arith.constant 0 : index
    %c0_335 = arith.constant 0 : index
    %c1_336 = arith.constant 1 : index
    %c0_337 = arith.constant 0 : index
    %c0_338 = arith.constant 0 : index
    %c0_339 = arith.constant 0 : index
    %260 = vector.load %arg2[%c0_333, %c0_334, %c0_335, %c1_336, %c0_337, %c0_338, %c0_339] : memref<1x1x2x3x3x8x128xf32, #tpu.memory_space<vmem>>, vector<1x1x1x1x1x8x128xf32>
    %261 = vector.shape_cast %260 : vector<1x1x1x1x1x8x128xf32> to vector<8x128xf32>
    %c0_340 = arith.constant 0 : index
    %c0_341 = arith.constant 0 : index
    %c1_342 = arith.constant 1 : index
    %c1_343 = arith.constant 1 : index
    %c0_344 = arith.constant 0 : index
    %c0_345 = arith.constant 0 : index
    %c0_346 = arith.constant 0 : index
    %262 = vector.load %arg2[%c0_340, %c0_341, %c1_342, %c1_343, %c0_344, %c0_345, %c0_346] : memref<1x1x2x3x3x8x128xf32, #tpu.memory_space<vmem>>, vector<1x1x1x1x1x8x128xf32>
    %263 = vector.shape_cast %262 : vector<1x1x1x1x1x8x128xf32> to vector<8x128xf32>
    %264 = arith.mulf %261, %26 : vector<8x128xf32>
    %265 = arith.mulf %263, %29 : vector<8x128xf32>
    %266 = arith.subf %264, %265 : vector<8x128xf32>
    %267 = arith.mulf %261, %29 : vector<8x128xf32>
    %268 = arith.mulf %263, %26 : vector<8x128xf32>
    %269 = arith.addf %267, %268 : vector<8x128xf32>
    %c0_347 = arith.constant 0 : index
    %c0_348 = arith.constant 0 : index
    %c0_349 = arith.constant 0 : index
    %c1_350 = arith.constant 1 : index
    %c1_351 = arith.constant 1 : index
    %c0_352 = arith.constant 0 : index
    %c0_353 = arith.constant 0 : index
    %270 = vector.load %arg2[%c0_347, %c0_348, %c0_349, %c1_350, %c1_351, %c0_352, %c0_353] : memref<1x1x2x3x3x8x128xf32, #tpu.memory_space<vmem>>, vector<1x1x1x1x1x8x128xf32>
    %271 = vector.shape_cast %270 : vector<1x1x1x1x1x8x128xf32> to vector<8x128xf32>
    %c0_354 = arith.constant 0 : index
    %c0_355 = arith.constant 0 : index
    %c1_356 = arith.constant 1 : index
    %c1_357 = arith.constant 1 : index
    %c1_358 = arith.constant 1 : index
    %c0_359 = arith.constant 0 : index
    %c0_360 = arith.constant 0 : index
    %272 = vector.load %arg2[%c0_354, %c0_355, %c1_356, %c1_357, %c1_358, %c0_359, %c0_360] : memref<1x1x2x3x3x8x128xf32, #tpu.memory_space<vmem>>, vector<1x1x1x1x1x8x128xf32>
    %273 = vector.shape_cast %272 : vector<1x1x1x1x1x8x128xf32> to vector<8x128xf32>
    %274 = arith.mulf %271, %56 : vector<8x128xf32>
    %275 = arith.mulf %273, %59 : vector<8x128xf32>
    %276 = arith.subf %274, %275 : vector<8x128xf32>
    %277 = arith.mulf %271, %59 : vector<8x128xf32>
    %278 = arith.mulf %273, %56 : vector<8x128xf32>
    %279 = arith.addf %277, %278 : vector<8x128xf32>
    %280 = arith.addf %266, %276 : vector<8x128xf32>
    %281 = arith.addf %269, %279 : vector<8x128xf32>
    %c0_361 = arith.constant 0 : index
    %c0_362 = arith.constant 0 : index
    %c0_363 = arith.constant 0 : index
    %c1_364 = arith.constant 1 : index
    %c2_365 = arith.constant 2 : index
    %c0_366 = arith.constant 0 : index
    %c0_367 = arith.constant 0 : index
    %282 = vector.load %arg2[%c0_361, %c0_362, %c0_363, %c1_364, %c2_365, %c0_366, %c0_367] : memref<1x1x2x3x3x8x128xf32, #tpu.memory_space<vmem>>, vector<1x1x1x1x1x8x128xf32>
    %283 = vector.shape_cast %282 : vector<1x1x1x1x1x8x128xf32> to vector<8x128xf32>
    %c0_368 = arith.constant 0 : index
    %c0_369 = arith.constant 0 : index
    %c1_370 = arith.constant 1 : index
    %c1_371 = arith.constant 1 : index
    %c2_372 = arith.constant 2 : index
    %c0_373 = arith.constant 0 : index
    %c0_374 = arith.constant 0 : index
    %284 = vector.load %arg2[%c0_368, %c0_369, %c1_370, %c1_371, %c2_372, %c0_373, %c0_374] : memref<1x1x2x3x3x8x128xf32, #tpu.memory_space<vmem>>, vector<1x1x1x1x1x8x128xf32>
    %285 = vector.shape_cast %284 : vector<1x1x1x1x1x8x128xf32> to vector<8x128xf32>
    %286 = arith.mulf %283, %86 : vector<8x128xf32>
    %287 = arith.mulf %285, %89 : vector<8x128xf32>
    %288 = arith.subf %286, %287 : vector<8x128xf32>
    %289 = arith.mulf %283, %89 : vector<8x128xf32>
    %290 = arith.mulf %285, %86 : vector<8x128xf32>
    %291 = arith.addf %289, %290 : vector<8x128xf32>
    %292 = arith.addf %280, %288 : vector<8x128xf32>
    %293 = arith.addf %281, %291 : vector<8x128xf32>
    %c0_375 = arith.constant 0 : index
    %c0_376 = arith.constant 0 : index
    %c0_377 = arith.constant 0 : index
    %c2_378 = arith.constant 2 : index
    %c0_379 = arith.constant 0 : index
    %c0_380 = arith.constant 0 : index
    %c0_381 = arith.constant 0 : index
    %294 = vector.load %arg2[%c0_375, %c0_376, %c0_377, %c2_378, %c0_379, %c0_380, %c0_381] : memref<1x1x2x3x3x8x128xf32, #tpu.memory_space<vmem>>, vector<1x1x1x1x1x8x128xf32>
    %295 = vector.shape_cast %294 : vector<1x1x1x1x1x8x128xf32> to vector<8x128xf32>
    %c0_382 = arith.constant 0 : index
    %c0_383 = arith.constant 0 : index
    %c1_384 = arith.constant 1 : index
    %c2_385 = arith.constant 2 : index
    %c0_386 = arith.constant 0 : index
    %c0_387 = arith.constant 0 : index
    %c0_388 = arith.constant 0 : index
    %296 = vector.load %arg2[%c0_382, %c0_383, %c1_384, %c2_385, %c0_386, %c0_387, %c0_388] : memref<1x1x2x3x3x8x128xf32, #tpu.memory_space<vmem>>, vector<1x1x1x1x1x8x128xf32>
    %297 = vector.shape_cast %296 : vector<1x1x1x1x1x8x128xf32> to vector<8x128xf32>
    %298 = arith.mulf %295, %6 : vector<8x128xf32>
    %299 = arith.mulf %297, %9 : vector<8x128xf32>
    %300 = arith.subf %298, %299 : vector<8x128xf32>
    %301 = arith.mulf %295, %9 : vector<8x128xf32>
    %302 = arith.mulf %297, %6 : vector<8x128xf32>
    %303 = arith.addf %301, %302 : vector<8x128xf32>
    %c0_389 = arith.constant 0 : index
    %c0_390 = arith.constant 0 : index
    %c0_391 = arith.constant 0 : index
    %c2_392 = arith.constant 2 : index
    %c1_393 = arith.constant 1 : index
    %c0_394 = arith.constant 0 : index
    %c0_395 = arith.constant 0 : index
    %304 = vector.load %arg2[%c0_389, %c0_390, %c0_391, %c2_392, %c1_393, %c0_394, %c0_395] : memref<1x1x2x3x3x8x128xf32, #tpu.memory_space<vmem>>, vector<1x1x1x1x1x8x128xf32>
    %305 = vector.shape_cast %304 : vector<1x1x1x1x1x8x128xf32> to vector<8x128xf32>
    %c0_396 = arith.constant 0 : index
    %c0_397 = arith.constant 0 : index
    %c1_398 = arith.constant 1 : index
    %c2_399 = arith.constant 2 : index
    %c1_400 = arith.constant 1 : index
    %c0_401 = arith.constant 0 : index
    %c0_402 = arith.constant 0 : index
    %306 = vector.load %arg2[%c0_396, %c0_397, %c1_398, %c2_399, %c1_400, %c0_401, %c0_402] : memref<1x1x2x3x3x8x128xf32, #tpu.memory_space<vmem>>, vector<1x1x1x1x1x8x128xf32>
    %307 = vector.shape_cast %306 : vector<1x1x1x1x1x8x128xf32> to vector<8x128xf32>
    %308 = arith.mulf %305, %36 : vector<8x128xf32>
    %309 = arith.mulf %307, %39 : vector<8x128xf32>
    %310 = arith.subf %308, %309 : vector<8x128xf32>
    %311 = arith.mulf %305, %39 : vector<8x128xf32>
    %312 = arith.mulf %307, %36 : vector<8x128xf32>
    %313 = arith.addf %311, %312 : vector<8x128xf32>
    %314 = arith.addf %300, %310 : vector<8x128xf32>
    %315 = arith.addf %303, %313 : vector<8x128xf32>
    %c0_403 = arith.constant 0 : index
    %c0_404 = arith.constant 0 : index
    %c0_405 = arith.constant 0 : index
    %c2_406 = arith.constant 2 : index
    %c2_407 = arith.constant 2 : index
    %c0_408 = arith.constant 0 : index
    %c0_409 = arith.constant 0 : index
    %316 = vector.load %arg2[%c0_403, %c0_404, %c0_405, %c2_406, %c2_407, %c0_408, %c0_409] : memref<1x1x2x3x3x8x128xf32, #tpu.memory_space<vmem>>, vector<1x1x1x1x1x8x128xf32>
    %317 = vector.shape_cast %316 : vector<1x1x1x1x1x8x128xf32> to vector<8x128xf32>
    %c0_410 = arith.constant 0 : index
    %c0_411 = arith.constant 0 : index
    %c1_412 = arith.constant 1 : index
    %c2_413 = arith.constant 2 : index
    %c2_414 = arith.constant 2 : index
    %c0_415 = arith.constant 0 : index
    %c0_416 = arith.constant 0 : index
    %318 = vector.load %arg2[%c0_410, %c0_411, %c1_412, %c2_413, %c2_414, %c0_415, %c0_416] : memref<1x1x2x3x3x8x128xf32, #tpu.memory_space<vmem>>, vector<1x1x1x1x1x8x128xf32>
    %319 = vector.shape_cast %318 : vector<1x1x1x1x1x8x128xf32> to vector<8x128xf32>
    %320 = arith.mulf %317, %66 : vector<8x128xf32>
    %321 = arith.mulf %319, %69 : vector<8x128xf32>
    %322 = arith.subf %320, %321 : vector<8x128xf32>
    %323 = arith.mulf %317, %69 : vector<8x128xf32>
    %324 = arith.mulf %319, %66 : vector<8x128xf32>
    %325 = arith.addf %323, %324 : vector<8x128xf32>
    %326 = arith.addf %314, %322 : vector<8x128xf32>
    %327 = arith.addf %315, %325 : vector<8x128xf32>
    %c0_417 = arith.constant 0 : index
    %c0_418 = arith.constant 0 : index
    %c0_419 = arith.constant 0 : index
    %c2_420 = arith.constant 2 : index
    %c0_421 = arith.constant 0 : index
    %c0_422 = arith.constant 0 : index
    %c0_423 = arith.constant 0 : index
    %328 = vector.load %arg2[%c0_417, %c0_418, %c0_419, %c2_420, %c0_421, %c0_422, %c0_423] : memref<1x1x2x3x3x8x128xf32, #tpu.memory_space<vmem>>, vector<1x1x1x1x1x8x128xf32>
    %329 = vector.shape_cast %328 : vector<1x1x1x1x1x8x128xf32> to vector<8x128xf32>
    %c0_424 = arith.constant 0 : index
    %c0_425 = arith.constant 0 : index
    %c1_426 = arith.constant 1 : index
    %c2_427 = arith.constant 2 : index
    %c0_428 = arith.constant 0 : index
    %c0_429 = arith.constant 0 : index
    %c0_430 = arith.constant 0 : index
    %330 = vector.load %arg2[%c0_424, %c0_425, %c1_426, %c2_427, %c0_428, %c0_429, %c0_430] : memref<1x1x2x3x3x8x128xf32, #tpu.memory_space<vmem>>, vector<1x1x1x1x1x8x128xf32>
    %331 = vector.shape_cast %330 : vector<1x1x1x1x1x8x128xf32> to vector<8x128xf32>
    %332 = arith.mulf %329, %16 : vector<8x128xf32>
    %333 = arith.mulf %331, %19 : vector<8x128xf32>
    %334 = arith.subf %332, %333 : vector<8x128xf32>
    %335 = arith.mulf %329, %19 : vector<8x128xf32>
    %336 = arith.mulf %331, %16 : vector<8x128xf32>
    %337 = arith.addf %335, %336 : vector<8x128xf32>
    %c0_431 = arith.constant 0 : index
    %c0_432 = arith.constant 0 : index
    %c0_433 = arith.constant 0 : index
    %c2_434 = arith.constant 2 : index
    %c1_435 = arith.constant 1 : index
    %c0_436 = arith.constant 0 : index
    %c0_437 = arith.constant 0 : index
    %338 = vector.load %arg2[%c0_431, %c0_432, %c0_433, %c2_434, %c1_435, %c0_436, %c0_437] : memref<1x1x2x3x3x8x128xf32, #tpu.memory_space<vmem>>, vector<1x1x1x1x1x8x128xf32>
    %339 = vector.shape_cast %338 : vector<1x1x1x1x1x8x128xf32> to vector<8x128xf32>
    %c0_438 = arith.constant 0 : index
    %c0_439 = arith.constant 0 : index
    %c1_440 = arith.constant 1 : index
    %c2_441 = arith.constant 2 : index
    %c1_442 = arith.constant 1 : index
    %c0_443 = arith.constant 0 : index
    %c0_444 = arith.constant 0 : index
    %340 = vector.load %arg2[%c0_438, %c0_439, %c1_440, %c2_441, %c1_442, %c0_443, %c0_444] : memref<1x1x2x3x3x8x128xf32, #tpu.memory_space<vmem>>, vector<1x1x1x1x1x8x128xf32>
    %341 = vector.shape_cast %340 : vector<1x1x1x1x1x8x128xf32> to vector<8x128xf32>
    %342 = arith.mulf %339, %46 : vector<8x128xf32>
    %343 = arith.mulf %341, %49 : vector<8x128xf32>
    %344 = arith.subf %342, %343 : vector<8x128xf32>
    %345 = arith.mulf %339, %49 : vector<8x128xf32>
    %346 = arith.mulf %341, %46 : vector<8x128xf32>
    %347 = arith.addf %345, %346 : vector<8x128xf32>
    %348 = arith.addf %334, %344 : vector<8x128xf32>
    %349 = arith.addf %337, %347 : vector<8x128xf32>
    %c0_445 = arith.constant 0 : index
    %c0_446 = arith.constant 0 : index
    %c0_447 = arith.constant 0 : index
    %c2_448 = arith.constant 2 : index
    %c2_449 = arith.constant 2 : index
    %c0_450 = arith.constant 0 : index
    %c0_451 = arith.constant 0 : index
    %350 = vector.load %arg2[%c0_445, %c0_446, %c0_447, %c2_448, %c2_449, %c0_450, %c0_451] : memref<1x1x2x3x3x8x128xf32, #tpu.memory_space<vmem>>, vector<1x1x1x1x1x8x128xf32>
    %351 = vector.shape_cast %350 : vector<1x1x1x1x1x8x128xf32> to vector<8x128xf32>
    %c0_452 = arith.constant 0 : index
    %c0_453 = arith.constant 0 : index
    %c1_454 = arith.constant 1 : index
    %c2_455 = arith.constant 2 : index
    %c2_456 = arith.constant 2 : index
    %c0_457 = arith.constant 0 : index
    %c0_458 = arith.constant 0 : index
    %352 = vector.load %arg2[%c0_452, %c0_453, %c1_454, %c2_455, %c2_456, %c0_457, %c0_458] : memref<1x1x2x3x3x8x128xf32, #tpu.memory_space<vmem>>, vector<1x1x1x1x1x8x128xf32>
    %353 = vector.shape_cast %352 : vector<1x1x1x1x1x8x128xf32> to vector<8x128xf32>
    %354 = arith.mulf %351, %76 : vector<8x128xf32>
    %355 = arith.mulf %353, %79 : vector<8x128xf32>
    %356 = arith.subf %354, %355 : vector<8x128xf32>
    %357 = arith.mulf %351, %79 : vector<8x128xf32>
    %358 = arith.mulf %353, %76 : vector<8x128xf32>
    %359 = arith.addf %357, %358 : vector<8x128xf32>
    %360 = arith.addf %348, %356 : vector<8x128xf32>
    %361 = arith.addf %349, %359 : vector<8x128xf32>
    %c0_459 = arith.constant 0 : index
    %c0_460 = arith.constant 0 : index
    %c0_461 = arith.constant 0 : index
    %c2_462 = arith.constant 2 : index
    %c0_463 = arith.constant 0 : index
    %c0_464 = arith.constant 0 : index
    %c0_465 = arith.constant 0 : index
    %362 = vector.load %arg2[%c0_459, %c0_460, %c0_461, %c2_462, %c0_463, %c0_464, %c0_465] : memref<1x1x2x3x3x8x128xf32, #tpu.memory_space<vmem>>, vector<1x1x1x1x1x8x128xf32>
    %363 = vector.shape_cast %362 : vector<1x1x1x1x1x8x128xf32> to vector<8x128xf32>
    %c0_466 = arith.constant 0 : index
    %c0_467 = arith.constant 0 : index
    %c1_468 = arith.constant 1 : index
    %c2_469 = arith.constant 2 : index
    %c0_470 = arith.constant 0 : index
    %c0_471 = arith.constant 0 : index
    %c0_472 = arith.constant 0 : index
    %364 = vector.load %arg2[%c0_466, %c0_467, %c1_468, %c2_469, %c0_470, %c0_471, %c0_472] : memref<1x1x2x3x3x8x128xf32, #tpu.memory_space<vmem>>, vector<1x1x1x1x1x8x128xf32>
    %365 = vector.shape_cast %364 : vector<1x1x1x1x1x8x128xf32> to vector<8x128xf32>
    %366 = arith.mulf %363, %26 : vector<8x128xf32>
    %367 = arith.mulf %365, %29 : vector<8x128xf32>
    %368 = arith.subf %366, %367 : vector<8x128xf32>
    %369 = arith.mulf %363, %29 : vector<8x128xf32>
    %370 = arith.mulf %365, %26 : vector<8x128xf32>
    %371 = arith.addf %369, %370 : vector<8x128xf32>
    %c0_473 = arith.constant 0 : index
    %c0_474 = arith.constant 0 : index
    %c0_475 = arith.constant 0 : index
    %c2_476 = arith.constant 2 : index
    %c1_477 = arith.constant 1 : index
    %c0_478 = arith.constant 0 : index
    %c0_479 = arith.constant 0 : index
    %372 = vector.load %arg2[%c0_473, %c0_474, %c0_475, %c2_476, %c1_477, %c0_478, %c0_479] : memref<1x1x2x3x3x8x128xf32, #tpu.memory_space<vmem>>, vector<1x1x1x1x1x8x128xf32>
    %373 = vector.shape_cast %372 : vector<1x1x1x1x1x8x128xf32> to vector<8x128xf32>
    %c0_480 = arith.constant 0 : index
    %c0_481 = arith.constant 0 : index
    %c1_482 = arith.constant 1 : index
    %c2_483 = arith.constant 2 : index
    %c1_484 = arith.constant 1 : index
    %c0_485 = arith.constant 0 : index
    %c0_486 = arith.constant 0 : index
    %374 = vector.load %arg2[%c0_480, %c0_481, %c1_482, %c2_483, %c1_484, %c0_485, %c0_486] : memref<1x1x2x3x3x8x128xf32, #tpu.memory_space<vmem>>, vector<1x1x1x1x1x8x128xf32>
    %375 = vector.shape_cast %374 : vector<1x1x1x1x1x8x128xf32> to vector<8x128xf32>
    %376 = arith.mulf %373, %56 : vector<8x128xf32>
    %377 = arith.mulf %375, %59 : vector<8x128xf32>
    %378 = arith.subf %376, %377 : vector<8x128xf32>
    %379 = arith.mulf %373, %59 : vector<8x128xf32>
    %380 = arith.mulf %375, %56 : vector<8x128xf32>
    %381 = arith.addf %379, %380 : vector<8x128xf32>
    %382 = arith.addf %368, %378 : vector<8x128xf32>
    %383 = arith.addf %371, %381 : vector<8x128xf32>
    %c0_487 = arith.constant 0 : index
    %c0_488 = arith.constant 0 : index
    %c0_489 = arith.constant 0 : index
    %c2_490 = arith.constant 2 : index
    %c2_491 = arith.constant 2 : index
    %c0_492 = arith.constant 0 : index
    %c0_493 = arith.constant 0 : index
    %384 = vector.load %arg2[%c0_487, %c0_488, %c0_489, %c2_490, %c2_491, %c0_492, %c0_493] : memref<1x1x2x3x3x8x128xf32, #tpu.memory_space<vmem>>, vector<1x1x1x1x1x8x128xf32>
    %385 = vector.shape_cast %384 : vector<1x1x1x1x1x8x128xf32> to vector<8x128xf32>
    %c0_494 = arith.constant 0 : index
    %c0_495 = arith.constant 0 : index
    %c1_496 = arith.constant 1 : index
    %c2_497 = arith.constant 2 : index
    %c2_498 = arith.constant 2 : index
    %c0_499 = arith.constant 0 : index
    %c0_500 = arith.constant 0 : index
    %386 = vector.load %arg2[%c0_494, %c0_495, %c1_496, %c2_497, %c2_498, %c0_499, %c0_500] : memref<1x1x2x3x3x8x128xf32, #tpu.memory_space<vmem>>, vector<1x1x1x1x1x8x128xf32>
    %387 = vector.shape_cast %386 : vector<1x1x1x1x1x8x128xf32> to vector<8x128xf32>
    %388 = arith.mulf %385, %86 : vector<8x128xf32>
    %389 = arith.mulf %387, %89 : vector<8x128xf32>
    %390 = arith.subf %388, %389 : vector<8x128xf32>
    %391 = arith.mulf %385, %89 : vector<8x128xf32>
    %392 = arith.mulf %387, %86 : vector<8x128xf32>
    %393 = arith.addf %391, %392 : vector<8x128xf32>
    %394 = arith.addf %382, %390 : vector<8x128xf32>
    %395 = arith.addf %383, %393 : vector<8x128xf32>
    %c0_501 = arith.constant 0 : index
    %c0_502 = arith.constant 0 : index
    %c0_503 = arith.constant 0 : index
    %c0_504 = arith.constant 0 : index
    %c0_505 = arith.constant 0 : index
    %c0_506 = arith.constant 0 : index
    %c0_507 = arith.constant 0 : index
    %396 = vector.load %arg2[%c0_501, %c0_502, %c0_503, %c0_504, %c0_505, %c0_506, %c0_507] : memref<1x1x2x3x3x8x128xf32, #tpu.memory_space<vmem>>, vector<1x1x1x1x1x8x128xf32>
    %397 = vector.shape_cast %396 : vector<1x1x1x1x1x8x128xf32> to vector<8x128xf32>
    %c0_508 = arith.constant 0 : index
    %c0_509 = arith.constant 0 : index
    %c1_510 = arith.constant 1 : index
    %c0_511 = arith.constant 0 : index
    %c0_512 = arith.constant 0 : index
    %c0_513 = arith.constant 0 : index
    %c0_514 = arith.constant 0 : index
    %398 = vector.load %arg2[%c0_508, %c0_509, %c1_510, %c0_511, %c0_512, %c0_513, %c0_514] : memref<1x1x2x3x3x8x128xf32, #tpu.memory_space<vmem>>, vector<1x1x1x1x1x8x128xf32>
    %399 = vector.shape_cast %398 : vector<1x1x1x1x1x8x128xf32> to vector<8x128xf32>
    %400 = vector.extract_strided_slice %397 {offsets = [1, 0], sizes = [7, 128], strides = [1, 1]} : vector<8x128xf32> to vector<7x128xf32>
    %401 = vector.extract_strided_slice %397 {offsets = [0, 0], sizes = [1, 128], strides = [1, 1]} : vector<8x128xf32> to vector<1x128xf32>
    %402 = tpu.concatenate %400, %401 in 0 : vector<7x128xf32>, vector<1x128xf32> -> vector<8x128xf32>
    %403 = vector.extract_strided_slice %399 {offsets = [1, 0], sizes = [7, 128], strides = [1, 1]} : vector<8x128xf32> to vector<7x128xf32>
    %404 = vector.extract_strided_slice %399 {offsets = [0, 0], sizes = [1, 128], strides = [1, 1]} : vector<8x128xf32> to vector<1x128xf32>
    %405 = tpu.concatenate %403, %404 in 0 : vector<7x128xf32>, vector<1x128xf32> -> vector<8x128xf32>
    %c0_515 = arith.constant 0 : index
    %c0_516 = arith.constant 0 : index
    %c0_517 = arith.constant 0 : index
    %c0_518 = arith.constant 0 : index
    %c1_519 = arith.constant 1 : index
    %c0_520 = arith.constant 0 : index
    %c0_521 = arith.constant 0 : index
    %406 = vector.load %arg2[%c0_515, %c0_516, %c0_517, %c0_518, %c1_519, %c0_520, %c0_521] : memref<1x1x2x3x3x8x128xf32, #tpu.memory_space<vmem>>, vector<1x1x1x1x1x8x128xf32>
    %407 = vector.shape_cast %406 : vector<1x1x1x1x1x8x128xf32> to vector<8x128xf32>
    %c0_522 = arith.constant 0 : index
    %c0_523 = arith.constant 0 : index
    %c1_524 = arith.constant 1 : index
    %c0_525 = arith.constant 0 : index
    %c1_526 = arith.constant 1 : index
    %c0_527 = arith.constant 0 : index
    %c0_528 = arith.constant 0 : index
    %408 = vector.load %arg2[%c0_522, %c0_523, %c1_524, %c0_525, %c1_526, %c0_527, %c0_528] : memref<1x1x2x3x3x8x128xf32, #tpu.memory_space<vmem>>, vector<1x1x1x1x1x8x128xf32>
    %409 = vector.shape_cast %408 : vector<1x1x1x1x1x8x128xf32> to vector<8x128xf32>
    %410 = vector.extract_strided_slice %407 {offsets = [1, 0], sizes = [7, 128], strides = [1, 1]} : vector<8x128xf32> to vector<7x128xf32>
    %411 = vector.extract_strided_slice %407 {offsets = [0, 0], sizes = [1, 128], strides = [1, 1]} : vector<8x128xf32> to vector<1x128xf32>
    %412 = tpu.concatenate %410, %411 in 0 : vector<7x128xf32>, vector<1x128xf32> -> vector<8x128xf32>
    %413 = vector.extract_strided_slice %409 {offsets = [1, 0], sizes = [7, 128], strides = [1, 1]} : vector<8x128xf32> to vector<7x128xf32>
    %414 = vector.extract_strided_slice %409 {offsets = [0, 0], sizes = [1, 128], strides = [1, 1]} : vector<8x128xf32> to vector<1x128xf32>
    %415 = tpu.concatenate %413, %414 in 0 : vector<7x128xf32>, vector<1x128xf32> -> vector<8x128xf32>
    %c0_529 = arith.constant 0 : index
    %c0_530 = arith.constant 0 : index
    %c0_531 = arith.constant 0 : index
    %c0_532 = arith.constant 0 : index
    %c2_533 = arith.constant 2 : index
    %c0_534 = arith.constant 0 : index
    %c0_535 = arith.constant 0 : index
    %416 = vector.load %arg2[%c0_529, %c0_530, %c0_531, %c0_532, %c2_533, %c0_534, %c0_535] : memref<1x1x2x3x3x8x128xf32, #tpu.memory_space<vmem>>, vector<1x1x1x1x1x8x128xf32>
    %417 = vector.shape_cast %416 : vector<1x1x1x1x1x8x128xf32> to vector<8x128xf32>
    %c0_536 = arith.constant 0 : index
    %c0_537 = arith.constant 0 : index
    %c1_538 = arith.constant 1 : index
    %c0_539 = arith.constant 0 : index
    %c2_540 = arith.constant 2 : index
    %c0_541 = arith.constant 0 : index
    %c0_542 = arith.constant 0 : index
    %418 = vector.load %arg2[%c0_536, %c0_537, %c1_538, %c0_539, %c2_540, %c0_541, %c0_542] : memref<1x1x2x3x3x8x128xf32, #tpu.memory_space<vmem>>, vector<1x1x1x1x1x8x128xf32>
    %419 = vector.shape_cast %418 : vector<1x1x1x1x1x8x128xf32> to vector<8x128xf32>
    %420 = vector.extract_strided_slice %417 {offsets = [1, 0], sizes = [7, 128], strides = [1, 1]} : vector<8x128xf32> to vector<7x128xf32>
    %421 = vector.extract_strided_slice %417 {offsets = [0, 0], sizes = [1, 128], strides = [1, 1]} : vector<8x128xf32> to vector<1x128xf32>
    %422 = tpu.concatenate %420, %421 in 0 : vector<7x128xf32>, vector<1x128xf32> -> vector<8x128xf32>
    %423 = vector.extract_strided_slice %419 {offsets = [1, 0], sizes = [7, 128], strides = [1, 1]} : vector<8x128xf32> to vector<7x128xf32>
    %424 = vector.extract_strided_slice %419 {offsets = [0, 0], sizes = [1, 128], strides = [1, 1]} : vector<8x128xf32> to vector<1x128xf32>
    %425 = tpu.concatenate %423, %424 in 0 : vector<7x128xf32>, vector<1x128xf32> -> vector<8x128xf32>
    %c0_543 = arith.constant 0 : index
    %c0_544 = arith.constant 0 : index
    %c0_545 = arith.constant 0 : index
    %c1_546 = arith.constant 1 : index
    %c0_547 = arith.constant 0 : index
    %c0_548 = arith.constant 0 : index
    %c0_549 = arith.constant 0 : index
    %426 = vector.load %arg2[%c0_543, %c0_544, %c0_545, %c1_546, %c0_547, %c0_548, %c0_549] : memref<1x1x2x3x3x8x128xf32, #tpu.memory_space<vmem>>, vector<1x1x1x1x1x8x128xf32>
    %427 = vector.shape_cast %426 : vector<1x1x1x1x1x8x128xf32> to vector<8x128xf32>
    %c0_550 = arith.constant 0 : index
    %c0_551 = arith.constant 0 : index
    %c1_552 = arith.constant 1 : index
    %c1_553 = arith.constant 1 : index
    %c0_554 = arith.constant 0 : index
    %c0_555 = arith.constant 0 : index
    %c0_556 = arith.constant 0 : index
    %428 = vector.load %arg2[%c0_550, %c0_551, %c1_552, %c1_553, %c0_554, %c0_555, %c0_556] : memref<1x1x2x3x3x8x128xf32, #tpu.memory_space<vmem>>, vector<1x1x1x1x1x8x128xf32>
    %429 = vector.shape_cast %428 : vector<1x1x1x1x1x8x128xf32> to vector<8x128xf32>
    %430 = vector.extract_strided_slice %427 {offsets = [1, 0], sizes = [7, 128], strides = [1, 1]} : vector<8x128xf32> to vector<7x128xf32>
    %431 = vector.extract_strided_slice %427 {offsets = [0, 0], sizes = [1, 128], strides = [1, 1]} : vector<8x128xf32> to vector<1x128xf32>
    %432 = tpu.concatenate %430, %431 in 0 : vector<7x128xf32>, vector<1x128xf32> -> vector<8x128xf32>
    %433 = vector.extract_strided_slice %429 {offsets = [1, 0], sizes = [7, 128], strides = [1, 1]} : vector<8x128xf32> to vector<7x128xf32>
    %434 = vector.extract_strided_slice %429 {offsets = [0, 0], sizes = [1, 128], strides = [1, 1]} : vector<8x128xf32> to vector<1x128xf32>
    %435 = tpu.concatenate %433, %434 in 0 : vector<7x128xf32>, vector<1x128xf32> -> vector<8x128xf32>
    %c0_557 = arith.constant 0 : index
    %c0_558 = arith.constant 0 : index
    %c0_559 = arith.constant 0 : index
    %c1_560 = arith.constant 1 : index
    %c1_561 = arith.constant 1 : index
    %c0_562 = arith.constant 0 : index
    %c0_563 = arith.constant 0 : index
    %436 = vector.load %arg2[%c0_557, %c0_558, %c0_559, %c1_560, %c1_561, %c0_562, %c0_563] : memref<1x1x2x3x3x8x128xf32, #tpu.memory_space<vmem>>, vector<1x1x1x1x1x8x128xf32>
    %437 = vector.shape_cast %436 : vector<1x1x1x1x1x8x128xf32> to vector<8x128xf32>
    %c0_564 = arith.constant 0 : index
    %c0_565 = arith.constant 0 : index
    %c1_566 = arith.constant 1 : index
    %c1_567 = arith.constant 1 : index
    %c1_568 = arith.constant 1 : index
    %c0_569 = arith.constant 0 : index
    %c0_570 = arith.constant 0 : index
    %438 = vector.load %arg2[%c0_564, %c0_565, %c1_566, %c1_567, %c1_568, %c0_569, %c0_570] : memref<1x1x2x3x3x8x128xf32, #tpu.memory_space<vmem>>, vector<1x1x1x1x1x8x128xf32>
    %439 = vector.shape_cast %438 : vector<1x1x1x1x1x8x128xf32> to vector<8x128xf32>
    %440 = vector.extract_strided_slice %437 {offsets = [1, 0], sizes = [7, 128], strides = [1, 1]} : vector<8x128xf32> to vector<7x128xf32>
    %441 = vector.extract_strided_slice %437 {offsets = [0, 0], sizes = [1, 128], strides = [1, 1]} : vector<8x128xf32> to vector<1x128xf32>
    %442 = tpu.concatenate %440, %441 in 0 : vector<7x128xf32>, vector<1x128xf32> -> vector<8x128xf32>
    %443 = vector.extract_strided_slice %439 {offsets = [1, 0], sizes = [7, 128], strides = [1, 1]} : vector<8x128xf32> to vector<7x128xf32>
    %444 = vector.extract_strided_slice %439 {offsets = [0, 0], sizes = [1, 128], strides = [1, 1]} : vector<8x128xf32> to vector<1x128xf32>
    %445 = tpu.concatenate %443, %444 in 0 : vector<7x128xf32>, vector<1x128xf32> -> vector<8x128xf32>
    %c0_571 = arith.constant 0 : index
    %c0_572 = arith.constant 0 : index
    %c0_573 = arith.constant 0 : index
    %c1_574 = arith.constant 1 : index
    %c2_575 = arith.constant 2 : index
    %c0_576 = arith.constant 0 : index
    %c0_577 = arith.constant 0 : index
    %446 = vector.load %arg2[%c0_571, %c0_572, %c0_573, %c1_574, %c2_575, %c0_576, %c0_577] : memref<1x1x2x3x3x8x128xf32, #tpu.memory_space<vmem>>, vector<1x1x1x1x1x8x128xf32>
    %447 = vector.shape_cast %446 : vector<1x1x1x1x1x8x128xf32> to vector<8x128xf32>
    %c0_578 = arith.constant 0 : index
    %c0_579 = arith.constant 0 : index
    %c1_580 = arith.constant 1 : index
    %c1_581 = arith.constant 1 : index
    %c2_582 = arith.constant 2 : index
    %c0_583 = arith.constant 0 : index
    %c0_584 = arith.constant 0 : index
    %448 = vector.load %arg2[%c0_578, %c0_579, %c1_580, %c1_581, %c2_582, %c0_583, %c0_584] : memref<1x1x2x3x3x8x128xf32, #tpu.memory_space<vmem>>, vector<1x1x1x1x1x8x128xf32>
    %449 = vector.shape_cast %448 : vector<1x1x1x1x1x8x128xf32> to vector<8x128xf32>
    %450 = vector.extract_strided_slice %447 {offsets = [1, 0], sizes = [7, 128], strides = [1, 1]} : vector<8x128xf32> to vector<7x128xf32>
    %451 = vector.extract_strided_slice %447 {offsets = [0, 0], sizes = [1, 128], strides = [1, 1]} : vector<8x128xf32> to vector<1x128xf32>
    %452 = tpu.concatenate %450, %451 in 0 : vector<7x128xf32>, vector<1x128xf32> -> vector<8x128xf32>
    %453 = vector.extract_strided_slice %449 {offsets = [1, 0], sizes = [7, 128], strides = [1, 1]} : vector<8x128xf32> to vector<7x128xf32>
    %454 = vector.extract_strided_slice %449 {offsets = [0, 0], sizes = [1, 128], strides = [1, 1]} : vector<8x128xf32> to vector<1x128xf32>
    %455 = tpu.concatenate %453, %454 in 0 : vector<7x128xf32>, vector<1x128xf32> -> vector<8x128xf32>
    %c0_585 = arith.constant 0 : index
    %c0_586 = arith.constant 0 : index
    %c0_587 = arith.constant 0 : index
    %c2_588 = arith.constant 2 : index
    %c0_589 = arith.constant 0 : index
    %c0_590 = arith.constant 0 : index
    %c0_591 = arith.constant 0 : index
    %456 = vector.load %arg2[%c0_585, %c0_586, %c0_587, %c2_588, %c0_589, %c0_590, %c0_591] : memref<1x1x2x3x3x8x128xf32, #tpu.memory_space<vmem>>, vector<1x1x1x1x1x8x128xf32>
    %457 = vector.shape_cast %456 : vector<1x1x1x1x1x8x128xf32> to vector<8x128xf32>
    %c0_592 = arith.constant 0 : index
    %c0_593 = arith.constant 0 : index
    %c1_594 = arith.constant 1 : index
    %c2_595 = arith.constant 2 : index
    %c0_596 = arith.constant 0 : index
    %c0_597 = arith.constant 0 : index
    %c0_598 = arith.constant 0 : index
    %458 = vector.load %arg2[%c0_592, %c0_593, %c1_594, %c2_595, %c0_596, %c0_597, %c0_598] : memref<1x1x2x3x3x8x128xf32, #tpu.memory_space<vmem>>, vector<1x1x1x1x1x8x128xf32>
    %459 = vector.shape_cast %458 : vector<1x1x1x1x1x8x128xf32> to vector<8x128xf32>
    %460 = vector.extract_strided_slice %457 {offsets = [1, 0], sizes = [7, 128], strides = [1, 1]} : vector<8x128xf32> to vector<7x128xf32>
    %461 = vector.extract_strided_slice %457 {offsets = [0, 0], sizes = [1, 128], strides = [1, 1]} : vector<8x128xf32> to vector<1x128xf32>
    %462 = tpu.concatenate %460, %461 in 0 : vector<7x128xf32>, vector<1x128xf32> -> vector<8x128xf32>
    %463 = vector.extract_strided_slice %459 {offsets = [1, 0], sizes = [7, 128], strides = [1, 1]} : vector<8x128xf32> to vector<7x128xf32>
    %464 = vector.extract_strided_slice %459 {offsets = [0, 0], sizes = [1, 128], strides = [1, 1]} : vector<8x128xf32> to vector<1x128xf32>
    %465 = tpu.concatenate %463, %464 in 0 : vector<7x128xf32>, vector<1x128xf32> -> vector<8x128xf32>
    %c0_599 = arith.constant 0 : index
    %c0_600 = arith.constant 0 : index
    %c0_601 = arith.constant 0 : index
    %c2_602 = arith.constant 2 : index
    %c1_603 = arith.constant 1 : index
    %c0_604 = arith.constant 0 : index
    %c0_605 = arith.constant 0 : index
    %466 = vector.load %arg2[%c0_599, %c0_600, %c0_601, %c2_602, %c1_603, %c0_604, %c0_605] : memref<1x1x2x3x3x8x128xf32, #tpu.memory_space<vmem>>, vector<1x1x1x1x1x8x128xf32>
    %467 = vector.shape_cast %466 : vector<1x1x1x1x1x8x128xf32> to vector<8x128xf32>
    %c0_606 = arith.constant 0 : index
    %c0_607 = arith.constant 0 : index
    %c1_608 = arith.constant 1 : index
    %c2_609 = arith.constant 2 : index
    %c1_610 = arith.constant 1 : index
    %c0_611 = arith.constant 0 : index
    %c0_612 = arith.constant 0 : index
    %468 = vector.load %arg2[%c0_606, %c0_607, %c1_608, %c2_609, %c1_610, %c0_611, %c0_612] : memref<1x1x2x3x3x8x128xf32, #tpu.memory_space<vmem>>, vector<1x1x1x1x1x8x128xf32>
    %469 = vector.shape_cast %468 : vector<1x1x1x1x1x8x128xf32> to vector<8x128xf32>
    %470 = vector.extract_strided_slice %467 {offsets = [1, 0], sizes = [7, 128], strides = [1, 1]} : vector<8x128xf32> to vector<7x128xf32>
    %471 = vector.extract_strided_slice %467 {offsets = [0, 0], sizes = [1, 128], strides = [1, 1]} : vector<8x128xf32> to vector<1x128xf32>
    %472 = tpu.concatenate %470, %471 in 0 : vector<7x128xf32>, vector<1x128xf32> -> vector<8x128xf32>
    %473 = vector.extract_strided_slice %469 {offsets = [1, 0], sizes = [7, 128], strides = [1, 1]} : vector<8x128xf32> to vector<7x128xf32>
    %474 = vector.extract_strided_slice %469 {offsets = [0, 0], sizes = [1, 128], strides = [1, 1]} : vector<8x128xf32> to vector<1x128xf32>
    %475 = tpu.concatenate %473, %474 in 0 : vector<7x128xf32>, vector<1x128xf32> -> vector<8x128xf32>
    %c0_613 = arith.constant 0 : index
    %c0_614 = arith.constant 0 : index
    %c0_615 = arith.constant 0 : index
    %c2_616 = arith.constant 2 : index
    %c2_617 = arith.constant 2 : index
    %c0_618 = arith.constant 0 : index
    %c0_619 = arith.constant 0 : index
    %476 = vector.load %arg2[%c0_613, %c0_614, %c0_615, %c2_616, %c2_617, %c0_618, %c0_619] : memref<1x1x2x3x3x8x128xf32, #tpu.memory_space<vmem>>, vector<1x1x1x1x1x8x128xf32>
    %477 = vector.shape_cast %476 : vector<1x1x1x1x1x8x128xf32> to vector<8x128xf32>
    %c0_620 = arith.constant 0 : index
    %c0_621 = arith.constant 0 : index
    %c1_622 = arith.constant 1 : index
    %c2_623 = arith.constant 2 : index
    %c2_624 = arith.constant 2 : index
    %c0_625 = arith.constant 0 : index
    %c0_626 = arith.constant 0 : index
    %478 = vector.load %arg2[%c0_620, %c0_621, %c1_622, %c2_623, %c2_624, %c0_625, %c0_626] : memref<1x1x2x3x3x8x128xf32, #tpu.memory_space<vmem>>, vector<1x1x1x1x1x8x128xf32>
    %479 = vector.shape_cast %478 : vector<1x1x1x1x1x8x128xf32> to vector<8x128xf32>
    %480 = vector.extract_strided_slice %477 {offsets = [1, 0], sizes = [7, 128], strides = [1, 1]} : vector<8x128xf32> to vector<7x128xf32>
    %481 = vector.extract_strided_slice %477 {offsets = [0, 0], sizes = [1, 128], strides = [1, 1]} : vector<8x128xf32> to vector<1x128xf32>
    %482 = tpu.concatenate %480, %481 in 0 : vector<7x128xf32>, vector<1x128xf32> -> vector<8x128xf32>
    %483 = vector.extract_strided_slice %479 {offsets = [1, 0], sizes = [7, 128], strides = [1, 1]} : vector<8x128xf32> to vector<7x128xf32>
    %484 = vector.extract_strided_slice %479 {offsets = [0, 0], sizes = [1, 128], strides = [1, 1]} : vector<8x128xf32> to vector<1x128xf32>
    %485 = tpu.concatenate %483, %484 in 0 : vector<7x128xf32>, vector<1x128xf32> -> vector<8x128xf32>
    %c0_627 = arith.constant 0 : index
    %c0_628 = arith.constant 0 : index
    %c0_629 = arith.constant 0 : index
    %c0_630 = arith.constant 0 : index
    %c0_631 = arith.constant 0 : index
    %c0_632 = arith.constant 0 : index
    %c0_633 = arith.constant 0 : index
    %486 = vector.load %arg1[%c0_627, %c0_628, %c0_629, %c0_630, %c0_631, %c0_632, %c0_633] : memref<1x1x2x3x3x8x128xf32, #tpu.memory_space<vmem>>, vector<1x1x1x1x1x8x128xf32>
    %487 = vector.shape_cast %486 : vector<1x1x1x1x1x8x128xf32> to vector<8x128xf32>
    %c0_634 = arith.constant 0 : index
    %c0_635 = arith.constant 0 : index
    %c1_636 = arith.constant 1 : index
    %c0_637 = arith.constant 0 : index
    %c0_638 = arith.constant 0 : index
    %c0_639 = arith.constant 0 : index
    %c0_640 = arith.constant 0 : index
    %488 = vector.load %arg1[%c0_634, %c0_635, %c1_636, %c0_637, %c0_638, %c0_639, %c0_640] : memref<1x1x2x3x3x8x128xf32, #tpu.memory_space<vmem>>, vector<1x1x1x1x1x8x128xf32>
    %489 = vector.shape_cast %488 : vector<1x1x1x1x1x8x128xf32> to vector<8x128xf32>
    %c0_641 = arith.constant 0 : index
    %c0_642 = arith.constant 0 : index
    %c0_643 = arith.constant 0 : index
    %c0_644 = arith.constant 0 : index
    %c1_645 = arith.constant 1 : index
    %c0_646 = arith.constant 0 : index
    %c0_647 = arith.constant 0 : index
    %490 = vector.load %arg1[%c0_641, %c0_642, %c0_643, %c0_644, %c1_645, %c0_646, %c0_647] : memref<1x1x2x3x3x8x128xf32, #tpu.memory_space<vmem>>, vector<1x1x1x1x1x8x128xf32>
    %491 = vector.shape_cast %490 : vector<1x1x1x1x1x8x128xf32> to vector<8x128xf32>
    %c0_648 = arith.constant 0 : index
    %c0_649 = arith.constant 0 : index
    %c1_650 = arith.constant 1 : index
    %c0_651 = arith.constant 0 : index
    %c1_652 = arith.constant 1 : index
    %c0_653 = arith.constant 0 : index
    %c0_654 = arith.constant 0 : index
    %492 = vector.load %arg1[%c0_648, %c0_649, %c1_650, %c0_651, %c1_652, %c0_653, %c0_654] : memref<1x1x2x3x3x8x128xf32, #tpu.memory_space<vmem>>, vector<1x1x1x1x1x8x128xf32>
    %493 = vector.shape_cast %492 : vector<1x1x1x1x1x8x128xf32> to vector<8x128xf32>
    %c0_655 = arith.constant 0 : index
    %c0_656 = arith.constant 0 : index
    %c0_657 = arith.constant 0 : index
    %c0_658 = arith.constant 0 : index
    %c2_659 = arith.constant 2 : index
    %c0_660 = arith.constant 0 : index
    %c0_661 = arith.constant 0 : index
    %494 = vector.load %arg1[%c0_655, %c0_656, %c0_657, %c0_658, %c2_659, %c0_660, %c0_661] : memref<1x1x2x3x3x8x128xf32, #tpu.memory_space<vmem>>, vector<1x1x1x1x1x8x128xf32>
    %495 = vector.shape_cast %494 : vector<1x1x1x1x1x8x128xf32> to vector<8x128xf32>
    %c0_662 = arith.constant 0 : index
    %c0_663 = arith.constant 0 : index
    %c1_664 = arith.constant 1 : index
    %c0_665 = arith.constant 0 : index
    %c2_666 = arith.constant 2 : index
    %c0_667 = arith.constant 0 : index
    %c0_668 = arith.constant 0 : index
    %496 = vector.load %arg1[%c0_662, %c0_663, %c1_664, %c0_665, %c2_666, %c0_667, %c0_668] : memref<1x1x2x3x3x8x128xf32, #tpu.memory_space<vmem>>, vector<1x1x1x1x1x8x128xf32>
    %497 = vector.shape_cast %496 : vector<1x1x1x1x1x8x128xf32> to vector<8x128xf32>
    %498 = arith.mulf %487, %402 : vector<8x128xf32>
    %499 = arith.mulf %489, %405 : vector<8x128xf32>
    %500 = arith.subf %498, %499 : vector<8x128xf32>
    %501 = arith.mulf %487, %405 : vector<8x128xf32>
    %502 = arith.mulf %489, %402 : vector<8x128xf32>
    %503 = arith.addf %501, %502 : vector<8x128xf32>
    %504 = arith.mulf %491, %432 : vector<8x128xf32>
    %505 = arith.mulf %493, %435 : vector<8x128xf32>
    %506 = arith.subf %504, %505 : vector<8x128xf32>
    %507 = arith.mulf %491, %435 : vector<8x128xf32>
    %508 = arith.mulf %493, %432 : vector<8x128xf32>
    %509 = arith.addf %507, %508 : vector<8x128xf32>
    %510 = arith.addf %500, %506 : vector<8x128xf32>
    %511 = arith.addf %503, %509 : vector<8x128xf32>
    %512 = arith.mulf %495, %462 : vector<8x128xf32>
    %513 = arith.mulf %497, %465 : vector<8x128xf32>
    %514 = arith.subf %512, %513 : vector<8x128xf32>
    %515 = arith.mulf %495, %465 : vector<8x128xf32>
    %516 = arith.mulf %497, %462 : vector<8x128xf32>
    %517 = arith.addf %515, %516 : vector<8x128xf32>
    %518 = arith.addf %510, %514 : vector<8x128xf32>
    %519 = arith.addf %511, %517 : vector<8x128xf32>
    %520 = arith.mulf %487, %412 : vector<8x128xf32>
    %521 = arith.mulf %489, %415 : vector<8x128xf32>
    %522 = arith.subf %520, %521 : vector<8x128xf32>
    %523 = arith.mulf %487, %415 : vector<8x128xf32>
    %524 = arith.mulf %489, %412 : vector<8x128xf32>
    %525 = arith.addf %523, %524 : vector<8x128xf32>
    %526 = arith.mulf %491, %442 : vector<8x128xf32>
    %527 = arith.mulf %493, %445 : vector<8x128xf32>
    %528 = arith.subf %526, %527 : vector<8x128xf32>
    %529 = arith.mulf %491, %445 : vector<8x128xf32>
    %530 = arith.mulf %493, %442 : vector<8x128xf32>
    %531 = arith.addf %529, %530 : vector<8x128xf32>
    %532 = arith.addf %522, %528 : vector<8x128xf32>
    %533 = arith.addf %525, %531 : vector<8x128xf32>
    %534 = arith.mulf %495, %472 : vector<8x128xf32>
    %535 = arith.mulf %497, %475 : vector<8x128xf32>
    %536 = arith.subf %534, %535 : vector<8x128xf32>
    %537 = arith.mulf %495, %475 : vector<8x128xf32>
    %538 = arith.mulf %497, %472 : vector<8x128xf32>
    %539 = arith.addf %537, %538 : vector<8x128xf32>
    %540 = arith.addf %532, %536 : vector<8x128xf32>
    %541 = arith.addf %533, %539 : vector<8x128xf32>
    %542 = arith.mulf %487, %422 : vector<8x128xf32>
    %543 = arith.mulf %489, %425 : vector<8x128xf32>
    %544 = arith.subf %542, %543 : vector<8x128xf32>
    %545 = arith.mulf %487, %425 : vector<8x128xf32>
    %546 = arith.mulf %489, %422 : vector<8x128xf32>
    %547 = arith.addf %545, %546 : vector<8x128xf32>
    %548 = arith.mulf %491, %452 : vector<8x128xf32>
    %549 = arith.mulf %493, %455 : vector<8x128xf32>
    %550 = arith.subf %548, %549 : vector<8x128xf32>
    %551 = arith.mulf %491, %455 : vector<8x128xf32>
    %552 = arith.mulf %493, %452 : vector<8x128xf32>
    %553 = arith.addf %551, %552 : vector<8x128xf32>
    %554 = arith.addf %544, %550 : vector<8x128xf32>
    %555 = arith.addf %547, %553 : vector<8x128xf32>
    %556 = arith.mulf %495, %482 : vector<8x128xf32>
    %557 = arith.mulf %497, %485 : vector<8x128xf32>
    %558 = arith.subf %556, %557 : vector<8x128xf32>
    %559 = arith.mulf %495, %485 : vector<8x128xf32>
    %560 = arith.mulf %497, %482 : vector<8x128xf32>
    %561 = arith.addf %559, %560 : vector<8x128xf32>
    %562 = arith.addf %554, %558 : vector<8x128xf32>
    %563 = arith.addf %555, %561 : vector<8x128xf32>
    %564 = arith.mulf %518, %122 : vector<8x128xf32>
    %565 = arith.mulf %519, %123 : vector<8x128xf32>
    %566 = arith.addf %564, %565 : vector<8x128xf32>
    %567 = arith.mulf %519, %122 : vector<8x128xf32>
    %568 = arith.mulf %518, %123 : vector<8x128xf32>
    %569 = arith.subf %567, %568 : vector<8x128xf32>
    %570 = arith.mulf %540, %156 : vector<8x128xf32>
    %571 = arith.mulf %541, %157 : vector<8x128xf32>
    %572 = arith.addf %570, %571 : vector<8x128xf32>
    %573 = arith.mulf %541, %156 : vector<8x128xf32>
    %574 = arith.mulf %540, %157 : vector<8x128xf32>
    %575 = arith.subf %573, %574 : vector<8x128xf32>
    %576 = arith.addf %566, %572 : vector<8x128xf32>
    %577 = arith.addf %569, %575 : vector<8x128xf32>
    %578 = arith.mulf %562, %190 : vector<8x128xf32>
    %579 = arith.mulf %563, %191 : vector<8x128xf32>
    %580 = arith.addf %578, %579 : vector<8x128xf32>
    %581 = arith.mulf %563, %190 : vector<8x128xf32>
    %582 = arith.mulf %562, %191 : vector<8x128xf32>
    %583 = arith.subf %581, %582 : vector<8x128xf32>
    %584 = arith.addf %576, %580 : vector<8x128xf32>
    %585 = arith.addf %577, %583 : vector<8x128xf32>
    %c0_669 = arith.constant 0 : index
    %c0_670 = arith.constant 0 : index
    %c0_671 = arith.constant 0 : index
    %c0_672 = arith.constant 0 : index
    %c0_673 = arith.constant 0 : index
    %c0_674 = arith.constant 0 : index
    %586 = vector.load %arg3[%c0_669, %c0_670, %c0_671, %c0_672, %c0_673, %c0_674] : memref<1x2x3x3x8x128xf32, #tpu.memory_space<vmem>>, vector<1x1x1x1x8x128xf32>
    %587 = vector.shape_cast %586 : vector<1x1x1x1x8x128xf32> to vector<8x128xf32>
    %588 = vector.shape_cast %584 : vector<8x128xf32> to vector<1x1x1x1x8x128xf32>
    tpu.vector_store %arg3[%c0_669, %c0_670, %c0_671, %c0_672, %c0_673, %c0_674], %588 {strides = array<i32>} : memref<1x2x3x3x8x128xf32, #tpu.memory_space<vmem>>, vector<1x1x1x1x8x128xf32>,
    %c0_675 = arith.constant 0 : index
    %c1_676 = arith.constant 1 : index
    %c0_677 = arith.constant 0 : index
    %c0_678 = arith.constant 0 : index
    %c0_679 = arith.constant 0 : index
    %c0_680 = arith.constant 0 : index
    %589 = vector.load %arg3[%c0_675, %c1_676, %c0_677, %c0_678, %c0_679, %c0_680] : memref<1x2x3x3x8x128xf32, #tpu.memory_space<vmem>>, vector<1x1x1x1x8x128xf32>
    %590 = vector.shape_cast %589 : vector<1x1x1x1x8x128xf32> to vector<8x128xf32>
    %591 = vector.shape_cast %585 : vector<8x128xf32> to vector<1x1x1x1x8x128xf32>
    tpu.vector_store %arg3[%c0_675, %c1_676, %c0_677, %c0_678, %c0_679, %c0_680], %591 {strides = array<i32>} : memref<1x2x3x3x8x128xf32, #tpu.memory_space<vmem>>, vector<1x1x1x1x8x128xf32>,
    %592 = arith.mulf %518, %224 : vector<8x128xf32>
    %593 = arith.mulf %519, %225 : vector<8x128xf32>
    %594 = arith.addf %592, %593 : vector<8x128xf32>
    %595 = arith.mulf %519, %224 : vector<8x128xf32>
    %596 = arith.mulf %518, %225 : vector<8x128xf32>
    %597 = arith.subf %595, %596 : vector<8x128xf32>
    %598 = arith.mulf %540, %258 : vector<8x128xf32>
    %599 = arith.mulf %541, %259 : vector<8x128xf32>
    %600 = arith.addf %598, %599 : vector<8x128xf32>
    %601 = arith.mulf %541, %258 : vector<8x128xf32>
    %602 = arith.mulf %540, %259 : vector<8x128xf32>
    %603 = arith.subf %601, %602 : vector<8x128xf32>
    %604 = arith.addf %594, %600 : vector<8x128xf32>
    %605 = arith.addf %597, %603 : vector<8x128xf32>
    %606 = arith.mulf %562, %292 : vector<8x128xf32>
    %607 = arith.mulf %563, %293 : vector<8x128xf32>
    %608 = arith.addf %606, %607 : vector<8x128xf32>
    %609 = arith.mulf %563, %292 : vector<8x128xf32>
    %610 = arith.mulf %562, %293 : vector<8x128xf32>
    %611 = arith.subf %609, %610 : vector<8x128xf32>
    %612 = arith.addf %604, %608 : vector<8x128xf32>
    %613 = arith.addf %605, %611 : vector<8x128xf32>
    %c0_681 = arith.constant 0 : index
    %c0_682 = arith.constant 0 : index
    %c0_683 = arith.constant 0 : index
    %c1_684 = arith.constant 1 : index
    %c0_685 = arith.constant 0 : index
    %c0_686 = arith.constant 0 : index
    %614 = vector.load %arg3[%c0_681, %c0_682, %c0_683, %c1_684, %c0_685, %c0_686] : memref<1x2x3x3x8x128xf32, #tpu.memory_space<vmem>>, vector<1x1x1x1x8x128xf32>
    %615 = vector.shape_cast %614 : vector<1x1x1x1x8x128xf32> to vector<8x128xf32>
    %616 = vector.shape_cast %612 : vector<8x128xf32> to vector<1x1x1x1x8x128xf32>
    tpu.vector_store %arg3[%c0_681, %c0_682, %c0_683, %c1_684, %c0_685, %c0_686], %616 {strides = array<i32>} : memref<1x2x3x3x8x128xf32, #tpu.memory_space<vmem>>, vector<1x1x1x1x8x128xf32>,
    %c0_687 = arith.constant 0 : index
    %c1_688 = arith.constant 1 : index
    %c0_689 = arith.constant 0 : index
    %c1_690 = arith.constant 1 : index
    %c0_691 = arith.constant 0 : index
    %c0_692 = arith.constant 0 : index
    %617 = vector.load %arg3[%c0_687, %c1_688, %c0_689, %c1_690, %c0_691, %c0_692] : memref<1x2x3x3x8x128xf32, #tpu.memory_space<vmem>>, vector<1x1x1x1x8x128xf32>
    %618 = vector.shape_cast %617 : vector<1x1x1x1x8x128xf32> to vector<8x128xf32>
    %619 = vector.shape_cast %613 : vector<8x128xf32> to vector<1x1x1x1x8x128xf32>
    tpu.vector_store %arg3[%c0_687, %c1_688, %c0_689, %c1_690, %c0_691, %c0_692], %619 {strides = array<i32>} : memref<1x2x3x3x8x128xf32, #tpu.memory_space<vmem>>, vector<1x1x1x1x8x128xf32>,
    %620 = arith.mulf %518, %326 : vector<8x128xf32>
    %621 = arith.mulf %519, %327 : vector<8x128xf32>
    %622 = arith.addf %620, %621 : vector<8x128xf32>
    %623 = arith.mulf %519, %326 : vector<8x128xf32>
    %624 = arith.mulf %518, %327 : vector<8x128xf32>
    %625 = arith.subf %623, %624 : vector<8x128xf32>
    %626 = arith.mulf %540, %360 : vector<8x128xf32>
    %627 = arith.mulf %541, %361 : vector<8x128xf32>
    %628 = arith.addf %626, %627 : vector<8x128xf32>
    %629 = arith.mulf %541, %360 : vector<8x128xf32>
    %630 = arith.mulf %540, %361 : vector<8x128xf32>
    %631 = arith.subf %629, %630 : vector<8x128xf32>
    %632 = arith.addf %622, %628 : vector<8x128xf32>
    %633 = arith.addf %625, %631 : vector<8x128xf32>
    %634 = arith.mulf %562, %394 : vector<8x128xf32>
    %635 = arith.mulf %563, %395 : vector<8x128xf32>
    %636 = arith.addf %634, %635 : vector<8x128xf32>
    %637 = arith.mulf %563, %394 : vector<8x128xf32>
    %638 = arith.mulf %562, %395 : vector<8x128xf32>
    %639 = arith.subf %637, %638 : vector<8x128xf32>
    %640 = arith.addf %632, %636 : vector<8x128xf32>
    %641 = arith.addf %633, %639 : vector<8x128xf32>
    %c0_693 = arith.constant 0 : index
    %c0_694 = arith.constant 0 : index
    %c0_695 = arith.constant 0 : index
    %c2_696 = arith.constant 2 : index
    %c0_697 = arith.constant 0 : index
    %c0_698 = arith.constant 0 : index
    %642 = vector.load %arg3[%c0_693, %c0_694, %c0_695, %c2_696, %c0_697, %c0_698] : memref<1x2x3x3x8x128xf32, #tpu.memory_space<vmem>>, vector<1x1x1x1x8x128xf32>
    %643 = vector.shape_cast %642 : vector<1x1x1x1x8x128xf32> to vector<8x128xf32>
    %644 = vector.shape_cast %640 : vector<8x128xf32> to vector<1x1x1x1x8x128xf32>
    tpu.vector_store %arg3[%c0_693, %c0_694, %c0_695, %c2_696, %c0_697, %c0_698], %644 {strides = array<i32>} : memref<1x2x3x3x8x128xf32, #tpu.memory_space<vmem>>, vector<1x1x1x1x8x128xf32>,
    %c0_699 = arith.constant 0 : index
    %c1_700 = arith.constant 1 : index
    %c0_701 = arith.constant 0 : index
    %c2_702 = arith.constant 2 : index
    %c0_703 = arith.constant 0 : index
    %c0_704 = arith.constant 0 : index
    %645 = vector.load %arg3[%c0_699, %c1_700, %c0_701, %c2_702, %c0_703, %c0_704] : memref<1x2x3x3x8x128xf32, #tpu.memory_space<vmem>>, vector<1x1x1x1x8x128xf32>
    %646 = vector.shape_cast %645 : vector<1x1x1x1x8x128xf32> to vector<8x128xf32>
    %647 = vector.shape_cast %641 : vector<8x128xf32> to vector<1x1x1x1x8x128xf32>
    tpu.vector_store %arg3[%c0_699, %c1_700, %c0_701, %c2_702, %c0_703, %c0_704], %647 {strides = array<i32>} : memref<1x2x3x3x8x128xf32, #tpu.memory_space<vmem>>, vector<1x1x1x1x8x128xf32>,
    %c0_705 = arith.constant 0 : index
    %c0_706 = arith.constant 0 : index
    %c0_707 = arith.constant 0 : index
    %c1_708 = arith.constant 1 : index
    %c0_709 = arith.constant 0 : index
    %c0_710 = arith.constant 0 : index
    %c0_711 = arith.constant 0 : index
    %648 = vector.load %arg1[%c0_705, %c0_706, %c0_707, %c1_708, %c0_709, %c0_710, %c0_711] : memref<1x1x2x3x3x8x128xf32, #tpu.memory_space<vmem>>, vector<1x1x1x1x1x8x128xf32>
    %649 = vector.shape_cast %648 : vector<1x1x1x1x1x8x128xf32> to vector<8x128xf32>
    %c0_712 = arith.constant 0 : index
    %c0_713 = arith.constant 0 : index
    %c1_714 = arith.constant 1 : index
    %c1_715 = arith.constant 1 : index
    %c0_716 = arith.constant 0 : index
    %c0_717 = arith.constant 0 : index
    %c0_718 = arith.constant 0 : index
    %650 = vector.load %arg1[%c0_712, %c0_713, %c1_714, %c1_715, %c0_716, %c0_717, %c0_718] : memref<1x1x2x3x3x8x128xf32, #tpu.memory_space<vmem>>, vector<1x1x1x1x1x8x128xf32>
    %651 = vector.shape_cast %650 : vector<1x1x1x1x1x8x128xf32> to vector<8x128xf32>
    %c0_719 = arith.constant 0 : index
    %c0_720 = arith.constant 0 : index
    %c0_721 = arith.constant 0 : index
    %c1_722 = arith.constant 1 : index
    %c1_723 = arith.constant 1 : index
    %c0_724 = arith.constant 0 : index
    %c0_725 = arith.constant 0 : index
    %652 = vector.load %arg1[%c0_719, %c0_720, %c0_721, %c1_722, %c1_723, %c0_724, %c0_725] : memref<1x1x2x3x3x8x128xf32, #tpu.memory_space<vmem>>, vector<1x1x1x1x1x8x128xf32>
    %653 = vector.shape_cast %652 : vector<1x1x1x1x1x8x128xf32> to vector<8x128xf32>
    %c0_726 = arith.constant 0 : index
    %c0_727 = arith.constant 0 : index
    %c1_728 = arith.constant 1 : index
    %c1_729 = arith.constant 1 : index
    %c1_730 = arith.constant 1 : index
    %c0_731 = arith.constant 0 : index
    %c0_732 = arith.constant 0 : index
    %654 = vector.load %arg1[%c0_726, %c0_727, %c1_728, %c1_729, %c1_730, %c0_731, %c0_732] : memref<1x1x2x3x3x8x128xf32, #tpu.memory_space<vmem>>, vector<1x1x1x1x1x8x128xf32>
    %655 = vector.shape_cast %654 : vector<1x1x1x1x1x8x128xf32> to vector<8x128xf32>
    %c0_733 = arith.constant 0 : index
    %c0_734 = arith.constant 0 : index
    %c0_735 = arith.constant 0 : index
    %c1_736 = arith.constant 1 : index
    %c2_737 = arith.constant 2 : index
    %c0_738 = arith.constant 0 : index
    %c0_739 = arith.constant 0 : index
    %656 = vector.load %arg1[%c0_733, %c0_734, %c0_735, %c1_736, %c2_737, %c0_738, %c0_739] : memref<1x1x2x3x3x8x128xf32, #tpu.memory_space<vmem>>, vector<1x1x1x1x1x8x128xf32>
    %657 = vector.shape_cast %656 : vector<1x1x1x1x1x8x128xf32> to vector<8x128xf32>
    %c0_740 = arith.constant 0 : index
    %c0_741 = arith.constant 0 : index
    %c1_742 = arith.constant 1 : index
    %c1_743 = arith.constant 1 : index
    %c2_744 = arith.constant 2 : index
    %c0_745 = arith.constant 0 : index
    %c0_746 = arith.constant 0 : index
    %658 = vector.load %arg1[%c0_740, %c0_741, %c1_742, %c1_743, %c2_744, %c0_745, %c0_746] : memref<1x1x2x3x3x8x128xf32, #tpu.memory_space<vmem>>, vector<1x1x1x1x1x8x128xf32>
    %659 = vector.shape_cast %658 : vector<1x1x1x1x1x8x128xf32> to vector<8x128xf32>
    %660 = arith.mulf %649, %402 : vector<8x128xf32>
    %661 = arith.mulf %651, %405 : vector<8x128xf32>
    %662 = arith.subf %660, %661 : vector<8x128xf32>
    %663 = arith.mulf %649, %405 : vector<8x128xf32>
    %664 = arith.mulf %651, %402 : vector<8x128xf32>
    %665 = arith.addf %663, %664 : vector<8x128xf32>
    %666 = arith.mulf %653, %432 : vector<8x128xf32>
    %667 = arith.mulf %655, %435 : vector<8x128xf32>
    %668 = arith.subf %666, %667 : vector<8x128xf32>
    %669 = arith.mulf %653, %435 : vector<8x128xf32>
    %670 = arith.mulf %655, %432 : vector<8x128xf32>
    %671 = arith.addf %669, %670 : vector<8x128xf32>
    %672 = arith.addf %662, %668 : vector<8x128xf32>
    %673 = arith.addf %665, %671 : vector<8x128xf32>
    %674 = arith.mulf %657, %462 : vector<8x128xf32>
    %675 = arith.mulf %659, %465 : vector<8x128xf32>
    %676 = arith.subf %674, %675 : vector<8x128xf32>
    %677 = arith.mulf %657, %465 : vector<8x128xf32>
    %678 = arith.mulf %659, %462 : vector<8x128xf32>
    %679 = arith.addf %677, %678 : vector<8x128xf32>
    %680 = arith.addf %672, %676 : vector<8x128xf32>
    %681 = arith.addf %673, %679 : vector<8x128xf32>
    %682 = arith.mulf %649, %412 : vector<8x128xf32>
    %683 = arith.mulf %651, %415 : vector<8x128xf32>
    %684 = arith.subf %682, %683 : vector<8x128xf32>
    %685 = arith.mulf %649, %415 : vector<8x128xf32>
    %686 = arith.mulf %651, %412 : vector<8x128xf32>
    %687 = arith.addf %685, %686 : vector<8x128xf32>
    %688 = arith.mulf %653, %442 : vector<8x128xf32>
    %689 = arith.mulf %655, %445 : vector<8x128xf32>
    %690 = arith.subf %688, %689 : vector<8x128xf32>
    %691 = arith.mulf %653, %445 : vector<8x128xf32>
    %692 = arith.mulf %655, %442 : vector<8x128xf32>
    %693 = arith.addf %691, %692 : vector<8x128xf32>
    %694 = arith.addf %684, %690 : vector<8x128xf32>
    %695 = arith.addf %687, %693 : vector<8x128xf32>
    %696 = arith.mulf %657, %472 : vector<8x128xf32>
    %697 = arith.mulf %659, %475 : vector<8x128xf32>
    %698 = arith.subf %696, %697 : vector<8x128xf32>
    %699 = arith.mulf %657, %475 : vector<8x128xf32>
    %700 = arith.mulf %659, %472 : vector<8x128xf32>
    %701 = arith.addf %699, %700 : vector<8x128xf32>
    %702 = arith.addf %694, %698 : vector<8x128xf32>
    %703 = arith.addf %695, %701 : vector<8x128xf32>
    %704 = arith.mulf %649, %422 : vector<8x128xf32>
    %705 = arith.mulf %651, %425 : vector<8x128xf32>
    %706 = arith.subf %704, %705 : vector<8x128xf32>
    %707 = arith.mulf %649, %425 : vector<8x128xf32>
    %708 = arith.mulf %651, %422 : vector<8x128xf32>
    %709 = arith.addf %707, %708 : vector<8x128xf32>
    %710 = arith.mulf %653, %452 : vector<8x128xf32>
    %711 = arith.mulf %655, %455 : vector<8x128xf32>
    %712 = arith.subf %710, %711 : vector<8x128xf32>
    %713 = arith.mulf %653, %455 : vector<8x128xf32>
    %714 = arith.mulf %655, %452 : vector<8x128xf32>
    %715 = arith.addf %713, %714 : vector<8x128xf32>
    %716 = arith.addf %706, %712 : vector<8x128xf32>
    %717 = arith.addf %709, %715 : vector<8x128xf32>
    %718 = arith.mulf %657, %482 : vector<8x128xf32>
    %719 = arith.mulf %659, %485 : vector<8x128xf32>
    %720 = arith.subf %718, %719 : vector<8x128xf32>
    %721 = arith.mulf %657, %485 : vector<8x128xf32>
    %722 = arith.mulf %659, %482 : vector<8x128xf32>
    %723 = arith.addf %721, %722 : vector<8x128xf32>
    %724 = arith.addf %716, %720 : vector<8x128xf32>
    %725 = arith.addf %717, %723 : vector<8x128xf32>
    %726 = arith.mulf %680, %122 : vector<8x128xf32>
    %727 = arith.mulf %681, %123 : vector<8x128xf32>
    %728 = arith.addf %726, %727 : vector<8x128xf32>
    %729 = arith.mulf %681, %122 : vector<8x128xf32>
    %730 = arith.mulf %680, %123 : vector<8x128xf32>
    %731 = arith.subf %729, %730 : vector<8x128xf32>
    %732 = arith.mulf %702, %156 : vector<8x128xf32>
    %733 = arith.mulf %703, %157 : vector<8x128xf32>
    %734 = arith.addf %732, %733 : vector<8x128xf32>
    %735 = arith.mulf %703, %156 : vector<8x128xf32>
    %736 = arith.mulf %702, %157 : vector<8x128xf32>
    %737 = arith.subf %735, %736 : vector<8x128xf32>
    %738 = arith.addf %728, %734 : vector<8x128xf32>
    %739 = arith.addf %731, %737 : vector<8x128xf32>
    %740 = arith.mulf %724, %190 : vector<8x128xf32>
    %741 = arith.mulf %725, %191 : vector<8x128xf32>
    %742 = arith.addf %740, %741 : vector<8x128xf32>
    %743 = arith.mulf %725, %190 : vector<8x128xf32>
    %744 = arith.mulf %724, %191 : vector<8x128xf32>
    %745 = arith.subf %743, %744 : vector<8x128xf32>
    %746 = arith.addf %738, %742 : vector<8x128xf32>
    %747 = arith.addf %739, %745 : vector<8x128xf32>
    %c0_747 = arith.constant 0 : index
    %c0_748 = arith.constant 0 : index
    %c1_749 = arith.constant 1 : index
    %c0_750 = arith.constant 0 : index
    %c0_751 = arith.constant 0 : index
    %c0_752 = arith.constant 0 : index
    %748 = vector.load %arg3[%c0_747, %c0_748, %c1_749, %c0_750, %c0_751, %c0_752] : memref<1x2x3x3x8x128xf32, #tpu.memory_space<vmem>>, vector<1x1x1x1x8x128xf32>
    %749 = vector.shape_cast %748 : vector<1x1x1x1x8x128xf32> to vector<8x128xf32>
    %750 = vector.shape_cast %746 : vector<8x128xf32> to vector<1x1x1x1x8x128xf32>
    tpu.vector_store %arg3[%c0_747, %c0_748, %c1_749, %c0_750, %c0_751, %c0_752], %750 {strides = array<i32>} : memref<1x2x3x3x8x128xf32, #tpu.memory_space<vmem>>, vector<1x1x1x1x8x128xf32>,
    %c0_753 = arith.constant 0 : index
    %c1_754 = arith.constant 1 : index
    %c1_755 = arith.constant 1 : index
    %c0_756 = arith.constant 0 : index
    %c0_757 = arith.constant 0 : index
    %c0_758 = arith.constant 0 : index
    %751 = vector.load %arg3[%c0_753, %c1_754, %c1_755, %c0_756, %c0_757, %c0_758] : memref<1x2x3x3x8x128xf32, #tpu.memory_space<vmem>>, vector<1x1x1x1x8x128xf32>
    %752 = vector.shape_cast %751 : vector<1x1x1x1x8x128xf32> to vector<8x128xf32>
    %753 = vector.shape_cast %747 : vector<8x128xf32> to vector<1x1x1x1x8x128xf32>
    tpu.vector_store %arg3[%c0_753, %c1_754, %c1_755, %c0_756, %c0_757, %c0_758], %753 {strides = array<i32>} : memref<1x2x3x3x8x128xf32, #tpu.memory_space<vmem>>, vector<1x1x1x1x8x128xf32>,
    %754 = arith.mulf %680, %224 : vector<8x128xf32>
    %755 = arith.mulf %681, %225 : vector<8x128xf32>
    %756 = arith.addf %754, %755 : vector<8x128xf32>
    %757 = arith.mulf %681, %224 : vector<8x128xf32>
    %758 = arith.mulf %680, %225 : vector<8x128xf32>
    %759 = arith.subf %757, %758 : vector<8x128xf32>
    %760 = arith.mulf %702, %258 : vector<8x128xf32>
    %761 = arith.mulf %703, %259 : vector<8x128xf32>
    %762 = arith.addf %760, %761 : vector<8x128xf32>
    %763 = arith.mulf %703, %258 : vector<8x128xf32>
    %764 = arith.mulf %702, %259 : vector<8x128xf32>
    %765 = arith.subf %763, %764 : vector<8x128xf32>
    %766 = arith.addf %756, %762 : vector<8x128xf32>
    %767 = arith.addf %759, %765 : vector<8x128xf32>
    %768 = arith.mulf %724, %292 : vector<8x128xf32>
    %769 = arith.mulf %725, %293 : vector<8x128xf32>
    %770 = arith.addf %768, %769 : vector<8x128xf32>
    %771 = arith.mulf %725, %292 : vector<8x128xf32>
    %772 = arith.mulf %724, %293 : vector<8x128xf32>
    %773 = arith.subf %771, %772 : vector<8x128xf32>
    %774 = arith.addf %766, %770 : vector<8x128xf32>
    %775 = arith.addf %767, %773 : vector<8x128xf32>
    %c0_759 = arith.constant 0 : index
    %c0_760 = arith.constant 0 : index
    %c1_761 = arith.constant 1 : index
    %c1_762 = arith.constant 1 : index
    %c0_763 = arith.constant 0 : index
    %c0_764 = arith.constant 0 : index
    %776 = vector.load %arg3[%c0_759, %c0_760, %c1_761, %c1_762, %c0_763, %c0_764] : memref<1x2x3x3x8x128xf32, #tpu.memory_space<vmem>>, vector<1x1x1x1x8x128xf32>
    %777 = vector.shape_cast %776 : vector<1x1x1x1x8x128xf32> to vector<8x128xf32>
    %778 = vector.shape_cast %774 : vector<8x128xf32> to vector<1x1x1x1x8x128xf32>
    tpu.vector_store %arg3[%c0_759, %c0_760, %c1_761, %c1_762, %c0_763, %c0_764], %778 {strides = array<i32>} : memref<1x2x3x3x8x128xf32, #tpu.memory_space<vmem>>, vector<1x1x1x1x8x128xf32>,
    %c0_765 = arith.constant 0 : index
    %c1_766 = arith.constant 1 : index
    %c1_767 = arith.constant 1 : index
    %c1_768 = arith.constant 1 : index
    %c0_769 = arith.constant 0 : index
    %c0_770 = arith.constant 0 : index
    %779 = vector.load %arg3[%c0_765, %c1_766, %c1_767, %c1_768, %c0_769, %c0_770] : memref<1x2x3x3x8x128xf32, #tpu.memory_space<vmem>>, vector<1x1x1x1x8x128xf32>
    %780 = vector.shape_cast %779 : vector<1x1x1x1x8x128xf32> to vector<8x128xf32>
    %781 = vector.shape_cast %775 : vector<8x128xf32> to vector<1x1x1x1x8x128xf32>
    tpu.vector_store %arg3[%c0_765, %c1_766, %c1_767, %c1_768, %c0_769, %c0_770], %781 {strides = array<i32>} : memref<1x2x3x3x8x128xf32, #tpu.memory_space<vmem>>, vector<1x1x1x1x8x128xf32>,
    %782 = arith.mulf %680, %326 : vector<8x128xf32>
    %783 = arith.mulf %681, %327 : vector<8x128xf32>
    %784 = arith.addf %782, %783 : vector<8x128xf32>
    %785 = arith.mulf %681, %326 : vector<8x128xf32>
    %786 = arith.mulf %680, %327 : vector<8x128xf32>
    %787 = arith.subf %785, %786 : vector<8x128xf32>
    %788 = arith.mulf %702, %360 : vector<8x128xf32>
    %789 = arith.mulf %703, %361 : vector<8x128xf32>
    %790 = arith.addf %788, %789 : vector<8x128xf32>
    %791 = arith.mulf %703, %360 : vector<8x128xf32>
    %792 = arith.mulf %702, %361 : vector<8x128xf32>
    %793 = arith.subf %791, %792 : vector<8x128xf32>
    %794 = arith.addf %784, %790 : vector<8x128xf32>
    %795 = arith.addf %787, %793 : vector<8x128xf32>
    %796 = arith.mulf %724, %394 : vector<8x128xf32>
    %797 = arith.mulf %725, %395 : vector<8x128xf32>
    %798 = arith.addf %796, %797 : vector<8x128xf32>
    %799 = arith.mulf %725, %394 : vector<8x128xf32>
    %800 = arith.mulf %724, %395 : vector<8x128xf32>
    %801 = arith.subf %799, %800 : vector<8x128xf32>
    %802 = arith.addf %794, %798 : vector<8x128xf32>
    %803 = arith.addf %795, %801 : vector<8x128xf32>
    %c0_771 = arith.constant 0 : index
    %c0_772 = arith.constant 0 : index
    %c1_773 = arith.constant 1 : index
    %c2_774 = arith.constant 2 : index
    %c0_775 = arith.constant 0 : index
    %c0_776 = arith.constant 0 : index
    %804 = vector.load %arg3[%c0_771, %c0_772, %c1_773, %c2_774, %c0_775, %c0_776] : memref<1x2x3x3x8x128xf32, #tpu.memory_space<vmem>>, vector<1x1x1x1x8x128xf32>
    %805 = vector.shape_cast %804 : vector<1x1x1x1x8x128xf32> to vector<8x128xf32>
    %806 = vector.shape_cast %802 : vector<8x128xf32> to vector<1x1x1x1x8x128xf32>
    tpu.vector_store %arg3[%c0_771, %c0_772, %c1_773, %c2_774, %c0_775, %c0_776], %806 {strides = array<i32>} : memref<1x2x3x3x8x128xf32, #tpu.memory_space<vmem>>, vector<1x1x1x1x8x128xf32>,
    %c0_777 = arith.constant 0 : index
    %c1_778 = arith.constant 1 : index
    %c1_779 = arith.constant 1 : index
    %c2_780 = arith.constant 2 : index
    %c0_781 = arith.constant 0 : index
    %c0_782 = arith.constant 0 : index
    %807 = vector.load %arg3[%c0_777, %c1_778, %c1_779, %c2_780, %c0_781, %c0_782] : memref<1x2x3x3x8x128xf32, #tpu.memory_space<vmem>>, vector<1x1x1x1x8x128xf32>
    %808 = vector.shape_cast %807 : vector<1x1x1x1x8x128xf32> to vector<8x128xf32>
    %809 = vector.shape_cast %803 : vector<8x128xf32> to vector<1x1x1x1x8x128xf32>
    tpu.vector_store %arg3[%c0_777, %c1_778, %c1_779, %c2_780, %c0_781, %c0_782], %809 {strides = array<i32>} : memref<1x2x3x3x8x128xf32, #tpu.memory_space<vmem>>, vector<1x1x1x1x8x128xf32>,
    %c0_783 = arith.constant 0 : index
    %c0_784 = arith.constant 0 : index
    %c0_785 = arith.constant 0 : index
    %c2_786 = arith.constant 2 : index
    %c0_787 = arith.constant 0 : index
    %c0_788 = arith.constant 0 : index
    %c0_789 = arith.constant 0 : index
    %810 = vector.load %arg1[%c0_783, %c0_784, %c0_785, %c2_786, %c0_787, %c0_788, %c0_789] : memref<1x1x2x3x3x8x128xf32, #tpu.memory_space<vmem>>, vector<1x1x1x1x1x8x128xf32>
    %811 = vector.shape_cast %810 : vector<1x1x1x1x1x8x128xf32> to vector<8x128xf32>
    %c0_790 = arith.constant 0 : index
    %c0_791 = arith.constant 0 : index
    %c1_792 = arith.constant 1 : index
    %c2_793 = arith.constant 2 : index
    %c0_794 = arith.constant 0 : index
    %c0_795 = arith.constant 0 : index
    %c0_796 = arith.constant 0 : index
    %812 = vector.load %arg1[%c0_790, %c0_791, %c1_792, %c2_793, %c0_794, %c0_795, %c0_796] : memref<1x1x2x3x3x8x128xf32, #tpu.memory_space<vmem>>, vector<1x1x1x1x1x8x128xf32>
    %813 = vector.shape_cast %812 : vector<1x1x1x1x1x8x128xf32> to vector<8x128xf32>
    %c0_797 = arith.constant 0 : index
    %c0_798 = arith.constant 0 : index
    %c0_799 = arith.constant 0 : index
    %c2_800 = arith.constant 2 : index
    %c1_801 = arith.constant 1 : index
    %c0_802 = arith.constant 0 : index
    %c0_803 = arith.constant 0 : index
    %814 = vector.load %arg1[%c0_797, %c0_798, %c0_799, %c2_800, %c1_801, %c0_802, %c0_803] : memref<1x1x2x3x3x8x128xf32, #tpu.memory_space<vmem>>, vector<1x1x1x1x1x8x128xf32>
    %815 = vector.shape_cast %814 : vector<1x1x1x1x1x8x128xf32> to vector<8x128xf32>
    %c0_804 = arith.constant 0 : index
    %c0_805 = arith.constant 0 : index
    %c1_806 = arith.constant 1 : index
    %c2_807 = arith.constant 2 : index
    %c1_808 = arith.constant 1 : index
    %c0_809 = arith.constant 0 : index
    %c0_810 = arith.constant 0 : index
    %816 = vector.load %arg1[%c0_804, %c0_805, %c1_806, %c2_807, %c1_808, %c0_809, %c0_810] : memref<1x1x2x3x3x8x128xf32, #tpu.memory_space<vmem>>, vector<1x1x1x1x1x8x128xf32>
    %817 = vector.shape_cast %816 : vector<1x1x1x1x1x8x128xf32> to vector<8x128xf32>
    %c0_811 = arith.constant 0 : index
    %c0_812 = arith.constant 0 : index
    %c0_813 = arith.constant 0 : index
    %c2_814 = arith.constant 2 : index
    %c2_815 = arith.constant 2 : index
    %c0_816 = arith.constant 0 : index
    %c0_817 = arith.constant 0 : index
    %818 = vector.load %arg1[%c0_811, %c0_812, %c0_813, %c2_814, %c2_815, %c0_816, %c0_817] : memref<1x1x2x3x3x8x128xf32, #tpu.memory_space<vmem>>, vector<1x1x1x1x1x8x128xf32>
    %819 = vector.shape_cast %818 : vector<1x1x1x1x1x8x128xf32> to vector<8x128xf32>
    %c0_818 = arith.constant 0 : index
    %c0_819 = arith.constant 0 : index
    %c1_820 = arith.constant 1 : index
    %c2_821 = arith.constant 2 : index
    %c2_822 = arith.constant 2 : index
    %c0_823 = arith.constant 0 : index
    %c0_824 = arith.constant 0 : index
    %820 = vector.load %arg1[%c0_818, %c0_819, %c1_820, %c2_821, %c2_822, %c0_823, %c0_824] : memref<1x1x2x3x3x8x128xf32, #tpu.memory_space<vmem>>, vector<1x1x1x1x1x8x128xf32>
    %821 = vector.shape_cast %820 : vector<1x1x1x1x1x8x128xf32> to vector<8x128xf32>
    %822 = arith.mulf %811, %402 : vector<8x128xf32>
    %823 = arith.mulf %813, %405 : vector<8x128xf32>
    %824 = arith.subf %822, %823 : vector<8x128xf32>
    %825 = arith.mulf %811, %405 : vector<8x128xf32>
    %826 = arith.mulf %813, %402 : vector<8x128xf32>
    %827 = arith.addf %825, %826 : vector<8x128xf32>
    %828 = arith.mulf %815, %432 : vector<8x128xf32>
    %829 = arith.mulf %817, %435 : vector<8x128xf32>
    %830 = arith.subf %828, %829 : vector<8x128xf32>
    %831 = arith.mulf %815, %435 : vector<8x128xf32>
    %832 = arith.mulf %817, %432 : vector<8x128xf32>
    %833 = arith.addf %831, %832 : vector<8x128xf32>
    %834 = arith.addf %824, %830 : vector<8x128xf32>
    %835 = arith.addf %827, %833 : vector<8x128xf32>
    %836 = arith.mulf %819, %462 : vector<8x128xf32>
    %837 = arith.mulf %821, %465 : vector<8x128xf32>
    %838 = arith.subf %836, %837 : vector<8x128xf32>
    %839 = arith.mulf %819, %465 : vector<8x128xf32>
    %840 = arith.mulf %821, %462 : vector<8x128xf32>
    %841 = arith.addf %839, %840 : vector<8x128xf32>
    %842 = arith.addf %834, %838 : vector<8x128xf32>
    %843 = arith.addf %835, %841 : vector<8x128xf32>
    %844 = arith.mulf %811, %412 : vector<8x128xf32>
    %845 = arith.mulf %813, %415 : vector<8x128xf32>
    %846 = arith.subf %844, %845 : vector<8x128xf32>
    %847 = arith.mulf %811, %415 : vector<8x128xf32>
    %848 = arith.mulf %813, %412 : vector<8x128xf32>
    %849 = arith.addf %847, %848 : vector<8x128xf32>
    %850 = arith.mulf %815, %442 : vector<8x128xf32>
    %851 = arith.mulf %817, %445 : vector<8x128xf32>
    %852 = arith.subf %850, %851 : vector<8x128xf32>
    %853 = arith.mulf %815, %445 : vector<8x128xf32>
    %854 = arith.mulf %817, %442 : vector<8x128xf32>
    %855 = arith.addf %853, %854 : vector<8x128xf32>
    %856 = arith.addf %846, %852 : vector<8x128xf32>
    %857 = arith.addf %849, %855 : vector<8x128xf32>
    %858 = arith.mulf %819, %472 : vector<8x128xf32>
    %859 = arith.mulf %821, %475 : vector<8x128xf32>
    %860 = arith.subf %858, %859 : vector<8x128xf32>
    %861 = arith.mulf %819, %475 : vector<8x128xf32>
    %862 = arith.mulf %821, %472 : vector<8x128xf32>
    %863 = arith.addf %861, %862 : vector<8x128xf32>
    %864 = arith.addf %856, %860 : vector<8x128xf32>
    %865 = arith.addf %857, %863 : vector<8x128xf32>
    %866 = arith.mulf %811, %422 : vector<8x128xf32>
    %867 = arith.mulf %813, %425 : vector<8x128xf32>
    %868 = arith.subf %866, %867 : vector<8x128xf32>
    %869 = arith.mulf %811, %425 : vector<8x128xf32>
    %870 = arith.mulf %813, %422 : vector<8x128xf32>
    %871 = arith.addf %869, %870 : vector<8x128xf32>
    %872 = arith.mulf %815, %452 : vector<8x128xf32>
    %873 = arith.mulf %817, %455 : vector<8x128xf32>
    %874 = arith.subf %872, %873 : vector<8x128xf32>
    %875 = arith.mulf %815, %455 : vector<8x128xf32>
    %876 = arith.mulf %817, %452 : vector<8x128xf32>
    %877 = arith.addf %875, %876 : vector<8x128xf32>
    %878 = arith.addf %868, %874 : vector<8x128xf32>
    %879 = arith.addf %871, %877 : vector<8x128xf32>
    %880 = arith.mulf %819, %482 : vector<8x128xf32>
    %881 = arith.mulf %821, %485 : vector<8x128xf32>
    %882 = arith.subf %880, %881 : vector<8x128xf32>
    %883 = arith.mulf %819, %485 : vector<8x128xf32>
    %884 = arith.mulf %821, %482 : vector<8x128xf32>
    %885 = arith.addf %883, %884 : vector<8x128xf32>
    %886 = arith.addf %878, %882 : vector<8x128xf32>
    %887 = arith.addf %879, %885 : vector<8x128xf32>
    %888 = arith.mulf %842, %122 : vector<8x128xf32>
    %889 = arith.mulf %843, %123 : vector<8x128xf32>
    %890 = arith.addf %888, %889 : vector<8x128xf32>
    %891 = arith.mulf %843, %122 : vector<8x128xf32>
    %892 = arith.mulf %842, %123 : vector<8x128xf32>
    %893 = arith.subf %891, %892 : vector<8x128xf32>
    %894 = arith.mulf %864, %156 : vector<8x128xf32>
    %895 = arith.mulf %865, %157 : vector<8x128xf32>
    %896 = arith.addf %894, %895 : vector<8x128xf32>
    %897 = arith.mulf %865, %156 : vector<8x128xf32>
    %898 = arith.mulf %864, %157 : vector<8x128xf32>
    %899 = arith.subf %897, %898 : vector<8x128xf32>
    %900 = arith.addf %890, %896 : vector<8x128xf32>
    %901 = arith.addf %893, %899 : vector<8x128xf32>
    %902 = arith.mulf %886, %190 : vector<8x128xf32>
    %903 = arith.mulf %887, %191 : vector<8x128xf32>
    %904 = arith.addf %902, %903 : vector<8x128xf32>
    %905 = arith.mulf %887, %190 : vector<8x128xf32>
    %906 = arith.mulf %886, %191 : vector<8x128xf32>
    %907 = arith.subf %905, %906 : vector<8x128xf32>
    %908 = arith.addf %900, %904 : vector<8x128xf32>
    %909 = arith.addf %901, %907 : vector<8x128xf32>
    %c0_825 = arith.constant 0 : index
    %c0_826 = arith.constant 0 : index
    %c2_827 = arith.constant 2 : index
    %c0_828 = arith.constant 0 : index
    %c0_829 = arith.constant 0 : index
    %c0_830 = arith.constant 0 : index
    %910 = vector.load %arg3[%c0_825, %c0_826, %c2_827, %c0_828, %c0_829, %c0_830] : memref<1x2x3x3x8x128xf32, #tpu.memory_space<vmem>>, vector<1x1x1x1x8x128xf32>
    %911 = vector.shape_cast %910 : vector<1x1x1x1x8x128xf32> to vector<8x128xf32>
    %912 = vector.shape_cast %908 : vector<8x128xf32> to vector<1x1x1x1x8x128xf32>
    tpu.vector_store %arg3[%c0_825, %c0_826, %c2_827, %c0_828, %c0_829, %c0_830], %912 {strides = array<i32>} : memref<1x2x3x3x8x128xf32, #tpu.memory_space<vmem>>, vector<1x1x1x1x8x128xf32>,
    %c0_831 = arith.constant 0 : index
    %c1_832 = arith.constant 1 : index
    %c2_833 = arith.constant 2 : index
    %c0_834 = arith.constant 0 : index
    %c0_835 = arith.constant 0 : index
    %c0_836 = arith.constant 0 : index
    %913 = vector.load %arg3[%c0_831, %c1_832, %c2_833, %c0_834, %c0_835, %c0_836] : memref<1x2x3x3x8x128xf32, #tpu.memory_space<vmem>>, vector<1x1x1x1x8x128xf32>
    %914 = vector.shape_cast %913 : vector<1x1x1x1x8x128xf32> to vector<8x128xf32>
    %915 = vector.shape_cast %909 : vector<8x128xf32> to vector<1x1x1x1x8x128xf32>
    tpu.vector_store %arg3[%c0_831, %c1_832, %c2_833, %c0_834, %c0_835, %c0_836], %915 {strides = array<i32>} : memref<1x2x3x3x8x128xf32, #tpu.memory_space<vmem>>, vector<1x1x1x1x8x128xf32>,
    %916 = arith.mulf %842, %224 : vector<8x128xf32>
    %917 = arith.mulf %843, %225 : vector<8x128xf32>
    %918 = arith.addf %916, %917 : vector<8x128xf32>
    %919 = arith.mulf %843, %224 : vector<8x128xf32>
    %920 = arith.mulf %842, %225 : vector<8x128xf32>
    %921 = arith.subf %919, %920 : vector<8x128xf32>
    %922 = arith.mulf %864, %258 : vector<8x128xf32>
    %923 = arith.mulf %865, %259 : vector<8x128xf32>
    %924 = arith.addf %922, %923 : vector<8x128xf32>
    %925 = arith.mulf %865, %258 : vector<8x128xf32>
    %926 = arith.mulf %864, %259 : vector<8x128xf32>
    %927 = arith.subf %925, %926 : vector<8x128xf32>
    %928 = arith.addf %918, %924 : vector<8x128xf32>
    %929 = arith.addf %921, %927 : vector<8x128xf32>
    %930 = arith.mulf %886, %292 : vector<8x128xf32>
    %931 = arith.mulf %887, %293 : vector<8x128xf32>
    %932 = arith.addf %930, %931 : vector<8x128xf32>
    %933 = arith.mulf %887, %292 : vector<8x128xf32>
    %934 = arith.mulf %886, %293 : vector<8x128xf32>
    %935 = arith.subf %933, %934 : vector<8x128xf32>
    %936 = arith.addf %928, %932 : vector<8x128xf32>
    %937 = arith.addf %929, %935 : vector<8x128xf32>
    %c0_837 = arith.constant 0 : index
    %c0_838 = arith.constant 0 : index
    %c2_839 = arith.constant 2 : index
    %c1_840 = arith.constant 1 : index
    %c0_841 = arith.constant 0 : index
    %c0_842 = arith.constant 0 : index
    %938 = vector.load %arg3[%c0_837, %c0_838, %c2_839, %c1_840, %c0_841, %c0_842] : memref<1x2x3x3x8x128xf32, #tpu.memory_space<vmem>>, vector<1x1x1x1x8x128xf32>
    %939 = vector.shape_cast %938 : vector<1x1x1x1x8x128xf32> to vector<8x128xf32>
    %940 = vector.shape_cast %936 : vector<8x128xf32> to vector<1x1x1x1x8x128xf32>
    tpu.vector_store %arg3[%c0_837, %c0_838, %c2_839, %c1_840, %c0_841, %c0_842], %940 {strides = array<i32>} : memref<1x2x3x3x8x128xf32, #tpu.memory_space<vmem>>, vector<1x1x1x1x8x128xf32>,
    %c0_843 = arith.constant 0 : index
    %c1_844 = arith.constant 1 : index
    %c2_845 = arith.constant 2 : index
    %c1_846 = arith.constant 1 : index
    %c0_847 = arith.constant 0 : index
    %c0_848 = arith.constant 0 : index
    %941 = vector.load %arg3[%c0_843, %c1_844, %c2_845, %c1_846, %c0_847, %c0_848] : memref<1x2x3x3x8x128xf32, #tpu.memory_space<vmem>>, vector<1x1x1x1x8x128xf32>
    %942 = vector.shape_cast %941 : vector<1x1x1x1x8x128xf32> to vector<8x128xf32>
    %943 = vector.shape_cast %937 : vector<8x128xf32> to vector<1x1x1x1x8x128xf32>
    tpu.vector_store %arg3[%c0_843, %c1_844, %c2_845, %c1_846, %c0_847, %c0_848], %943 {strides = array<i32>} : memref<1x2x3x3x8x128xf32, #tpu.memory_space<vmem>>, vector<1x1x1x1x8x128xf32>,
    %944 = arith.mulf %842, %326 : vector<8x128xf32>
    %945 = arith.mulf %843, %327 : vector<8x128xf32>
    %946 = arith.addf %944, %945 : vector<8x128xf32>
    %947 = arith.mulf %843, %326 : vector<8x128xf32>
    %948 = arith.mulf %842, %327 : vector<8x128xf32>
    %949 = arith.subf %947, %948 : vector<8x128xf32>
    %950 = arith.mulf %864, %360 : vector<8x128xf32>
    %951 = arith.mulf %865, %361 : vector<8x128xf32>
    %952 = arith.addf %950, %951 : vector<8x128xf32>
    %953 = arith.mulf %865, %360 : vector<8x128xf32>
    %954 = arith.mulf %864, %361 : vector<8x128xf32>
    %955 = arith.subf %953, %954 : vector<8x128xf32>
    %956 = arith.addf %946, %952 : vector<8x128xf32>
    %957 = arith.addf %949, %955 : vector<8x128xf32>
    %958 = arith.mulf %886, %394 : vector<8x128xf32>
    %959 = arith.mulf %887, %395 : vector<8x128xf32>
    %960 = arith.addf %958, %959 : vector<8x128xf32>
    %961 = arith.mulf %887, %394 : vector<8x128xf32>
    %962 = arith.mulf %886, %395 : vector<8x128xf32>
    %963 = arith.subf %961, %962 : vector<8x128xf32>
    %964 = arith.addf %956, %960 : vector<8x128xf32>
    %965 = arith.addf %957, %963 : vector<8x128xf32>
    %c0_849 = arith.constant 0 : index
    %c0_850 = arith.constant 0 : index
    %c2_851 = arith.constant 2 : index
    %c2_852 = arith.constant 2 : index
    %c0_853 = arith.constant 0 : index
    %c0_854 = arith.constant 0 : index
    %966 = vector.load %arg3[%c0_849, %c0_850, %c2_851, %c2_852, %c0_853, %c0_854] : memref<1x2x3x3x8x128xf32, #tpu.memory_space<vmem>>, vector<1x1x1x1x8x128xf32>
    %967 = vector.shape_cast %966 : vector<1x1x1x1x8x128xf32> to vector<8x128xf32>
    %968 = vector.shape_cast %964 : vector<8x128xf32> to vector<1x1x1x1x8x128xf32>
    tpu.vector_store %arg3[%c0_849, %c0_850, %c2_851, %c2_852, %c0_853, %c0_854], %968 {strides = array<i32>} : memref<1x2x3x3x8x128xf32, #tpu.memory_space<vmem>>, vector<1x1x1x1x8x128xf32>,
    %c0_855 = arith.constant 0 : index
    %c1_856 = arith.constant 1 : index
    %c2_857 = arith.constant 2 : index
    %c2_858 = arith.constant 2 : index
    %c0_859 = arith.constant 0 : index
    %c0_860 = arith.constant 0 : index
    %969 = vector.load %arg3[%c0_855, %c1_856, %c2_857, %c2_858, %c0_859, %c0_860] : memref<1x2x3x3x8x128xf32, #tpu.memory_space<vmem>>, vector<1x1x1x1x8x128xf32>
    %970 = vector.shape_cast %969 : vector<1x1x1x1x8x128xf32> to vector<8x128xf32>
    %971 = vector.shape_cast %965 : vector<8x128xf32> to vector<1x1x1x1x8x128xf32>
    tpu.vector_store %arg3[%c0_855, %c1_856, %c2_857, %c2_858, %c0_859, %c0_860], %971 {strides = array<i32>} : memref<1x2x3x3x8x128xf32, #tpu.memory_space<vmem>>, vector<1x1x1x1x8x128xf32>,
    return
  }
  func.func @transform_0(%arg0: i32) -> (i32, i32, i32, i32, i32, i32, i32) {
    %c0_i32 = arith.constant 0 : i32
    %c0_i32_0 = arith.constant 0 : i32
    %c0_i32_1 = arith.constant 0 : i32
    %c0_i32_2 = arith.constant 0 : i32
    %c0_i32_3 = arith.constant 0 : i32
    %c0_i32_4 = arith.constant 0 : i32
    %c0_i32_5 = arith.constant 0 : i32
    return %arg0, %c0_i32, %c0_i32_0, %c0_i32_1, %c0_i32_2, %c0_i32_3, %c0_i32_4 : i32, i32, i32, i32, i32, i32, i32
  }
  func.func @transform_1(%arg0: i32) -> (i32, i32, i32, i32, i32, i32, i32) {
    %c1_i32 = arith.constant 1 : i32
    %c0_i32 = arith.constant 0 : i32
    %c0_i32_0 = arith.constant 0 : i32
    %c0_i32_1 = arith.constant 0 : i32
    %c0_i32_2 = arith.constant 0 : i32
    %c0_i32_3 = arith.constant 0 : i32
    %c0_i32_4 = arith.constant 0 : i32
    return %arg0, %c1_i32, %c0_i32, %c0_i32_0, %c0_i32_1, %c0_i32_2, %c0_i32_3 : i32, i32, i32, i32, i32, i32, i32
  }
  func.func @transform_2(%arg0: i32) -> (i32, i32, i32, i32, i32, i32) {
    %c0_i32 = arith.constant 0 : i32
    %c0_i32_0 = arith.constant 0 : i32
    %c0_i32_1 = arith.constant 0 : i32
    %c0_i32_2 = arith.constant 0 : i32
    %c0_i32_3 = arith.constant 0 : i32
    %c0_i32_4 = arith.constant 0 : i32
    return %arg0, %c0_i32, %c0_i32_0, %c0_i32_1, %c0_i32_2, %c0_i32_3 : i32, i32, i32, i32, i32, i32
  }
}

</mosaic_0001>

<bundles_post_ra>
// kernel: tpu_custom_call.1
= control target key start
LH: loop header
LB: loop body
LE: loop exit
PB: predicated region body
PF: predicated region fallthrough
CT: control target
= control target key end

     0   :  { %6 = vsyncpa [#allocation3], 0  ;;  %s128_s0 = inlined_call_operand.hbm [shape: f32[8,128], index: 0, kind: input, shape index: {}]   ;;  %s129_s1 = inlined_call_operand.hbm [shape: f32[8,128], index: 1, kind: output, shape index: {}]  }
   0x1   :  { %7 = vsyncpa [#allocation4], 0  ;;  %s91_s6 = smov [#allocation2]   ;;  %s43_s10 = scalar_lea.hbm %s128_s0, 128 }
   0x2   :  { %s14_s7 = sshll.u32 %s91_s6, 4  ;;  %p44_p0 = scmp.ne.s32.totalorder %s128_s0, %s43_s10  ;;  %s15_s7 = int_to_ptr.vmem [resolvable:$true] %s14_s7 }
   0x3   :  { %p47_p1 = scmp.lt.u32.totalorder %s43_s10, %s128_s0 }
   0x5   :  { %p49_p2 = pnand %p47_p1, %p44_p0 }
   0x7   :  { %52 = shalt.err (!%p49_p2)
}
   0x8   :  { %s53_s15 = scalar_lea.vmem %s15_s7, 128  ;;  %p58_p4 = scmp.lt.s32.totalorder %s15_s7, %s15_s7 }
   0x9   :  { %p54_p3 = scmp.ne.s32.totalorder %s15_s7, %s53_s15  ;;  %p59_p5 = scmp.lt.s32.totalorder %s53_s15, %s53_s15 }
   0xb   :  { %p60_p6 = por %p59_p5, %p58_p4 }
   0xd   :  { %p61_p7 = pnand %p60_p6, %p54_p3 }
   0xf   :  { %64 = shalt.err (!%p61_p7)
}
  0x10   :  { %17 = dma.hbm_to_vmem [thread:$0]  %s128_s0, 128, %s15_s7, [#allocation3]  }
  0x11   :  { %87 = dma.done.wait [#allocation3], 128  }
  0x12   :  { %88 = vsyncadd [#allocation3], 4294967168  ;;  %v21_v0 = vld [vmem:[#allocation2] sm:$0xff]  ;;  %s92_s18 = smov 3   ;;  %s93_s19 = smov [#allocation5]  }
  0x13   :  { %22 = vrot.lane.b32.xlu0 %v21_v0, %s92_s18  ;;  %s31_s20 = sshll.u32 %s93_s19, 4  ;;  %s32_s20 = int_to_ptr.vmem [resolvable:$true] %s31_s20 }
  0x14   :  { %s65_s21 = scalar_lea.vmem %s32_s20, 128  ;;  %p70_p9 = scmp.lt.s32.totalorder %s32_s20, %s32_s20 }
  0x15   :  { %p66_p8 = scmp.ne.s32.totalorder %s32_s20, %s65_s21  ;;  %p71_p10 = scmp.lt.s32.totalorder %s65_s21, %s65_s21 }
  0x17   :  { %p72_p11 = por %p71_p10, %p70_p9 }
  0x19   :  { %p73_p12 = pnand %p72_p11, %p66_p8 }
  0x85   :  { %v23_v1 = vpop.permute.xlu0 %22 }
  0x86   :  { %24 = vst [vmem:[#allocation5] sm:$0xff] %v23_v1 }
  0x87   :  { %76 = shalt.err (!%p73_p12)
}
  0x88   :  { %s77_s0 = scalar_lea.hbm %s129_s1, 128 }
  0x89   :  { %p78_p13 = scmp.ne.s32.totalorder %s129_s1, %s77_s0  ;;  %p81_p0 = scmp.lt.u32.totalorder %s77_s0, %s129_s1 }
  0x8b   :  { %p83_p1 = pnand %p81_p0, %p78_p13 }
  0x8d   :  { %86 = shalt.err (!%p83_p1)
}
  0x8e   :  { %34 = dma.vmem_to_hbm [thread:$0]  %s32_s20, 128, %s129_s1, [#allocation4]  }
  0x8f   :  { %89 = dma.done.wait [#allocation4], 128  }
  0x90   :  { %90 = vsyncadd [#allocation4], 4294967168 }
  0x91   :  { %38 = vsyncpa [#allocation3], 1 }
  0x92   :  { %39 = vsyncpa [#allocation4], 1 }

// kernel: _plaquette_impl.1
= control target key start
LH: loop header
LB: loop body
LE: loop exit
PB: predicated region body
PF: predicated region fallthrough
CT: control target
= control target key end

     0   :  { %s1222_s9 = smov 0   ;;  %s2355_s0 = inlined_call_operand.vmem [shape: f32[2,2,2,3,3,8,128], index: 0, kind: input, shape index: {}, may-alias: {0,1}]   ;;  %s2356_s1 = inlined_call_operand.vmem [shape: f32[2,2,2,3,3,8,128], index: 1, kind: input, shape index: {}, may-alias: {0,1}]   ;;  %s2357_s2 = inlined_call_operand.vmem [shape: f32[2,2,3,3,8,128], index: 2, kind: output, shape index: {}]  }
   0x1 LB: > { %s1113_s10 = sadd.s32 4294967295, %s1204_s9   ;;  %p1117_p0 = scmp.ge.s32.totalorder %s1204_s9, 1  ;;  %s1204_s9 = sphi %s1222_s9, %s12_s9  }
   0x2   : > { %p123_p1 = scmp.lt.s32.totalorder %s1204_s9, 3 }
   0x4   : > { %p124_p2 = pnand %p1117_p0, %p123_p1 }
   0x6   : > { %127 = sbr.rel (%p124_p2) target bundleno = 242 (0xf2), region = 28 }
   0xd   : > { %p151_p3 = scmp.lt.s32.totalorder %s1113_s10, 1  ;;  %s1206_s18 = smov 127  }
   0xf   : > { %s2566_s10 = smov (!%p151_p3, %s1113_s10), 1 }
  0x10   : > { %s1187_s11 = smul.u32 288, %s2566_s10 }
  0x11   : > { %s1188_s19 = smul.u32 144, %s2566_s10 }
  0x12   : > { %s1236_s14 = scalar_lea.vmem %s2355_s0, %s1187_s11  ;;  %s1241_s17 = scalar_lea.vmem %s2356_s1, %s1187_s11 }
  0x13   : > { %v1244_v0 = vld [vmem:[%s1236_s14 + $0x8] sm:$0xff]  ;;  %v1250_v2 = vld [vmem:[%s1241_s17 + $0xf0] sm:$0xff]  ;;  %v1256_v4 = vld [vmem:[%s1241_s17 + $0xf8] sm:$0xff]  ;;  %s2268_s22 = scalar_lea.vmem %s2357_s2, %s1188_s19 }
  0x14   : > { %v1247_v1 = vld [vmem:[%s1241_s17 + $0xa8] sm:$0xff]  ;;  %2422 = vst [vmem:[#allocation3_spill] sm:$0xff] %v1250_v2  ;;  %v1253_v3 = vld [vmem:[%s1241_s17 + $0xb0] sm:$0xff]  ;;  %2424 = vst [vmem:[#allocation5_spill] sm:$0xff] %v1256_v4  ;;  %v1262_v6 = vrot.slane %v1250_v2, 1  ;;  %183 = vrot.lane.b32.xlu1 %v1244_v0, %s1206_s18  ;;  %v1273_v9 = vrot.slane %v1256_v4, 1 }
  0x15   : > { %2421 = vst [vmem:[#allocation2_spill] sm:$0xff] %v1247_v1  ;;  %2423 = vst [vmem:[#allocation4_spill] sm:$0xff] %v1253_v3  ;;  %v1259_v5 = vrot.slane %v1247_v1, 1  ;;  %v1267_v7 = vld [vmem:[%s1236_s14] sm:$0xff]  ;;  %v1270_v8 = vrot.slane %v1253_v3, 1  ;;  %v1276_v10 = vld [vmem:[%s1241_s17 + $0x90] sm:$0xff] }
  0x16   : > { %2425 = vst [vmem:[#allocation6_spill] sm:$0xff] %v1276_v10  ;;  %v1279_v11 = vld [vmem:[%s1241_s17 + $0xd8] sm:$0xff]  ;;  %171 = vrot.lane.b32.xlu0 %v1267_v7, %s1206_s18  ;;  %v589_v14 = vmul.f32 %v1244_v0, %v1262_v6  ;;  %v1291_v15 = vld [vmem:[%s1241_s17 + $0xe0] sm:$0xff]  ;;  %v1294_v16 = vrot.slane %v1276_v10, 1  ;;  %v1300_v18 = vld [vmem:[%s1236_s14 + $0x50] sm:$0xff]  ;;  %v611_v21 = vmul.f32 %v1244_v0, %v1273_v9 }
  0x17   : > { %2426 = vst [vmem:[#allocation7_spill] sm:$0xff] %v1279_v11  ;;  %v1282_v12 = vld [vmem:[%s1241_s17 + $0x98] sm:$0xff]  ;;  %v586_v13 = vmul.f32 %v1244_v0, %v1259_v5  ;;  %2428 = vst [vmem:[#allocation9_spill] sm:$0xff] %v1291_v15  ;;  %v1297_v17 = vrot.slane %v1279_v11, 1  ;;  %v1303_v19 = vld [vmem:[%s1236_s14 + $0x48] sm:$0xff]  ;;  %v608_v20 = vmul.f32 %v1244_v0, %v1270_v8  ;;  %v1313_v23 = vrot.slane %v1291_v15, 1 }
  0x18   : > { %2427 = vst [vmem:[#allocation8_spill] sm:$0xff] %v1282_v12  ;;  %v1310_v22 = vrot.slane %v1282_v12, 1  ;;  %v580_v24 = vmul.f32 %v1294_v16, %v1267_v7  ;;  %v587_v26 = vmul.f32 %v1300_v18, %v1262_v6  ;;  %v590_v27 = vmul.f32 %v1300_v18, %v1259_v5  ;;  %187 = vrot.lane.b32.xlu1 %v1300_v18, %s1206_s18  ;;  %v1336_v32 = vld [vmem:[%s1236_s14 + $0x60] sm:$0xff]  ;;  %v1343_v37 = vld [vmem:[%s1236_s14 + $0x18] sm:$0xff]  ;;  %v1353_v43 = vld [vmem:[%s1241_s17 + $0x108] sm:$0xff] }
  0x19   : > { %v583_v25 = vmul.f32 %v1297_v17, %v1267_v7  ;;  %v605_v29 = vmul.f32 %v1313_v23, %v1267_v7  ;;  %v609_v30 = vmul.f32 %v1300_v18, %v1273_v9  ;;  %v612_v31 = vmul.f32 %v1300_v18, %v1270_v8  ;;  %v1350_v42 = vld [vmem:[%s1241_s17 + $0xc0] sm:$0xff]  ;;  %2430 = vst [vmem:[#allocation11_spill] sm:$0xff] %v1353_v43  ;;  %v1358_v46 = vld [vmem:[%s1241_s17 + $0xc8] sm:$0xff]  ;;  %v1361_v47 = vld [vmem:[%s1241_s17 + $0x110] sm:$0xff] }
  0x1a   : > { %v602_v28 = vmul.f32 %v1310_v22, %v1267_v7  ;;  %175 = vrot.lane.b32.xlu0 %v1303_v19, %s1206_s18  ;;  %v588_v33 = vsub.f32 %v586_v13, %v587_v26  ;;  %v591_v34 = vadd.f32 %v590_v27, %v589_v14  ;;  %v581_v35 = vmul.f32 %v1303_v19, %v1297_v17  ;;  %v1372_v52 = vld [vmem:[%s1236_s14 + $0x68] sm:$0xff]  ;;  %v1125_v53 = vld [vmem:[%s1236_s14 + $0x58] sm:$0xff]  ;;  %v1382_v58 = vld [vmem:[%s1236_s14 + $0x20] sm:$0xff] }
  0x1b   : > { %v584_v36 = vmul.f32 %v1303_v19, %v1294_v16  ;;  %v610_v38 = vsub.f32 %v608_v20, %v609_v30  ;;  %v613_v39 = vadd.f32 %v612_v31, %v611_v21  ;;  %v603_v40 = vmul.f32 %v1303_v19, %v1313_v23  ;;  %2429 = vst [vmem:[#allocation10_spill] sm:$0xff] %v1350_v42  ;;  %v1124_v14 = vld [vmem:[%s1236_s14 + $0x10] sm:$0xff]  ;;  %v1546_v10 = vld [vmem:[%s1236_s14 + $0x88] sm:$0xff] }
  0x1c   : > { %v606_v41 = vmul.f32 %v1303_v19, %v1310_v22  ;;  %v582_v44 = vsub.f32 %v580_v24, %v581_v35  ;;  %211 = vrot.lane.b32.xlu1 %v1336_v32, %s1206_s18  ;;  %2431 = vst [vmem:[#allocation12_spill] sm:$0xff] %v1358_v46  ;;  %2432 = vst [vmem:[#allocation13_spill] sm:$0xff] %v1361_v47  ;;  %v1364_v48 = vrot.slane %v1350_v42, 1  ;;  %v1367_v49 = vrot.slane %v1353_v43, 1  ;;  %v1408_v35 = vld [vmem:[%s1236_s14 + $0x70] sm:$0xff] }
  0x1d   : > { %v585_v45 = vadd.f32 %v584_v36, %v583_v25  ;;  %v604_v50 = vsub.f32 %v602_v28, %v603_v40  ;;  %v1376_v54 = vrot.slane %v1358_v46, 1  ;;  %v1379_v55 = vrot.slane %v1361_v47, 1  ;;  %v1411_v36 = vld [vmem:[%s1236_s14 + $0x28] sm:$0xff]  ;;  %v1420_v40 = vld [vmem:[%s1241_s17 + $0xb8] sm:$0xff] }
  0x1e   : > { %v607_v51 = vadd.f32 %v606_v41, %v605_v29  ;;  %207 = vrot.lane.b32.xlu0 %v1343_v37, %s1206_s18  ;;  %v592_v56 = vadd.f32 %v588_v33, %v582_v44  ;;  %v595_v59 = vmul.f32 %v1125_v53, %v1367_v49  ;;  %v598_v60 = vmul.f32 %v1125_v53, %v1364_v48 }
  0x1f   : > { %v593_v57 = vadd.f32 %v591_v34, %v585_v45  ;;  %v614_v61 = vadd.f32 %v610_v38, %v604_v50  ;;  %v617_v63 = vmul.f32 %v1125_v53, %v1379_v55  ;;  %v620_v13 = vmul.f32 %v1125_v53, %v1376_v54  ;;  %v1414_v38 = vld [vmem:[%s1241_s17 + $0xa0] sm:$0xff]  ;;  %2439 = vst [vmem:[#allocation20_spill] sm:$0xff] %v1420_v40 }
  0x20   : > { %v615_v62 = vadd.f32 %v613_v39, %v607_v51  ;;  %223 = vrot.lane.b32.xlu1 %v1372_v52, %s1206_s18  ;;  %v594_v20 = vmul.f32 %v1124_v14, %v1364_v48  ;;  %v597_v21 = vmul.f32 %v1124_v14, %v1367_v49  ;;  %v616_v24 = vmul.f32 %v1124_v14, %v1376_v54  ;;  %v1417_v39 = vld [vmem:[%s1241_s17 + $0xe8] sm:$0xff]  ;;  %v1435_v51 = vld [vmem:[%s1241_s17 + $0x100] sm:$0xff] }
  0x21   : > { %v619_v25 = vmul.f32 %v1124_v14, %v1379_v55  ;;  %2437 = vst [vmem:[#allocation18_spill] sm:$0xff] %v1414_v38  ;;  %2438 = vst [vmem:[#allocation19_spill] sm:$0xff] %v1417_v39  ;;  %v1424_v41 = vmul.f32 %v1343_v37, %v1294_v16  ;;  %v1428_v44 = vmul.f32 %v1336_v32, %v1297_v17 }
  0x22   : > { %219 = vrot.lane.b32.xlu0 %v1382_v58, %s1206_s18  ;;  %v596_v26 = vsub.f32 %v594_v20, %v595_v59  ;;  %v599_v27 = vadd.f32 %v598_v60, %v597_v21  ;;  %v618_v28 = vsub.f32 %v616_v24, %v617_v63  ;;  %v732_v45 = vmul.f32 %v1343_v37, %v1297_v17  ;;  %v1464_v24 = vld [vmem:[%s1236_s14 + $0x78] sm:$0xff] }
  0x23   : > { %v621_v29 = vadd.f32 %v620_v13, %v619_v25  ;;  %v733_v50 = vmul.f32 %v1336_v32, %v1294_v16  ;;  %2440 = vst [vmem:[#allocation21_spill] sm:$0xff] %v1435_v51  ;;  %v525_v59 = vrot.slane %v1414_v38, 1  ;;  %v529_v60 = vrot.slane %v1417_v39, 1  ;;  %v1510_v38 = vld [vmem:[%s1236_s14 + $0x38] sm:$0xff] }
  0x24   : > { %199 = vrot.lane.b32.xlu1 %v1125_v53, %s1206_s18  ;;  %v1398_v30 = vadd.f32 %v596_v26, %v592_v56  ;;  %v1400_v31 = vadd.f32 %v599_v27, %v593_v57  ;;  %v1402_v33 = vadd.f32 %v618_v28, %v614_v61  ;;  %v1438_v56 = vld [vmem:[%s1241_s17 + $0xd0] sm:$0xff]  ;;  %v1441_v57 = vld [vmem:[%s1241_s17 + $0x118] sm:$0xff]  ;;  %v549_v61 = vrot.slane %v1420_v40, 1 }
  0x25   : > { %v1404_v34 = vadd.f32 %v621_v29, %v615_v62  ;;  %2441 = vst [vmem:[#allocation22_spill] sm:$0xff] %v1438_v56  ;;  %2442 = vst [vmem:[#allocation23_spill] sm:$0xff] %v1441_v57  ;;  %v1448_v62 = vmul.f32 %v1382_v58, %v1259_v5  ;;  %v553_v63 = vrot.slane %v1435_v51, 1  ;;  %v1454_v13 = vrot.slane %v1438_v56, 1  ;;  %v1477_v29 = vld [vmem:[%s1236_s14 + $0x30] sm:$0xff]  ;;  %v1507_v51 = vld [vmem:[%s1236_s14 + $0x80] sm:$0xff] }
  0x26   : > { %2433 = vst [vmem:[#allocation14_spill] sm:$0xff] %v1398_v30  ;;  %2434 = vst [vmem:[#allocation15_spill] sm:$0xff] %v1400_v31  ;;  %195 = vrot.lane.b32.xlu0 %v1124_v14, %s1206_s18  ;;  %v1457_v20 = vrot.slane %v1441_v57, 1  ;;  %v731_v21 = vsub.f32 %v1424_v41, %v1428_v44  ;;  %v634_v25 = vmul.f32 %v1300_v18, %v549_v61 }
  0x27   : > { %2435 = vst [vmem:[#allocation16_spill] sm:$0xff] %v1402_v33  ;;  %2436 = vst [vmem:[#allocation17_spill] sm:$0xff] %v1404_v34  ;;  %v1468_v26 = vmul.f32 %v1343_v37, %v525_v59  ;;  %v1471_v27 = vmul.f32 %v1336_v32, %v529_v60  ;;  %v1474_v28 = vmul.f32 %v1343_v37, %v529_v60 }
  0x28   : > { %235 = vrot.lane.b32.xlu1 %v1408_v35, %s1206_s18  ;;  %v631_v41 = vmul.f32 %v1300_v18, %v553_v63  ;;  %v638_v44 = vmul.f32 %v1124_v14, %v1454_v13  ;;  %v639_v34 = vmul.f32 %v1125_v53, %v1457_v20  ;;  %v641_v33 = vmul.f32 %v1124_v14, %v1457_v20 }
  0x29   : > { %v642_v31 = vmul.f32 %v1125_v53, %v1454_v13  ;;  %v1485_v30 = vmul.f32 %v1336_v32, %v525_v59  ;;  %v1488_v56 = vmul.f32 %v1382_v58, %v549_v61  ;;  %v1491_v57 = vmul.f32 %v1372_v52, %v553_v63 }
  0x2a   : > { %231 = vrot.lane.b32.xlu0 %v1411_v36, %s1206_s18  ;;  %v640_v18 = vsub.f32 %v638_v44, %v639_v34  ;;  %v1496_v40 = vmul.f32 %v1382_v58, %v553_v63  ;;  %v1499_v14 = vmul.f32 %v1372_v52, %v549_v61  ;;  %v1502_v53 = vmul.f32 %v1477_v29, %v525_v59 }
  0x2b   : > { %v643_v39 = vadd.f32 %v642_v31, %v641_v33  ;;  %v1513_v46 = vmul.f32 %v1464_v24, %v529_v60  ;;  %v1516_v34 = vmul.f32 %v1477_v29, %v529_v60  ;;  %v1519_v44 = vmul.f32 %v1464_v24, %v525_v59 }
  0x2c   : > { %247 = vrot.lane.b32.xlu1 %v1464_v24, %s1206_s18  ;;  %v1522_v47 = vmul.f32 %v1510_v38, %v549_v61  ;;  %v1525_v3 = vmul.f32 %v1507_v51, %v553_v63  ;;  %v1528_v4 = vmul.f32 %v1510_v38, %v553_v63  ;;  %v1531_v31 = vmul.f32 %v1507_v51, %v549_v61 }
  0x2d   : > { %v624_v33 = vmul.f32 %v525_v59, %v1267_v7  ;;  %v625_v12 = vmul.f32 %v1303_v19, %v529_v60  ;;  %v627_v15 = vmul.f32 %v529_v60, %v1267_v7  ;;  %v628_v43 = vmul.f32 %v1303_v19, %v525_v59  ;;  %v1553_v60 = vld [vmem:[%s1236_s14 + $0x40] sm:$0xff] }
  0x2e   : > { %243 = vrot.lane.b32.xlu0 %v1477_v29, %s1206_s18  ;;  %2443 = vst [vmem:[#allocation24_spill] sm:$0xff] %v1528_v4  ;;  %2444 = vst [vmem:[#allocation25_spill] sm:$0xff] %v1531_v31  ;;  %v630_v42 = vmul.f32 %v1244_v0, %v549_v61  ;;  %v633_v2 = vmul.f32 %v1244_v0, %v553_v63  ;;  %v734_v1 = vadd.f32 %v733_v50, %v732_v45 }
  0x2f   : > { %v736_v11 = vmul.f32 %v1372_v52, %v1262_v6  ;;  %v626_v31 = vsub.f32 %v624_v33, %v625_v12  ;;  %v629_v7 = vadd.f32 %v628_v43, %v627_v15  ;;  %v738_v19 = vmul.f32 %v1382_v58, %v1262_v6 }
  0x30   : > { %259 = vrot.lane.b32.xlu1 %v1507_v51, %s1206_s18  ;;  %v739_v59 = vmul.f32 %v1372_v52, %v1259_v5  ;;  %v632_v0 = vsub.f32 %v630_v42, %v631_v41  ;;  %v635_v45 = vadd.f32 %v634_v25, %v633_v2  ;;  %v743_v61 = vmul.f32 %v1411_v36, %v1364_v48 }
  0x31   : > { %v737_v50 = vsub.f32 %v1448_v62, %v736_v11  ;;  %v744_v12 = vmul.f32 %v1408_v35, %v1367_v49  ;;  %v746_v15 = vmul.f32 %v1411_v36, %v1367_v49  ;;  %v747_v43 = vmul.f32 %v1408_v35, %v1364_v48 }
  0x32   : > { %255 = vrot.lane.b32.xlu0 %v1510_v38, %s1206_s18  ;;  %v740_v63 = vadd.f32 %v739_v59, %v738_v19  ;;  %v636_v42 = vadd.f32 %v632_v0, %v626_v31  ;;  %v637_v2 = vadd.f32 %v635_v45, %v629_v7  ;;  %v879_v11 = vmul.f32 %v1477_v29, %v1294_v16 }
  0x33   : > { %v741_v25 = vadd.f32 %v737_v50, %v731_v21  ;;  %v745_v41 = vsub.f32 %v743_v61, %v744_v12  ;;  %v748_v33 = vadd.f32 %v747_v43, %v746_v15  ;;  %v880_v19 = vmul.f32 %v1464_v24, %v1297_v17 }
  0x34   : > { %271 = vrot.lane.b32.xlu1 %v1546_v10, %s1206_s18  ;;  %v742_v62 = vadd.f32 %v740_v63, %v734_v1  ;;  %v1572_v59 = vadd.f32 %v640_v18, %v636_v42  ;;  %v1574_v4 = vadd.f32 %v643_v39, %v637_v2  ;;  %v882_v31 = vmul.f32 %v1477_v29, %v1297_v17 }
  0x35   : > { %v883_v21 = vmul.f32 %v1464_v24, %v1294_v16  ;;  %v1580_v7 = vadd.f32 %v745_v41, %v741_v25  ;;  %v881_v1 = vsub.f32 %v879_v11, %v880_v19  ;;  %v885_v45 = vmul.f32 %v1510_v38, %v1259_v5 }
  0x36   : > { %267 = vrot.lane.b32.xlu0 %v1553_v60, %s1206_s18  ;;  %2445 = vst [vmem:[#allocation26_spill] sm:$0xff] %v1572_v59  ;;  %2446 = vst [vmem:[#allocation27_spill] sm:$0xff] %v1574_v4  ;;  %v1582_v0 = vadd.f32 %v748_v33, %v742_v62  ;;  %v886_v18 = vmul.f32 %v1507_v51, %v1262_v6  ;;  %v888_v39 = vmul.f32 %v1510_v38, %v1262_v6 }
  0x37   : > { %v884_v50 = vadd.f32 %v883_v21, %v882_v31  ;;  %v889_v17 = vmul.f32 %v1507_v51, %v1259_v5  ;;  %v893_v16 = vmul.f32 %v1553_v60, %v1364_v48  ;;  %v894_v61 = vmul.f32 %v1546_v10, %v1367_v49 }
  0x38   : > { %v896_v63 = vmul.f32 %v1553_v60, %v1367_v49  ;;  %v897_v12 = vmul.f32 %v1546_v10, %v1364_v48  ;;  %v887_v15 = vsub.f32 %v885_v45, %v886_v18  ;;  %v751_v6 = vmul.f32 %v1343_v37, %v1310_v22 }
  0x39   : > { %v890_v43 = vadd.f32 %v889_v17, %v888_v39  ;;  %v752_v5 = vmul.f32 %v1336_v32, %v1313_v23  ;;  %v895_v42 = vsub.f32 %v893_v16, %v894_v61  ;;  %v754_v25 = vmul.f32 %v1343_v37, %v1313_v23 }
  0x3a   : > { %v898_v2 = vadd.f32 %v897_v12, %v896_v63  ;;  %v755_v11 = vmul.f32 %v1336_v32, %v1310_v22  ;;  %v891_v49 = vadd.f32 %v887_v15, %v881_v1  ;;  %v757_v48 = vmul.f32 %v1382_v58, %v1270_v8 }
  0x3b   : > { %v892_v62 = vadd.f32 %v890_v43, %v884_v50  ;;  %v753_v41 = vsub.f32 %v751_v6, %v752_v5  ;;  %v758_v19 = vmul.f32 %v1372_v52, %v1273_v9  ;;  %v760_v31 = vmul.f32 %v1382_v58, %v1273_v9 }
  0x3c   : > { %v756_v33 = vadd.f32 %v755_v11, %v754_v25  ;;  %v761_v21 = vmul.f32 %v1372_v52, %v1270_v8  ;;  %v1616_v37 = vadd.f32 %v895_v42, %v891_v49  ;;  %v765_v32 = vmul.f32 %v1411_v36, %v1376_v54 }
  0x3d   : > { %v1618_v45 = vadd.f32 %v898_v2, %v892_v62  ;;  %v766_v1 = vmul.f32 %v1408_v35, %v1379_v55  ;;  %v759_v50 = vsub.f32 %v757_v48, %v758_v19  ;;  %v768_v39 = vmul.f32 %v1411_v36, %v1379_v55 }
  0x3e   : > { %v762_v18 = vadd.f32 %v761_v21, %v760_v31  ;;  %v769_v58 = vmul.f32 %v1408_v35, %v1376_v54  ;;  %v901_v52 = vmul.f32 %v1477_v29, %v1310_v22  ;;  %v902_v16 = vmul.f32 %v1464_v24, %v1313_v23 }
  0x3f   : > { %v767_v17 = vsub.f32 %v765_v32, %v766_v1  ;;  %v904_v61 = vmul.f32 %v1477_v29, %v1313_v23  ;;  %v763_v63 = vadd.f32 %v759_v50, %v753_v41  ;;  %v905_v43 = vmul.f32 %v1464_v24, %v1310_v22 }
  0x40   : > { %v764_v12 = vadd.f32 %v762_v18, %v756_v33  ;;  %v770_v15 = vadd.f32 %v769_v58, %v768_v39  ;;  %v903_v6 = vsub.f32 %v901_v52, %v902_v16  ;;  %v907_v5 = vmul.f32 %v1510_v38, %v1270_v8  ;;  %v2447_v18 = vld [vmem:[#allocation24_spill] sm:$0xff]  ;;  %v2448_v39 = vld [vmem:[#allocation25_spill] sm:$0xff] }
  0x41   : > { %v908_v42 = vmul.f32 %v1507_v51, %v1273_v9  ;;  %v910_v2 = vmul.f32 %v1510_v38, %v1273_v9  ;;  %v1642_v25 = vadd.f32 %v767_v17, %v763_v63  ;;  %v906_v23 = vadd.f32 %v905_v43, %v904_v61 }
  0x42   : > { %v1644_v11 = vadd.f32 %v770_v15, %v764_v12  ;;  %v911_v29 = vmul.f32 %v1507_v51, %v1270_v8  ;;  %v915_v22 = vmul.f32 %v1553_v60, %v1376_v54  ;;  %v916_v24 = vmul.f32 %v1546_v10, %v1379_v55  ;;  %v2453_v15 = vld [vmem:[#allocation6_spill] sm:$0xff] }
  0x43   : > { %v909_v49 = vsub.f32 %v907_v5, %v908_v42  ;;  %v918_v62 = vmul.f32 %v1553_v60, %v1379_v55  ;;  %v919_v9 = vmul.f32 %v1546_v10, %v1376_v54  ;;  %v775_v51 = vsub.f32 %v1468_v26, %v1471_v27  ;;  %v2457_v42 = vld [vmem:[#allocation10_spill] sm:$0xff] }
  0x44   : > { %v912_v41 = vadd.f32 %v911_v29, %v910_v2  ;;  %v917_v48 = vsub.f32 %v915_v22, %v916_v24  ;;  %v778_v21 = vadd.f32 %v1485_v30, %v1474_v28  ;;  %v781_v55 = vsub.f32 %v1488_v56, %v1491_v57 }
  0x45   : > { %v913_v38 = vadd.f32 %v909_v49, %v903_v6  ;;  %v920_v19 = vadd.f32 %v919_v9, %v918_v62  ;;  %v784_v54 = vadd.f32 %v1499_v14, %v1496_v40  ;;  %v787_v32 = vmul.f32 %v1411_v36, %v1454_v13  ;;  %v2456_v6 = vld [vmem:[#allocation3_spill] sm:$0xff] }
  0x46   : > { %v914_v33 = vadd.f32 %v912_v41, %v906_v23  ;;  %v788_v1 = vmul.f32 %v1408_v35, %v1457_v20  ;;  %v790_v50 = vmul.f32 %v1411_v36, %v1457_v20  ;;  %v791_v26 = vmul.f32 %v1408_v35, %v1454_v13  ;;  %v2458_v23 = vld [vmem:[#allocation11_spill] sm:$0xff] }
  0x47   : > { %v1656_v31 = vadd.f32 %v917_v48, %v913_v38  ;;  %v785_v27 = vadd.f32 %v781_v55, %v775_v51  ;;  %v786_v30 = vadd.f32 %v784_v54, %v778_v21  ;;  %v925_v56 = vsub.f32 %v1502_v53, %v1513_v46 }
  0x48   : > { %v1658_v8 = vadd.f32 %v920_v19, %v914_v33  ;;  %v928_v40 = vadd.f32 %v1519_v44, %v1516_v34  ;;  %v789_v57 = vsub.f32 %v787_v32, %v788_v1  ;;  %v792_v28 = vadd.f32 %v791_v26, %v790_v50 }
  0x49   : > { %v931_v14 = vsub.f32 %v1522_v47, %v1525_v3  ;;  %v934_v58 = vadd.f32 %v2448_v39, %v2447_v18  ;;  %v937_v36 = vmul.f32 %v1553_v60, %v1454_v13  ;;  %v938_v35 = vmul.f32 %v1546_v10, %v1457_v20 }
  0x4a   : > { %v940_v46 = vmul.f32 %v1553_v60, %v1457_v20  ;;  %v941_v53 = vmul.f32 %v1546_v10, %v1454_v13  ;;  %v1692_v34 = vadd.f32 %v789_v57, %v785_v27  ;;  %v1694_v44 = vadd.f32 %v792_v28, %v786_v30  ;;  %v2454_v20 = vld [vmem:[#allocation7_spill] sm:$0xff]  ;;  %v2455_v10 = vld [vmem:[#allocation2_spill] sm:$0xff] }
  0x4b   : > { %v935_v3 = vadd.f32 %v931_v14, %v925_v56  ;;  %v936_v47 = vadd.f32 %v934_v58, %v928_v40  ;;  %v939_v17 = vsub.f32 %v937_v36, %v938_v35 }
  0x4c   : > { %2449 = vst [vmem:[#allocation24_spill] sm:$0xff] %v1692_v34  ;;  %2450 = vst [vmem:[#allocation25_spill] sm:$0xff] %v1694_v44  ;;  %v942_v52 = vadd.f32 %v941_v53, %v940_v46  ;;  %v2459_v46 = vld [vmem:[#allocation9_spill] sm:$0xff] }
  0x4d   : > { %v1696_v16 = vadd.f32 %v939_v17, %v935_v3  ;;  %v2460_v3 = vld [vmem:[#allocation8_spill] sm:$0xff]  ;;  %v2461_v17 = vld [vmem:[#allocation5_spill] sm:$0xff] }
  0x4e   : > { %v1698_v61 = vadd.f32 %v942_v52, %v936_v47 }
  0x4f   : > { %2451 = vst [vmem:[#allocation28_spill] sm:$0xff] %v1696_v16 }
  0x50   : > { %2452 = vst [vmem:[#allocation29_spill] sm:$0xff] %v1698_v61 }
  0x86   : > { %v184_v63 = vpop.permute.xlu1 %183 }
  0x87   : > { %v1701_v43 = vmul.f32 %v2453_v15, %v184_v63  ;;  %v311_v60 = vmul.f32 %v2454_v20, %v184_v63  ;;  %v1705_v13 = vmul.f32 %v2455_v10, %v184_v63  ;;  %v389_v5 = vmul.f32 %v2456_v6, %v184_v63 }
  0x88   : > { %v172_v12 = vpop.permute.xlu0 %171  ;;  %v1709_v2 = vmul.f32 %v2457_v42, %v184_v63  ;;  %v467_v29 = vmul.f32 %v2458_v23, %v184_v63  ;;  %v2462_v63 = vld [vmem:[#allocation4_spill] sm:$0xff] }
  0x89   : > { %v277_v49 = vmul.f32 %v2453_v15, %v172_v12  ;;  %v281_v22 = vmul.f32 %v2454_v20, %v172_v12  ;;  %v355_v24 = vmul.f32 %v2455_v10, %v172_v12  ;;  %v359_v62 = vmul.f32 %v2456_v6, %v172_v12 }
  0x8a   : > { %v433_v41 = vmul.f32 %v2457_v42, %v172_v12  ;;  %v437_v9 = vmul.f32 %v2458_v23, %v172_v12  ;;  %v188_v38 = vpop.permute.xlu1 %187 }
  0x8b   : > { %v1719_v48 = vmul.f32 %v2454_v20, %v188_v38  ;;  %v310_v33 = vmul.f32 %v2453_v15, %v188_v38  ;;  %v1723_v19 = vmul.f32 %v2456_v6, %v188_v38  ;;  %v388_v51 = vmul.f32 %v2455_v10, %v188_v38 }
  0x8c   : > { %v176_v21 = vpop.permute.xlu0 %175  ;;  %v1727_v55 = vmul.f32 %v2458_v23, %v188_v38  ;;  %v466_v54 = vmul.f32 %v2457_v42, %v188_v38 }
  0x8d   : > { %v278_v32 = vmul.f32 %v2454_v20, %v176_v21  ;;  %v280_v1 = vmul.f32 %v2453_v15, %v176_v21  ;;  %v1734_v26 = vadd.f32 %v311_v60, %v310_v33  ;;  %v1738_v30 = vadd.f32 %v389_v5, %v388_v51  ;;  %v2464_v33 = vld [vmem:[#allocation12_spill] sm:$0xff] }
  0x8e   : > { %v1742_v40 = vadd.f32 %v467_v29, %v466_v54  ;;  %v212_v14 = vpop.permute.xlu1 %211  ;;  %v356_v18 = vmul.f32 %v2456_v6, %v176_v21  ;;  %v358_v39 = vmul.f32 %v2455_v10, %v176_v21  ;;  %v434_v58 = vmul.f32 %v2458_v23, %v176_v21 }
  0x8f   : > { %v279_v57 = vsub.f32 %v277_v49, %v278_v32  ;;  %v282_v28 = vadd.f32 %v281_v22, %v280_v1  ;;  %v436_v36 = vmul.f32 %v2457_v42, %v176_v21  ;;  %v288_v53 = vmul.f32 %v2459_v46, %v212_v14  ;;  %v2463_v22 = vld [vmem:[#allocation13_spill] sm:$0xff] }
  0x90   : > { %v208_v35 = vpop.permute.xlu0 %207  ;;  %v290_v47 = vmul.f32 %v2460_v3, %v212_v14  ;;  %v366_v52 = vmul.f32 %v2461_v17, %v212_v14  ;;  %v368_v12 = vmul.f32 %v2462_v63, %v212_v14  ;;  %v357_v60 = vsub.f32 %v355_v24, %v356_v18 }
  0x91   : > { %v360_v5 = vadd.f32 %v359_v62, %v358_v39  ;;  %v435_v29 = vsub.f32 %v433_v41, %v434_v58  ;;  %v438_v49 = vadd.f32 %v437_v9, %v436_v36  ;;  %v444_v38 = vmul.f32 %v2463_v22, %v212_v14 }
  0x92   : > { %v446_v51 = vmul.f32 %v2464_v33, %v212_v14  ;;  %v287_v54 = vmul.f32 %v2460_v3, %v208_v35  ;;  %v291_v21 = vmul.f32 %v2459_v46, %v208_v35  ;;  %v224_v32 = vpop.permute.xlu1 %223  ;;  %v365_v1 = vmul.f32 %v2462_v63, %v208_v35 }
  0x93   : > { %v369_v56 = vmul.f32 %v2461_v17, %v208_v35  ;;  %v443_v27 = vmul.f32 %v2464_v33, %v208_v35  ;;  %v447_v24 = vmul.f32 %v2463_v22, %v208_v35  ;;  %v314_v18 = vmul.f32 %v2459_v46, %v224_v32 }
  0x94   : > { %v220_v62 = vpop.permute.xlu0 %219  ;;  %v289_v41 = vsub.f32 %v287_v54, %v288_v53  ;;  %v292_v9 = vadd.f32 %v291_v21, %v290_v47  ;;  %v316_v14 = vmul.f32 %v2460_v3, %v224_v32  ;;  %v367_v39 = vsub.f32 %v365_v1, %v366_v52 }
  0x95   : > { %v370_v58 = vadd.f32 %v369_v56, %v368_v12  ;;  %v445_v36 = vsub.f32 %v443_v27, %v444_v38  ;;  %v448_v50 = vadd.f32 %v447_v24, %v446_v51  ;;  %v392_v44 = vmul.f32 %v2461_v17, %v224_v32 }
  0x96   : > { %v1762_v61 = vadd.f32 %v289_v41, %v279_v57  ;;  %v1764_v16 = vadd.f32 %v292_v9, %v282_v28  ;;  %v394_v34 = vmul.f32 %v2462_v63, %v224_v32  ;;  %v200_v35 = vpop.permute.xlu1 %199  ;;  %v1768_v4 = vadd.f32 %v367_v39, %v357_v60 }
  0x97   : > { %v1770_v53 = vadd.f32 %v370_v58, %v360_v5  ;;  %v1772_v47 = vadd.f32 %v445_v36, %v435_v29  ;;  %v1774_v54 = vadd.f32 %v448_v50, %v438_v49  ;;  %v470_v27 = vmul.f32 %v2463_v22, %v224_v32 }
  0x98   : > { %v472_v56 = vmul.f32 %v2464_v33, %v224_v32  ;;  %v313_v57 = vmul.f32 %v2460_v3, %v220_v62  ;;  %v317_v28 = vmul.f32 %v2459_v46, %v220_v62  ;;  %v196_v52 = vpop.permute.xlu0 %195  ;;  %v391_v12 = vmul.f32 %v2462_v63, %v220_v62 }
  0x99   : > { %v395_v60 = vmul.f32 %v2461_v17, %v220_v62  ;;  %v469_v5 = vmul.f32 %v2464_v33, %v220_v62  ;;  %v473_v29 = vmul.f32 %v2463_v22, %v220_v62  ;;  %v1785_v49 = vmul.f32 %v2454_v20, %v200_v35 }
  0x9a   : > { %v315_v38 = vsub.f32 %v313_v57, %v314_v18  ;;  %v318_v50 = vadd.f32 %v317_v28, %v316_v14  ;;  %v332_v51 = vmul.f32 %v2453_v15, %v200_v35  ;;  %v236_v21 = vpop.permute.xlu1 %235  ;;  %v393_v32 = vsub.f32 %v391_v12, %v392_v44 }
  0x9b   : > { %v396_v1 = vadd.f32 %v395_v60, %v394_v34  ;;  %v471_v24 = vsub.f32 %v469_v5, %v470_v27  ;;  %v474_v41 = vadd.f32 %v473_v29, %v472_v56  ;;  %v2465_v9 = vsub.f32 %v1701_v43, %v1719_v48 }
  0x9c   : > { %v1794_v58 = vadd.f32 %v318_v50, %v1734_v26  ;;  %v1797_v62 = vmul.f32 %v2456_v6, %v200_v35  ;;  %v410_v18 = vmul.f32 %v2455_v10, %v200_v35  ;;  %v2466_v14 = vsub.f32 %v1705_v13, %v1723_v19 }
  0x9d   : > { %v1791_v39 = vadd.f32 %v315_v38, %v2465_v9  ;;  %v1806_v34 = vadd.f32 %v396_v1, %v1738_v30  ;;  %v2467_v43 = vsub.f32 %v1709_v2, %v1727_v55  ;;  %v1814_v26 = vadd.f32 %v474_v41, %v1742_v40  ;;  %v232_v30 = vpop.permute.xlu0 %231  ;;  %v2472_v9 = vld [vmem:[#allocation18_spill] sm:$0xff] }
  0x9e   : > { %v1803_v44 = vadd.f32 %v393_v32, %v2466_v14  ;;  %v1817_v36 = vmul.f32 %v2458_v23, %v200_v35  ;;  %v488_v27 = vmul.f32 %v2457_v42, %v200_v35  ;;  %v1821_v13 = vmul.f32 %v2453_v15, %v196_v52  ;;  %v248_v28 = vpop.permute.xlu1 %247 }
  0x9f   : > { %v1811_v48 = vadd.f32 %v471_v24, %v2467_v43  ;;  %v333_v19 = vmul.f32 %v2454_v20, %v196_v52  ;;  %v1825_v56 = vmul.f32 %v2455_v10, %v196_v52  ;;  %v411_v2 = vmul.f32 %v2456_v6, %v196_v52  ;;  %v2471_v24 = vld [vmem:[#allocation19_spill] sm:$0xff] }
  0xa0   : > { %v1829_v55 = vmul.f32 %v2457_v42, %v196_v52  ;;  %v489_v40 = vmul.f32 %v2458_v23, %v196_v52  ;;  %v1837_v15 = vmul.f32 %v2459_v46, %v236_v21  ;;  %v338_v20 = vmul.f32 %v2460_v3, %v236_v21 }
  0xa1   : > { %v1834_v35 = vadd.f32 %v333_v19, %v332_v51  ;;  %v1842_v6 = vadd.f32 %v411_v2, %v410_v18  ;;  %v1849_v52 = vmul.f32 %v2461_v17, %v236_v21  ;;  %v416_v12 = vmul.f32 %v2462_v63, %v236_v21  ;;  %v2476_v2 = vld [vmem:[#allocation23_spill] sm:$0xff] }
  0xa2   : > { %v1846_v23 = vadd.f32 %v489_v40, %v488_v27  ;;  %v1853_v60 = vmul.f32 %v2463_v22, %v236_v21  ;;  %v494_v5 = vmul.f32 %v2464_v33, %v236_v21  ;;  %v1857_v29 = vmul.f32 %v2460_v3, %v232_v30  ;;  %v244_v21 = vpop.permute.xlu0 %243  ;;  %v2475_v27 = vld [vmem:[#allocation20_spill] sm:$0xff] }
  0xa3   : > { %v339_v38 = vmul.f32 %v2459_v46, %v232_v30  ;;  %v1861_v50 = vmul.f32 %v2462_v63, %v232_v30  ;;  %v417_v51 = vmul.f32 %v2461_v17, %v232_v30  ;;  %v1865_v32 = vmul.f32 %v2464_v33, %v232_v30 }
  0xa4   : > { %2468 = vst [vmem:[#allocation6_spill] sm:$0xff] %v1846_v23  ;;  %2469 = vst [vmem:[#allocation7_spill] sm:$0xff] %v1853_v60  ;;  %v495_v1 = vmul.f32 %v2463_v22, %v232_v30  ;;  %v300_v41 = vmul.f32 %v2471_v24, %v248_v28  ;;  %v302_v18 = vmul.f32 %v2472_v9, %v248_v28  ;;  %v2474_v22 = vld [vmem:[#allocation21_spill] sm:$0xff]  ;;  %v1884_v30 = vpop.permute.xlu1 %259 }
  0xa5   : > { %2470 = vst [vmem:[#allocation2_spill] sm:$0xff] %v1865_v32  ;;  %v1872_v14 = vadd.f32 %v339_v38, %v338_v20  ;;  %v1876_v63 = vadd.f32 %v417_v51, %v416_v12  ;;  %v378_v43 = vmul.f32 %v2474_v22, %v248_v28  ;;  %v380_v19 = vmul.f32 %v2475_v27, %v248_v28  ;;  %v2477_v20 = vld [vmem:[#allocation22_spill] sm:$0xff] }
  0xa6   : > { %v1880_v33 = vadd.f32 %v495_v1, %v494_v5  ;;  %v456_v40 = vmul.f32 %v2476_v2, %v248_v28  ;;  %v458_v38 = vmul.f32 %v2477_v20, %v248_v28  ;;  %v299_v42 = vmul.f32 %v2472_v9, %v244_v21 }
  0xa7   : > { %v303_v12 = vmul.f32 %v2471_v24, %v244_v21  ;;  %v377_v51 = vmul.f32 %v2475_v27, %v244_v21  ;;  %v381_v17 = vmul.f32 %v2474_v22, %v244_v21  ;;  %v455_v5 = vmul.f32 %v2477_v20, %v244_v21 }
  0xa8   : > { %2473 = vst [vmem:[#allocation3_spill] sm:$0xff] %v1880_v33  ;;  %v459_v1 = vmul.f32 %v2476_v2, %v244_v21  ;;  %v301_v46 = vsub.f32 %v299_v42, %v300_v41  ;;  %v1896_v3 = vmul.f32 %v2471_v24, %v1884_v30  ;;  %v1900_v28 = vmul.f32 %v2472_v9, %v1884_v30 }
  0xa9   : > { %v304_v10 = vadd.f32 %v303_v12, %v302_v18  ;;  %v379_v57 = vsub.f32 %v377_v51, %v378_v43  ;;  %v382_v59 = vadd.f32 %v381_v17, %v380_v19  ;;  %v457_v33 = vsub.f32 %v455_v5, %v456_v40  ;;  %v2478_v19 = vld [vmem:[#allocation14_spill] sm:$0xff] }
  0xaa   : > { %v460_v23 = vadd.f32 %v459_v1, %v458_v38  ;;  %v305_v60 = vadd.f32 %v301_v46, %v1762_v61  ;;  %v1906_v42 = vmul.f32 %v2474_v22, %v1884_v30  ;;  %v1910_v41 = vmul.f32 %v2475_v27, %v1884_v30  ;;  %v2479_v46 = vld [vmem:[#allocation15_spill] sm:$0xff] }
  0xab   : > { %v306_v32 = vadd.f32 %v304_v10, %v1764_v16  ;;  %v383_v18 = vadd.f32 %v379_v57, %v1768_v4  ;;  %v384_v21 = vadd.f32 %v382_v59, %v1770_v53  ;;  %v461_v17 = vadd.f32 %v457_v33, %v1772_v47 }
  0xac   : > { %v462_v43 = vadd.f32 %v460_v23, %v1774_v54  ;;  %v646_v61 = vmul.f32 %v2478_v19, %v305_v60  ;;  %v1919_v10 = vmul.f32 %v2479_v46, %v305_v60  ;;  %v1953_v54 = vmul.f32 %v1582_v0, %v305_v60 }
  0xad   : > { %v647_v16 = vmul.f32 %v2479_v46, %v306_v32  ;;  %v1922_v40 = vmul.f32 %v2478_v19, %v306_v32  ;;  %v671_v38 = vmul.f32 %v2478_v19, %v383_v18  ;;  %v672_v4 = vmul.f32 %v2479_v46, %v384_v21 }
  0xae   : > { %2480 = vst [vmem:[#allocation10_spill] sm:$0xff] %v1919_v10  ;;  %v1927_v59 = vmul.f32 %v2479_v46, %v383_v18  ;;  %v1930_v53 = vmul.f32 %v2478_v19, %v384_v21  ;;  %v697_v57 = vmul.f32 %v2478_v19, %v461_v17  ;;  %v698_v23 = vmul.f32 %v2479_v46, %v462_v43 }
  0xaf   : > { %2481 = vst [vmem:[#allocation11_spill] sm:$0xff] %v1922_v40  ;;  %v1932_v47 = vadd.f32 %v647_v16, %v646_v61  ;;  %v1938_v33 = vadd.f32 %v672_v4, %v671_v38  ;;  %v1943_v51 = vmul.f32 %v2479_v46, %v461_v17  ;;  %v1946_v5 = vmul.f32 %v2478_v19, %v462_v43 }
  0xb0   : > { %2482 = vst [vmem:[#allocation9_spill] sm:$0xff] %v1927_v59  ;;  %2483 = vst [vmem:[#allocation8_spill] sm:$0xff] %v1930_v53  ;;  %v1948_v1 = vadd.f32 %v698_v23, %v697_v57  ;;  %v795_v61 = vmul.f32 %v1580_v7, %v305_v60  ;;  %v796_v16 = vmul.f32 %v1582_v0, %v306_v32 }
  0xb1   : > { %2484 = vst [vmem:[#allocation5_spill] sm:$0xff] %v1932_v47  ;;  %2485 = vst [vmem:[#allocation4_spill] sm:$0xff] %v1938_v33  ;;  %v1958_v4 = vmul.f32 %v1580_v7, %v306_v32  ;;  %v821_v46 = vmul.f32 %v1580_v7, %v383_v18  ;;  %v822_v19 = vmul.f32 %v1582_v0, %v384_v21 }
  0xb2   : > { %2486 = vst [vmem:[#allocation13_spill] sm:$0xff] %v1943_v51  ;;  %2487 = vst [vmem:[#allocation12_spill] sm:$0xff] %v1946_v5  ;;  %v1962_v12 = vadd.f32 %v796_v16, %v795_v61  ;;  %v1965_v57 = vmul.f32 %v1582_v0, %v383_v18  ;;  %v1968_v23 = vmul.f32 %v1580_v7, %v384_v21  ;;  %v2020_v61 = vpop.permute.xlu1 %271 }
  0xb3   : > { %2488 = vst [vmem:[#allocation19_spill] sm:$0xff] %v1948_v1  ;;  %v847_v1 = vmul.f32 %v1580_v7, %v461_v17  ;;  %v1973_v5 = vadd.f32 %v822_v19, %v821_v46  ;;  %v848_v51 = vmul.f32 %v1582_v0, %v462_v43  ;;  %v1977_v53 = vmul.f32 %v1582_v0, %v461_v17 }
  0xb4   : > { %v1982_v16 = vmul.f32 %v1580_v7, %v462_v43  ;;  %v945_v59 = vmul.f32 %v1616_v37, %v305_v60  ;;  %v946_v33 = vmul.f32 %v1618_v45, %v306_v32  ;;  %v1989_v46 = vmul.f32 %v1618_v45, %v305_v60 }
  0xb5   : > { %v1986_v40 = vadd.f32 %v848_v51, %v847_v1  ;;  %v1992_v19 = vmul.f32 %v1616_v37, %v306_v32  ;;  %v971_v0 = vmul.f32 %v1616_v37, %v383_v18  ;;  %v972_v7 = vmul.f32 %v1618_v45, %v384_v21  ;;  %v256_v51 = vpop.permute.xlu0 %255 }
  0xb6   : > { %v1997_v38 = vadd.f32 %v946_v33, %v945_v59  ;;  %v2001_v10 = vmul.f32 %v1618_v45, %v383_v18  ;;  %v2006_v1 = vmul.f32 %v1616_v37, %v384_v21  ;;  %v997_v32 = vmul.f32 %v1616_v37, %v461_v17 }
  0xb7   : > { %2489 = vst [vmem:[#allocation18_spill] sm:$0xff] %v1986_v40  ;;  %v998_v47 = vmul.f32 %v1618_v45, %v462_v43  ;;  %v2010_v40 = vadd.f32 %v972_v7, %v971_v0  ;;  %v2013_v59 = vmul.f32 %v1618_v45, %v461_v17  ;;  %v2016_v33 = vmul.f32 %v1616_v37, %v462_v43 }
  0xb8   : > { %v478_v18 = vmul.f32 %v2476_v2, %v1884_v30  ;;  %v480_v0 = vmul.f32 %v2477_v20, %v1884_v30  ;;  %v321_v7 = vmul.f32 %v2472_v9, %v256_v51  ;;  %v325_v37 = vmul.f32 %v2471_v24, %v256_v51 }
  0xb9   : > { %2490 = vst [vmem:[#allocation20_spill] sm:$0xff] %v2010_v40  ;;  %2491 = vst [vmem:[#allocation23_spill] sm:$0xff] %v2013_v59  ;;  %v2024_v60 = vadd.f32 %v998_v47, %v997_v32  ;;  %v399_v17 = vmul.f32 %v2475_v27, %v256_v51  ;;  %v403_v43 = vmul.f32 %v2474_v22, %v256_v51 }
  0xba   : > { %2492 = vst [vmem:[#allocation22_spill] sm:$0xff] %v2016_v33  ;;  %v323_v40 = vsub.f32 %v321_v7, %v1896_v3  ;;  %v477_v21 = vmul.f32 %v2477_v20, %v256_v51  ;;  %v481_v47 = vmul.f32 %v2476_v2, %v256_v51  ;;  %v2039_v30 = vmul.f32 %v2471_v24, %v2020_v61 }
  0xbb   : > { %2493 = vst [vmem:[#allocation14_spill] sm:$0xff] %v2024_v60  ;;  %v326_v32 = vadd.f32 %v325_v37, %v1900_v28  ;;  %v401_v45 = vsub.f32 %v399_v17, %v1906_v42  ;;  %v404_v33 = vadd.f32 %v403_v43, %v1910_v41  ;;  %v2046_v59 = vmul.f32 %v2472_v9, %v2020_v61 }
  0xbc   : > { %2494 = vst [vmem:[#allocation15_spill] sm:$0xff] %v2039_v30  ;;  %v327_v3 = vadd.f32 %v323_v40, %v1791_v39  ;;  %v479_v7 = vsub.f32 %v477_v21, %v478_v18  ;;  %v482_v60 = vadd.f32 %v481_v47, %v480_v0  ;;  %v2051_v51 = vmul.f32 %v2474_v22, %v2020_v61  ;;  %v2498_v40 = vld [vmem:[#allocation16_spill] sm:$0xff]  ;;  %v2499_v21 = vld [vmem:[#allocation17_spill] sm:$0xff] }
  0xbd   : > { %2495 = vst [vmem:[#allocation30_spill] sm:$0xff] %v2046_v59  ;;  %v328_v30 = vadd.f32 %v326_v32, %v1794_v58  ;;  %v405_v28 = vadd.f32 %v401_v45, %v1803_v44  ;;  %v406_v42 = vadd.f32 %v404_v33, %v1806_v34  ;;  %v2058_v41 = vmul.f32 %v2475_v27, %v2020_v61 }
  0xbe   : > { %2496 = vst [vmem:[#allocation31_spill] sm:$0xff] %v2051_v51  ;;  %v483_v37 = vadd.f32 %v479_v7, %v1811_v48  ;;  %v484_v39 = vadd.f32 %v482_v60, %v1814_v26  ;;  %v652_v18 = vmul.f32 %v2498_v40, %v327_v3  ;;  %v2064_v0 = vmul.f32 %v2499_v21, %v327_v3 }
  0xbf   : > { %2497 = vst [vmem:[#allocation32_spill] sm:$0xff] %v2058_v41  ;;  %v653_v17 = vmul.f32 %v2499_v21, %v328_v30  ;;  %v2068_v58 = vmul.f32 %v2498_v40, %v328_v30  ;;  %v677_v44 = vmul.f32 %v2498_v40, %v405_v28  ;;  %v678_v34 = vmul.f32 %v2499_v21, %v406_v42 }
  0xc0   : > { %2500 = vst [vmem:[#allocation16_spill] sm:$0xff] %v2064_v0  ;;  %v2073_v33 = vmul.f32 %v2499_v21, %v405_v28  ;;  %v2076_v48 = vmul.f32 %v2498_v40, %v406_v42  ;;  %v703_v26 = vmul.f32 %v2498_v40, %v483_v37  ;;  %v704_v60 = vmul.f32 %v2499_v21, %v484_v39 }
  0xc1   : > { %2501 = vst [vmem:[#allocation17_spill] sm:$0xff] %v2068_v58  ;;  %v2080_v45 = vadd.f32 %v653_v17, %v652_v18  ;;  %v2084_v47 = vadd.f32 %v678_v34, %v677_v44  ;;  %v2087_v32 = vmul.f32 %v2499_v21, %v483_v37  ;;  %v2094_v51 = vmul.f32 %v2498_v40, %v484_v39 }
  0xc2   : > { %2502 = vst [vmem:[#allocation33_spill] sm:$0xff] %v2073_v33  ;;  %2503 = vst [vmem:[#allocation34_spill] sm:$0xff] %v2076_v48  ;;  %v2091_v41 = vadd.f32 %v704_v60, %v703_v26  ;;  %v801_v59 = vmul.f32 %v1642_v25, %v327_v3  ;;  %v802_v18 = vmul.f32 %v1644_v11, %v328_v30 }
  0xc3   : > { %2504 = vst [vmem:[#allocation35_spill] sm:$0xff] %v2080_v45  ;;  %2505 = vst [vmem:[#allocation36_spill] sm:$0xff] %v2084_v47  ;;  %v804_v17 = vmul.f32 %v1644_v11, %v327_v3  ;;  %v805_v44 = vmul.f32 %v1642_v25, %v328_v30  ;;  %v827_v34 = vmul.f32 %v1642_v25, %v405_v28 }
  0xc4   : > { %2506 = vst [vmem:[#allocation37_spill] sm:$0xff] %v2087_v32  ;;  %2507 = vst [vmem:[#allocation38_spill] sm:$0xff] %v2091_v41  ;;  %v828_v7 = vmul.f32 %v1644_v11, %v406_v42  ;;  %v830_v26 = vmul.f32 %v1644_v11, %v405_v28  ;;  %v831_v40 = vmul.f32 %v1642_v25, %v406_v42 }
  0xc5   : > { %2508 = vst [vmem:[#allocation39_spill] sm:$0xff] %v2094_v51  ;;  %v803_v60 = vadd.f32 %v802_v18, %v801_v59  ;;  %v806_v43 = vsub.f32 %v804_v17, %v805_v44  ;;  %v853_v41 = vmul.f32 %v1642_v25, %v483_v37  ;;  %v854_v48 = vmul.f32 %v1644_v11, %v484_v39 }
  0xc6   : > { %v829_v33 = vadd.f32 %v828_v7, %v827_v34  ;;  %v832_v47 = vsub.f32 %v830_v26, %v831_v40  ;;  %v856_v58 = vmul.f32 %v1644_v11, %v483_v37  ;;  %v857_v0 = vmul.f32 %v1642_v25, %v484_v39 }
  0xc7   : > { %v855_v45 = vadd.f32 %v854_v48, %v853_v41  ;;  %v951_v21 = vmul.f32 %v1656_v31, %v327_v3  ;;  %v952_v51 = vmul.f32 %v1658_v8, %v328_v30  ;;  %v954_v32 = vmul.f32 %v1658_v8, %v327_v3 }
  0xc8   : > { %v858_v22 = vsub.f32 %v856_v58, %v857_v0  ;;  %v955_v59 = vmul.f32 %v1656_v31, %v328_v30  ;;  %v977_v18 = vmul.f32 %v1656_v31, %v405_v28  ;;  %v978_v17 = vmul.f32 %v1658_v8, %v406_v42 }
  0xc9   : > { %v953_v7 = vadd.f32 %v952_v51, %v951_v21  ;;  %v980_v44 = vmul.f32 %v1658_v8, %v405_v28  ;;  %v981_v11 = vmul.f32 %v1656_v31, %v406_v42  ;;  %v1003_v25 = vmul.f32 %v1656_v31, %v483_v37 }
  0xca   : > { %v956_v41 = vsub.f32 %v954_v32, %v955_v59  ;;  %v979_v48 = vadd.f32 %v978_v17, %v977_v18  ;;  %v1004_v34 = vmul.f32 %v1658_v8, %v484_v39  ;;  %v1006_v3 = vmul.f32 %v1658_v8, %v483_v37  ;;  %v2517_v59 = vld [vmem:[#allocation6_spill] sm:$0xff] }
  0xcb   : > { %v982_v0 = vsub.f32 %v980_v44, %v981_v11  ;;  %v1007_v30 = vmul.f32 %v1656_v31, %v484_v39  ;;  %v500_v58 = vmul.f32 %v2476_v2, %v2020_v61  ;;  %v502_v51 = vmul.f32 %v2477_v20, %v2020_v61  ;;  %v2531_v11 = vld [vmem:[#allocation5_spill] sm:$0xff] }
  0xcc   : > { %v1005_v28 = vadd.f32 %v1004_v34, %v1003_v25  ;;  %v2509_v42 = vsub.f32 %v1821_v13, %v1785_v49  ;;  %v2510_v32 = vsub.f32 %v1857_v29, %v1837_v15  ;;  %v342_v8 = vadd.f32 %v1872_v14, %v1834_v35  ;;  %v2514_v13 = vld [vmem:[#allocation2_spill] sm:$0xff]  ;;  %v2515_v15 = vld [vmem:[#allocation7_spill] sm:$0xff] }
  0xcd   : > { %v2511_v31 = vsub.f32 %v1825_v56, %v1797_v62  ;;  %v2512_v37 = vsub.f32 %v1861_v50, %v1849_v52  ;;  %v1008_v26 = vsub.f32 %v1006_v3, %v1007_v30  ;;  %v420_v61 = vadd.f32 %v1876_v63, %v1842_v6  ;;  %v2518_v35 = vld [vmem:[#allocation3_spill] sm:$0xff]  ;;  %v268_v50 = vpop.permute.xlu0 %267  ;;  %v2521_v63 = vld [vmem:[#allocation18_spill] sm:$0xff]  ;;  %v2537_v30 = vld [vmem:[#allocation17_spill] sm:$0xff] }
  0xce   : > { %v341_v21 = vadd.f32 %v2510_v32, %v2509_v42  ;;  %v2513_v49 = vsub.f32 %v1829_v55, %v1817_v36  ;;  %v2516_v29 = vsub.f32 %v2514_v13, %v2515_v15  ;;  %v498_v14 = vadd.f32 %v2518_v35, %v2517_v59  ;;  %v2532_v25 = vld [vmem:[#allocation35_spill] sm:$0xff]  ;;  %v2543_v13 = vld [vmem:[#allocation4_spill] sm:$0xff]  ;;  %v2545_v59 = vld [vmem:[#allocation9_spill] sm:$0xff] }
  0xcf   : > { %v419_v39 = vadd.f32 %v2512_v37, %v2511_v31  ;;  %v2151_v62 = vadd.f32 %v803_v60, %v1962_v12  ;;  %v2519_v56 = vsub.f32 %v1953_v54, %v1958_v4  ;;  %v2159_v6 = vadd.f32 %v829_v33, %v1973_v5  ;;  %v2534_v34 = vld [vmem:[#allocation11_spill] sm:$0xff]  ;;  %v2544_v15 = vld [vmem:[#allocation36_spill] sm:$0xff] }
  0xd0   : > { %v497_v40 = vadd.f32 %v2516_v29, %v2513_v49  ;;  %v2520_v36 = vsub.f32 %v1965_v57, %v1968_v23  ;;  %v2167_v18 = vadd.f32 %v855_v45, %v2521_v63  ;;  %v2522_v12 = vsub.f32 %v1977_v53, %v1982_v16  ;;  %v2524_v57 = vld [vmem:[#allocation20_spill] sm:$0xff]  ;;  %v2528_v16 = vld [vmem:[#allocation22_spill] sm:$0xff]  ;;  %v2541_v31 = vld [vmem:[#allocation31_spill] sm:$0xff] }
  0xd1   : > { %v2156_v52 = vadd.f32 %v806_v43, %v2519_v56  ;;  %v2175_v54 = vadd.f32 %v953_v7, %v1997_v38  ;;  %v2523_v5 = vsub.f32 %v1989_v46, %v1992_v19  ;;  %v2183_v23 = vadd.f32 %v979_v48, %v2524_v57  ;;  %v2526_v43 = vld [vmem:[#allocation14_spill] sm:$0xff]  ;;  %v2530_v7 = vld [vmem:[#allocation21_spill] sm:$0xff]  ;;  %v2546_v35 = vld [vmem:[#allocation8_spill] sm:$0xff] }
  0xd2   : > { %v2164_v55 = vadd.f32 %v832_v47, %v2520_v36  ;;  %v2172_v60 = vadd.f32 %v858_v22, %v2522_v12  ;;  %v2525_v33 = vsub.f32 %v2001_v10, %v2006_v1  ;;  %v2191_v53 = vadd.f32 %v1005_v28, %v2526_v43  ;;  %v2527_v22 = vld [vmem:[#allocation23_spill] sm:$0xff]  ;;  %v2533_v48 = vld [vmem:[#allocation10_spill] sm:$0xff]  ;;  %v2548_v36 = vld [vmem:[#allocation33_spill] sm:$0xff] }
  0xd3   : > { %v2180_v4 = vadd.f32 %v956_v41, %v2523_v5  ;;  %v2529_v38 = vsub.f32 %v2527_v22, %v2528_v16  ;;  %v343_v46 = vmul.f32 %v2472_v9, %v268_v50  ;;  %v347_v19 = vmul.f32 %v2471_v24, %v268_v50  ;;  %v2539_v24 = vld [vmem:[#allocation15_spill] sm:$0xff]  ;;  %v2552_v16 = vld [vmem:[#allocation38_spill] sm:$0xff] }
  0xd4   : > { %v2188_v45 = vadd.f32 %v982_v0, %v2525_v33  ;;  %v421_v17 = vmul.f32 %v2475_v27, %v268_v50  ;;  %v425_v44 = vmul.f32 %v2530_v7, %v268_v50  ;;  %v499_v10 = vmul.f32 %v2477_v20, %v268_v50  ;;  %v2536_v0 = vld [vmem:[#allocation16_spill] sm:$0xff]  ;;  %v2540_v27 = vld [vmem:[#allocation30_spill] sm:$0xff]  ;;  %v2551_v22 = vld [vmem:[#allocation19_spill] sm:$0xff] }
  0xd5   : > { %v2196_v47 = vadd.f32 %v1008_v26, %v2529_v38  ;;  %v503_v1 = vmul.f32 %v2476_v2, %v268_v50  ;;  %v658_v41 = vadd.f32 %v2532_v25, %v2531_v11  ;;  %v2535_v3 = vsub.f32 %v2533_v48, %v2534_v34  ;;  %v2542_v20 = vld [vmem:[#allocation32_spill] sm:$0xff]  ;;  %v2549_v50 = vld [vmem:[#allocation34_spill] sm:$0xff]  ;;  %v2556_v7 = vld [vmem:[#allocation37_spill] sm:$0xff] }
  0xd6   : > { %v2538_v9 = vsub.f32 %v2536_v0, %v2537_v30  ;;  %v345_v42 = vsub.f32 %v343_v46, %v2539_v24  ;;  %v348_v32 = vadd.f32 %v347_v19, %v2540_v27  ;;  %v423_v37 = vsub.f32 %v421_v17, %v2541_v31  ;;  %v2553_v46 = vld [vmem:[#allocation13_spill] sm:$0xff]  ;;  %v2554_v19 = vld [vmem:[#allocation12_spill] sm:$0xff] }
  0xd7   : > { %v426_v26 = vadd.f32 %v425_v44, %v2542_v20  ;;  %v501_v49 = vsub.f32 %v499_v10, %v500_v58  ;;  %v504_v2 = vadd.f32 %v503_v1, %v502_v51  ;;  %v683_v29 = vadd.f32 %v2544_v15, %v2543_v13 }
  0xd8   : > { %v659_v28 = vadd.f32 %v2538_v9, %v2535_v3  ;;  %v2547_v56 = vsub.f32 %v2545_v59, %v2546_v35  ;;  %v2550_v63 = vsub.f32 %v2548_v36, %v2549_v50  ;;  %v2224_v5 = vadd.f32 %v345_v42, %v341_v21  ;;  %v2557_v21 = vld [vmem:[#allocation39_spill] sm:$0xff]  ;;  %v2562_v59 = vld [vmem:[#allocation25_spill] sm:$0xff] }
  0xd9   : > { %v2226_v57 = vadd.f32 %v348_v32, %v342_v8  ;;  %v2228_v33 = vadd.f32 %v423_v37, %v419_v39  ;;  %v2230_v43 = vadd.f32 %v426_v26, %v420_v61  ;;  %v2233_v58 = vadd.f32 %v501_v49, %v497_v40  ;;  %v2559_v39 = vld [vmem:[#allocation26_spill] sm:$0xff]  ;;  %v2560_v61 = vld [vmem:[#allocation27_spill] sm:$0xff]  ;;  %v2561_v26 = vld [vmem:[#allocation24_spill] sm:$0xff] }
  0xda   : > { %v684_v12 = vadd.f32 %v2550_v63, %v2547_v56  ;;  %v2235_v51 = vadd.f32 %v504_v2, %v498_v14  ;;  %v709_v38 = vadd.f32 %v2552_v16, %v2551_v22  ;;  %v2555_v17 = vsub.f32 %v2553_v46, %v2554_v19 }
  0xdb   : > { %v2558_v44 = vsub.f32 %v2556_v7, %v2557_v21  ;;  %v660_v10 = vmul.f32 %v2559_v39, %v2224_v5  ;;  %v661_v1 = vmul.f32 %v2560_v61, %v2226_v57  ;;  %v663_v40 = vmul.f32 %v2560_v61, %v2224_v5 }
  0xdc   : > { %v664_v14 = vmul.f32 %v2559_v39, %v2226_v57  ;;  %v685_v11 = vmul.f32 %v2559_v39, %v2228_v33  ;;  %v686_v25 = vmul.f32 %v2560_v61, %v2230_v43  ;;  %v688_v48 = vmul.f32 %v2560_v61, %v2228_v33 }
  0xdd   : > { %v710_v8 = vadd.f32 %v2558_v44, %v2555_v17  ;;  %v689_v34 = vmul.f32 %v2559_v39, %v2230_v43  ;;  %v662_v3 = vadd.f32 %v661_v1, %v660_v10  ;;  %v711_v30 = vmul.f32 %v2559_v39, %v2233_v58  ;;  %v2563_v10 = vld [vmem:[#allocation28_spill] sm:$0xff] }
  0xde   : > { %v665_v0 = vsub.f32 %v663_v40, %v664_v14  ;;  %v712_v9 = vmul.f32 %v2560_v61, %v2235_v51  ;;  %v687_v24 = vadd.f32 %v686_v25, %v685_v11  ;;  %v714_v27 = vmul.f32 %v2560_v61, %v2233_v58  ;;  %v2564_v40 = vld [vmem:[#allocation29_spill] sm:$0xff] }
  0xdf   : > { %v690_v42 = vsub.f32 %v688_v48, %v689_v34  ;;  %v715_v32 = vmul.f32 %v2559_v39, %v2235_v51  ;;  %v666_v31 = vadd.f32 %v662_v3, %v658_v41  ;;  %v809_v49 = vmul.f32 %v2561_v26, %v2224_v5 }
  0xe0   : > { %v667_v37 = vadd.f32 %v665_v0, %v659_v28  ;;  %v713_v20 = vadd.f32 %v712_v9, %v711_v30  ;;  %v691_v2 = vadd.f32 %v687_v24, %v683_v29  ;;  %v810_v35 = vmul.f32 %v2562_v59, %v2226_v57 }
  0xe1   : > { %v692_v13 = vadd.f32 %v690_v42, %v684_v12  ;;  %v716_v15 = vsub.f32 %v714_v27, %v715_v32  ;;  %668 = vst [vmem:[%s2268_s22] sm:$0xff] %v666_v31  ;;  %v812_v36 = vmul.f32 %v2562_v59, %v2224_v5  ;;  %v813_v41 = vmul.f32 %v2561_v26, %v2226_v57 }
  0xe2   : > { %1156 = vst [vmem:[%s2268_s22 + $0x48] sm:$0xff] %v667_v37  ;;  %v717_v56 = vadd.f32 %v713_v20, %v709_v38  ;;  %v835_v28 = vmul.f32 %v2561_v26, %v2228_v33  ;;  %1157 = vst [vmem:[%s2268_s22 + $0x8] sm:$0xff] %v691_v2  ;;  %v811_v50 = vadd.f32 %v810_v35, %v809_v49 }
  0xe3   : > { %1158 = vst [vmem:[%s2268_s22 + $0x50] sm:$0xff] %v692_v13  ;;  %v718_v29 = vadd.f32 %v716_v15, %v710_v8  ;;  %v836_v63 = vmul.f32 %v2562_v59, %v2230_v43  ;;  %v838_v12 = vmul.f32 %v2562_v59, %v2228_v33  ;;  %v814_v22 = vsub.f32 %v812_v36, %v813_v41 }
  0xe4   : > { %1159 = vst [vmem:[%s2268_s22 + $0x10] sm:$0xff] %v717_v56  ;;  %v839_v16 = vmul.f32 %v2561_v26, %v2230_v43  ;;  %v861_v38 = vmul.f32 %v2561_v26, %v2233_v58  ;;  %v862_v46 = vmul.f32 %v2562_v59, %v2235_v51  ;;  %v815_v19 = vadd.f32 %v811_v50, %v2151_v62 }
  0xe5   : > { %1160 = vst [vmem:[%s2268_s22 + $0x58] sm:$0xff] %v718_v29  ;;  %v837_v17 = vadd.f32 %v836_v63, %v835_v28  ;;  %v864_v7 = vmul.f32 %v2562_v59, %v2233_v58  ;;  %v865_v21 = vmul.f32 %v2561_v26, %v2235_v51  ;;  %v816_v44 = vadd.f32 %v814_v22, %v2156_v52 }
  0xe6   : > { %v840_v8 = vsub.f32 %v838_v12, %v839_v16  ;;  %v863_v39 = vadd.f32 %v862_v46, %v861_v38  ;;  %v959_v61 = vmul.f32 %v2563_v10, %v2224_v5  ;;  %1167 = vst [vmem:[%s2268_s22 + $0x18] sm:$0xff] %v815_v19  ;;  %v960_v14 = vmul.f32 %v2564_v40, %v2226_v57 }
  0xe7   : > { %v841_v62 = vadd.f32 %v837_v17, %v2159_v6  ;;  %v866_v1 = vsub.f32 %v864_v7, %v865_v21  ;;  %v962_v11 = vmul.f32 %v2564_v40, %v2224_v5  ;;  %1168 = vst [vmem:[%s2268_s22 + $0x60] sm:$0xff] %v816_v44  ;;  %v963_v48 = vmul.f32 %v2563_v10, %v2226_v57 }
  0xe8   : > { %v842_v52 = vadd.f32 %v840_v8, %v2164_v55  ;;  %v867_v25 = vadd.f32 %v863_v39, %v2167_v18  ;;  %v985_v34 = vmul.f32 %v2563_v10, %v2228_v33  ;;  %v961_v3 = vadd.f32 %v960_v14, %v959_v61 }
  0xe9   : > { %1169 = vst [vmem:[%s2268_s22 + $0x20] sm:$0xff] %v841_v62  ;;  %v868_v6 = vadd.f32 %v866_v1, %v2172_v60  ;;  %v986_v0 = vmul.f32 %v2564_v40, %v2230_v43  ;;  %v988_v5 = vmul.f32 %v2564_v40, %v2228_v33  ;;  %v964_v55 = vsub.f32 %v962_v11, %v963_v48 }
  0xea   : > { %1170 = vst [vmem:[%s2268_s22 + $0x68] sm:$0xff] %v842_v52  ;;  %1171 = vst [vmem:[%s2268_s22 + $0x28] sm:$0xff] %v867_v25  ;;  %v989_v18 = vmul.f32 %v2563_v10, %v2230_v43  ;;  %v1011_v57 = vmul.f32 %v2563_v10, %v2233_v58  ;;  %v1012_v60 = vmul.f32 %v2564_v40, %v2235_v51 }
  0xeb   : > { %1172 = vst [vmem:[%s2268_s22 + $0x70] sm:$0xff] %v868_v6  ;;  %v965_v30 = vadd.f32 %v961_v3, %v2175_v54  ;;  %v987_v33 = vadd.f32 %v986_v0, %v985_v34  ;;  %v1014_v9 = vmul.f32 %v2564_v40, %v2233_v58  ;;  %v1015_v43 = vmul.f32 %v2563_v10, %v2235_v51 }
  0xec   : > { %v966_v24 = vadd.f32 %v964_v55, %v2180_v4  ;;  %v990_v42 = vsub.f32 %v988_v5, %v989_v18  ;;  %v1013_v27 = vadd.f32 %v1012_v60, %v1011_v57 }
  0xed   : > { %1179 = vst [vmem:[%s2268_s22 + $0x30] sm:$0xff] %v965_v30  ;;  %v991_v32 = vadd.f32 %v987_v33, %v2183_v23  ;;  %v1016_v31 = vsub.f32 %v1014_v9, %v1015_v43 }
  0xee   : > { %1180 = vst [vmem:[%s2268_s22 + $0x78] sm:$0xff] %v966_v24  ;;  %v992_v54 = vadd.f32 %v990_v42, %v2188_v45  ;;  %v1017_v37 = vadd.f32 %v1013_v27, %v2191_v53 }
  0xef   : > { %1181 = vst [vmem:[%s2268_s22 + $0x38] sm:$0xff] %v991_v32  ;;  %v1018_v20 = vadd.f32 %v1016_v31, %v2196_v47 }
  0xf0   : > { %1182 = vst [vmem:[%s2268_s22 + $0x80] sm:$0xff] %v992_v54  ;;  %1183 = vst [vmem:[%s2268_s22 + $0x40] sm:$0xff] %v1017_v37 }
  0xf1   : > { %1184 = vst [vmem:[%s2268_s22 + $0x88] sm:$0xff] %v1018_v20 }
  0xf2 PF: > { %s12_s9 = sadd.s32 1, %s1204_s9  }
  0xf3   : > { %p9_p4 = scmp.ge.s32.totalorder %s12_s9, 4  }
  0xf5   :  { %11 = sbr.rel (!%p9_p4) target bundleno = 1 (0x1), region = 112 }

</bundles_post_ra>
